<compile_context>
chip_gen: v7x
topology: tpu7x:2x2x1
jax: 0.10.0
libtpu: 0.0.40
codegen_flags: <defaults>
</compile_context>

<pallas_src>
import functools

import jax
import jax.numpy as jnp
from jax import lax
from jax.experimental import pallas as pl
from jax.experimental.pallas import tpu as pltpu

EPS = 1e-5      # nn.BatchNorm2d default
LANE = 128      # TPU lane width: keep every channel axis a multiple of this

_PARALLEL = pltpu.CompilerParams(dimension_semantics=("parallel",))


# ------------------------------ small helpers -------------------------------

def _round_up(x, m):
    return (x + m - 1) // m * m


def _pick_tile(p):
    """Pixel-tile size: large for DMA/MXU efficiency, small vs VMEM budget."""
    for t in (1024, 512, 256):
        if p >= 2 * t:
            return t
    return min(256, _round_up(p, 8))


def _pad_axis(a, axis, size):
    pad = size - a.shape[axis]
    if pad == 0:
        return a
    widths = [(0, 0)] * a.ndim
    widths[axis] = (0, pad)
    return jnp.pad(a, widths)


def _pad_rows(slab, rows):
    return slab if slab.shape[0] == rows else _pad_axis(slab, 0, rows)


def _slab_spec(tile, c):
    return pl.BlockSpec((tile, c), lambda i: (i, 0))


def _bcast_spec(shape):
    nd = len(shape)
    return pl.BlockSpec(shape, lambda i: (0,) * nd)   # same block every step


def _stats_spec(c):
    return pl.BlockSpec((1, 2, c), lambda i: (i, 0, 0))  # per-tile partial stats


# ----------------------------- Pallas kernels ------------------------------

def _partial_stats(y, p_real, tile_p, need_mask):
    """Per-tile per-channel [sum ; sum of squares]; padded rows masked out."""
    if need_mask:   # rows appended to make P a tile multiple must not count
        row = pl.program_id(0) * tile_p + lax.broadcasted_iota(
            jnp.int32, y.shape, 0)
        y = jnp.where(row < p_real, y, 0.0)
    s = jnp.sum(y, axis=0, keepdims=True)
    sq = jnp.sum(y * y, axis=0, keepdims=True)
    return jnp.concatenate([s, sq], axis=0)[None]           # (1, 2, C)


def bn_stats_kernel(x_ref, st_ref, *, p_real, tile_p, need_mask):
    st_ref[...] = _partial_stats(x_ref[...].astype(jnp.float32),
                                 p_real, tile_p, need_mask)


def _bn_relu(x, m, s):
    return jnp.maximum((x.astype(jnp.float32) - m) * s, 0.0)


def bn_relu_mm_kernel(x_ref, m_ref, s_ref, w_ref, o_ref):
    # fused: normalize + ReLU + 1x1 conv (bf16 MXU operands, f32 accumulate)
    xb = _bn_relu(x_ref[...], m_ref[...], s_ref[...]).astype(jnp.bfloat16)
    o_ref[...] = jnp.dot(xb, w_ref[...],
                         preferred_element_type=jnp.float32).astype(o_ref.dtype)


def bn_relu_mm_stats_kernel(x_ref, m_ref, s_ref, w_ref, o_ref, st_ref, *,
                            p_real, tile_p, need_mask):
    # fused: normalize + ReLU + 1x1 conv + partial stats of the conv output
    xb = _bn_relu(x_ref[...], m_ref[...], s_ref[...]).astype(jnp.bfloat16)
    acc = jnp.dot(xb, w_ref[...], preferred_element_type=jnp.float32)
    o_ref[...] = acc.astype(o_ref.dtype)
    st_ref[...] = _partial_stats(acc, p_real, tile_p, need_mask)


def bn_relu_mm_dual_stats_kernel(x_ref, m_ref, s_ref, wa_ref, wb_ref,
                                 oa_ref, ob_ref, st_ref, *,
                                 p_real, tile_p, need_mask):
    # fused: normalize + ReLU + (conv1 AND shortcut conv) from one slab read,
    # plus partial stats of the conv1 output (feeds bn2 for free).
    xb = _bn_relu(x_ref[...], m_ref[...], s_ref[...]).astype(jnp.bfloat16)
    acc = jnp.dot(xb, wa_ref[...], preferred_element_type=jnp.float32)
    oa_ref[...] = acc.astype(oa_ref.dtype)
    ob_ref[...] = jnp.dot(xb, wb_ref[...],
                          preferred_element_type=jnp.float32).astype(ob_ref.dtype)
    st_ref[...] = _partial_stats(acc, p_real, tile_p, need_mask)


def bn_relu_mm_add_kernel(x_ref, m_ref, s_ref, w_ref, r_ref, o_ref):
    # fused: normalize + ReLU + 1x1 conv + residual add
    xb = _bn_relu(x_ref[...], m_ref[...], s_ref[...]).astype(jnp.bfloat16)
    acc = jnp.dot(xb, w_ref[...], preferred_element_type=jnp.float32)
    o_ref[...] = (acc + r_ref[...].astype(jnp.float32)).astype(o_ref.dtype)


def bn_relu_conv3x3_stats_kernel(x_ref, m_ref, s_ref, w_ref, o_ref, st_ref, *,
                                 hout, wout, stride, cin_p):
    # x_ref: (1, H+2, W+2, Cin_p); the spatial halo is pre-filled with -1e9 so
    # that after (x - mean) * scale and ReLU it is exactly 0 (== conv2's zero
    # padding applied to relu(bn2(.)) in PyTorch).
    m = m_ref[...].reshape(1, 1, cin_p)
    s = s_ref[...].reshape(1, 1, cin_p)
    v = jnp.maximum((x_ref[0].astype(jnp.float32) - m) * s, 0.0
                    ).astype(jnp.bfloat16)                 # (H+2, W+2, Cin_p)
    taps = []
    for ky in range(3):
        for kx in range(3):
            t = v[ky:ky + stride * (hout - 1) + 1:stride,
                  kx:kx + stride * (wout - 1) + 1:stride, :]
            taps.append(t.reshape(hout * wout, cin_p))
    patch = jnp.concatenate(taps, axis=1)                  # (Hout*Wout, 9*Cin_p)
    out = jnp.dot(patch, w_ref[...], preferred_element_type=jnp.float32)
    o_ref[...] = out.reshape(o_ref.shape).astype(o_ref.dtype)
    s0 = jnp.sum(out, axis=0, keepdims=True)               # partial stats for bn3
    s1 = jnp.sum(out * out, axis=0, keepdims=True)
    st_ref[...] = jnp.concatenate([s0, s1], axis=0)[None]


# ---------------------------- pallas_call stages -----------------------------

def _finalize_stats(partials, count):
    """(ntiles, 2, C) partial sums -> per-channel mean, rsqrt(var + eps)."""
    tot = jnp.sum(partials, axis=0)                         # (2, C)
    mean = tot[0:1, :] / count
    var = jnp.maximum(tot[1:2, :] / count - mean * mean, 0.0)  # biased var
    return mean, lax.rsqrt(var + EPS)


def _bn_stats(slab, p_real, tile):
    """Full-batch per-channel mean / rsqrt(var+eps) via per-tile partials."""
    p_pad, cp = slab.shape
    nt = p_pad // tile
    partial = pl.pallas_call(
        functools.partial(bn_stats_kernel, p_real=p_real, tile_p=tile,
                          need_mask=(p_pad != p_real)),
        out_shape=jax.ShapeDtypeStruct((nt, 2, cp), jnp.float32),
        grid=(nt,),
        in_specs=[_slab_spec(tile, cp)],
        out_specs=_stats_spec(cp),
        compiler_params=_PARALLEL,
    )(slab)
    return _finalize_stats(partial, p_real)


def _bn_relu_conv1x1(slab, mean, scale, w, tile, out_dtype, residual=None):
    p_pad, cin_p = slab.shape
    cout_p = w.shape[1]
    grid = (p_pad // tile,)
    if residual is None:
        return pl.pallas_call(
            bn_relu_mm_kernel,
            out_shape=jax.ShapeDtypeStruct((p_pad, cout_p), out_dtype),
            grid=grid,
            in_specs=[_slab_spec(tile, cin_p), _bcast_spec((1, cin_p)),
                      _bcast_spec((1, cin_p)), _bcast_spec((cin_p, cout_p))],
            out_specs=_slab_spec(tile, cout_p),
            compiler_params=_PARALLEL,
        )(slab, mean, scale, w)
    return pl.pallas_call(
        bn_relu_mm_add_kernel,
        out_shape=jax.ShapeDtypeStruct((p_pad, cout_p), out_dtype),
        grid=grid,
        in_specs=[_slab_spec(tile, cin_p), _bcast_spec((1, cin_p)),
                  _bcast_spec((1, cin_p)), _bcast_spec((cin_p, cout_p)),
                  _slab_spec(tile, cout_p)],
        out_specs=_slab_spec(tile, cout_p),
        compiler_params=_PARALLEL,
    )(slab, mean, scale, w, residual)


def _bn_relu_conv1x1_stats(slab, mean, scale, w, tile, out_dtype, p_real):
    p_pad, cin_p = slab.shape
    cout_p = w.shape[1]
    nt = p_pad // tile
    return pl.pallas_call(
        functools.partial(bn_relu_mm_stats_kernel, p_real=p_real, tile_p=tile,
                          need_mask=(p_pad != p_real)),
        out_shape=(jax.ShapeDtypeStruct((p_pad, cout_p), out_dtype),
                   jax.ShapeDtypeStruct((nt, 2, cout_p), jnp.float32)),
        grid=(nt,),
        in_specs=[_slab_spec(tile, cin_p), _bcast_spec((1, cin_p)),
                  _bcast_spec((1, cin_p)), _bcast_spec((cin_p, cout_p))],
        out_specs=(_slab_spec(tile, cout_p), _stats_spec(cout_p)),
        compiler_params=_PARALLEL,
    )(slab, mean, scale, w)


def _bn_relu_conv1x1_dual_stats(slab, mean, scale, w_a, w_b, tile,
                                dtype_a, dtype_b, p_real):
    p_pad, cin_p = slab.shape
    ca, cb = w_a.shape[1], w_b.shape[1]
    nt = p_pad // tile
    return pl.pallas_call(
        functools.partial(bn_relu_mm_dual_stats_kernel, p_real=p_real,
                          tile_p=tile, need_mask=(p_pad != p_real)),
        out_shape=(jax.ShapeDtypeStruct((p_pad, ca), dtype_a),
                   jax.ShapeDtypeStruct((p_pad, cb), dtype_b),
                   jax.ShapeDtypeStruct((nt, 2, ca), jnp.float32)),
        grid=(nt,),
        in_specs=[_slab_spec(tile, cin_p), _bcast_spec((1, cin_p)),
                  _bcast_spec((1, cin_p)), _bcast_spec((cin_p, ca)),
                  _bcast_spec((cin_p, cb))],
        out_specs=(_slab_spec(tile, ca), _slab_spec(tile, cb),
                   _stats_spec(ca)),
        compiler_params=_PARALLEL,
    )(slab, mean, scale, w_a, w_b)


# ------------------------------ forward pass --------------------------------

def preact_bottleneck_forward(x_nchw, params, stride=1):
    """params = (w1, w2, w3, w_sc); w_sc may be None (identity shortcut).

    w1: (in_planes, planes)       conv1 1x1
    w2: (9, planes, planes)       conv2 3x3 taps, tap k = 3*ky + kx
    w3: (planes, 4*planes)        conv3 1x1
    w_sc: (in_planes, 4*planes)   shortcut 1x1 (with stride)
    """
    w1, w2, w3, w_sc = params
    n, cin, h, w = x_nchw.shape
    planes = w1.shape[1]
    cout = 4 * planes
    hout = (h - 1) // stride + 1
    wout = (w - 1) // stride + 1
    p, pout = n * h * w, n * hout * wout

    c0p = _round_up(cin, LANE)
    c1p = _round_up(planes, LANE)
    c2p = c1p
    c3p = _round_up(cout, LANE)
    tile_p, tile_po = _pick_tile(p), _pick_tile(pout)
    p_pad, pout_pad = _round_up(p, tile_p), _round_up(pout, tile_po)

    # Lane-dense, zero-padded bf16 weights for the MXU.
    w1p = _pad_axis(_pad_axis(w1, 0, c0p), 1, c1p).astype(jnp.bfloat16)
    w2p = _pad_axis(_pad_axis(w2, 1, c1p), 2, c2p).reshape(
        9 * c1p, c2p).astype(jnp.bfloat16)
    w3p = _pad_axis(_pad_axis(w3, 0, c2p), 1, c3p).astype(jnp.bfloat16)
    wscp = (None if w_sc is None
            else _pad_axis(_pad_axis(w_sc, 0, c0p), 1, c3p).astype(jnp.bfloat16))

    # NCHW -> NHWC -> (P, C) pixel-major slab, channels padded to 128 lanes.
    # TODO(synk): keep the surrounding network in NHWC/(P,C) to drop this
    # transpose and the final one (they are extra HBM round trips).
    x_img = _pad_axis(jnp.transpose(x_nchw, (0, 2, 3, 1)).astype(jnp.float32),
                      3, c0p)
    x_slab = _pad_rows(x_img.reshape(p, c0p), p_pad)

    # --- bn1 statistics (full batch, biased variance) -------------------------
    mean1, scale1 = _bn_stats(x_slab, p, tile_p)

    # --- relu(bn1(x)) -> conv1 (1x1); shortcut conv fused in when stride == 1;
    #     bn2 partial stats produced by the same kernel (no extra y1 read) -----
    if w_sc is not None and stride == 1:
        y1, sc_slab, st2 = _bn_relu_conv1x1_dual_stats(
            x_slab, mean1, scale1, w1p, wscp, tile_p,
            jnp.bfloat16, jnp.float32, p)
    else:
        y1, st2 = _bn_relu_conv1x1_stats(x_slab, mean1, scale1, w1p, tile_p,
                                         jnp.bfloat16, p)
        if w_sc is not None:
            # stride > 1: subsample raw x, reuse the same fused bn+relu+conv.
            # TODO(synk): fold this strided subsampling into the index_map.
            x_sc = _pad_rows(
                x_img[:, ::stride, ::stride, :].reshape(pout, c0p), pout_pad)
            sc_slab = _bn_relu_conv1x1(x_sc, mean1, scale1, wscp, tile_po,
                                       jnp.float32)
        else:
            sc_slab = x_slab            # identity shortcut uses pre-BN x

    # --- relu(bn2(.)) fused into the 3x3 conv (halo tile in VMEM);
    #     bn3 partial stats produced by the same kernel ------------------------
    mean2, scale2 = _finalize_stats(st2, p)
    y1_img = y1[:p].reshape(n, h, w, c1p)
    # Halo filled with -1e9: exactly 0 after normalize+ReLU inside the kernel.
    y1_halo = jnp.pad(y1_img, ((0, 0), (1, 1), (1, 1), (0, 0)),
                      constant_values=-1e9)
    y2, st3 = pl.pallas_call(
        functools.partial(bn_relu_conv3x3_stats_kernel, hout=hout, wout=wout,
                          stride=stride, cin_p=c1p),
        out_shape=(jax.ShapeDtypeStruct((n, hout, wout, c2p), jnp.bfloat16),
                   jax.ShapeDtypeStruct((n, 2, c2p), jnp.float32)),
        grid=(n,),
        in_specs=[pl.BlockSpec((1, h + 2, w + 2, c1p), lambda b: (b, 0, 0, 0)),
                  _bcast_spec((1, c1p)), _bcast_spec((1, c1p)),
                  _bcast_spec((9 * c1p, c2p))],
        out_specs=(pl.BlockSpec((1, hout, wout, c2p), lambda b: (b, 0, 0, 0)),
                   pl.BlockSpec((1, 2, c2p), lambda b: (b, 0, 0))),
        compiler_params=_PARALLEL,
    )(y1_halo, mean2, scale2, w2p)

    # --- relu(bn3(.)) -> conv3 (1x1) fused with the residual add --------------
    mean3, scale3 = _finalize_stats(st3, pout)
    y2_slab = _pad_rows(y2.reshape(pout, c2p), pout_pad)
    out_slab = _bn_relu_conv1x1(y2_slab, mean3, scale3, w3p, tile_po,
                                jnp.float32, residual=sc_slab)

    out = out_slab[:pout].reshape(n, hout, wout, c3p)[..., :cout]
    return jnp.transpose(out, (0, 3, 1, 2))                # back to NCHW


# ------------------------------ pure-JAX reference ---------------------------

def ref_forward(x_nchw, params, stride=1):
    w1, w2, w3, w_sc = params
    x = jnp.transpose(x_nchw, (0, 2, 3, 1)).astype(jnp.float32)  # NHWC
    dn = ('NHWC', 'HWIO', 'NHWC')

    def bn_relu(v):
        mean = jnp.mean(v, axis=(0, 1, 2), keepdims=True)
        var = jnp.mean((v - mean) ** 2, axis=(0, 1, 2), keepdims=True)
        return jnp.maximum((v - mean) * lax.rsqrt(var + EPS), 0.0)

    out = bn_relu(x)
    if w_sc is not None:
        sc = lax.conv_general_dilated(out, w_sc.reshape(1, 1, *w_sc.shape),
                                      (stride, stride), 'VALID',
                                      dimension_numbers=dn)
    else:
        sc = x
    y = lax.conv_general_dilated(out, w1.reshape(1, 1, *w1.shape), (1, 1),
                                 'VALID', dimension_numbers=dn)
    y = bn_relu(y)
    y = lax.conv_general_dilated(y, w2.reshape(3, 3, *w2.shape[1:]),
                                 (stride, stride), ((1, 1), (1, 1)),
                                 dimension_numbers=dn)
    y = bn_relu(y)
    y = lax.conv_general_dilated(y, w3.reshape(1, 1, *w3.shape), (1, 1),
                                 'VALID', dimension_numbers=dn) + sc
    return jnp.transpose(y, (0, 3, 1, 2))


# ----------------------------------- main ------------------------------------

if __name__ == "__main__":
    in_planes, planes, stride = 4, 4, 1
    n_, h_, w_ = 2, 16, 16

    key = jax.random.PRNGKey(0)
    k1, k2, k3, k4, kx = jax.random.split(key, 5)
    w1 = 0.1 * jax.random.normal(k1, (in_planes, planes), jnp.float32)
    w2 = 0.1 * jax.random.normal(k2, (9, planes, planes), jnp.float32)
    w3 = 0.1 * jax.random.normal(k3, (planes, 4 * planes), jnp.float32)
    need_sc = (stride != 1) or (in_planes != 4 * planes)
    w_sc = (0.1 * jax.random.normal(k4, (in_planes, 4 * planes), jnp.float32)
            if need_sc else None)
    params = (w1, w2, w3, w_sc)

    x = jax.random.normal(kx, (n_, in_planes, h_, w_), jnp.float32)

    fwd = jax.jit(functools.partial(preact_bottleneck_forward, stride=stride))
    out = jax.block_until_ready(fwd(x, params))
    ref = ref_forward(x, params, stride)

    assert out.shape == (n_, 4 * planes, (h_ - 1) // stride + 1,
                         (w_ - 1) // stride + 1), out.shape
    max_err = float(jnp.max(jnp.abs(out - ref)))
    # bf16 MXU operands with f32 accumulation -> allow ~1e-2 absolute error
    # against the all-f32 reference.
    assert max_err < 5e-2, f"mismatch vs reference: max abs err {max_err}"
    print("KERNEL_OK")
</pallas_src>

<mosaic_0001>
module attributes {stable_mosaic.version = 11 : i64} {
  func.func @bn_stats_kernel(%arg0: i32, %arg1: memref<256x128xf32, #tpu.memory_space<vmem>>, %arg2: memref<1x2x128xf32, #tpu.memory_space<vmem>>) attributes {dimension_semantics = [#tpu.dimension_semantics<parallel>], iteration_bounds = array<i64: 2>, scalar_prefetch = 0 : i64, scratch_operands = 0 : i64, tpu.core_type = #tpu.core_type<tc>, window_params = [{transform_indices = @transform_0, window_bounds = array<i64: 256, 128>}, {transform_indices = @transform_1, window_bounds = array<i64: 1, 2, 128>}]} {
    %c0 = arith.constant 0 : index
    %c0_0 = arith.constant 0 : index
    %0 = vector.load %arg1[%c0, %c0_0] : memref<256x128xf32, #tpu.memory_space<vmem>>, vector<256x128xf32>
    %cst = arith.constant dense<0.000000e+00> : vector<128xf32>
    %1 = vector.multi_reduction <add>, %0, %cst [0] : vector<256x128xf32> to vector<128xf32>
    %2 = vector.shape_cast %1 : vector<128xf32> to vector<1x128xf32>
    %3 = arith.mulf %0, %0 : vector<256x128xf32>
    %cst_1 = arith.constant dense<0.000000e+00> : vector<128xf32>
    %4 = vector.multi_reduction <add>, %3, %cst_1 [0] : vector<256x128xf32> to vector<128xf32>
    %5 = vector.shape_cast %4 : vector<128xf32> to vector<1x128xf32>
    %6 = tpu.concatenate %2, %5 in 0 : vector<1x128xf32>, vector<1x128xf32> -> vector<2x128xf32>
    %7 = vector.shape_cast %6 : vector<2x128xf32> to vector<1x2x128xf32>
    %c0_2 = arith.constant 0 : index
    %c0_3 = arith.constant 0 : index
    %c0_4 = arith.constant 0 : index
    %8 = vector.load %arg2[%c0_2, %c0_3, %c0_4] : memref<1x2x128xf32, #tpu.memory_space<vmem>>, vector<1x2x128xf32>
    tpu.vector_store %arg2[%c0_2, %c0_3, %c0_4], %7 {strides = array<i32>} : memref<1x2x128xf32, #tpu.memory_space<vmem>>, vector<1x2x128xf32>,
    return
  }
  func.func @transform_0(%arg0: i32) -> (i32, i32) {
    %c0_i32 = arith.constant 0 : i32
    %c0_i32_0 = arith.constant 0 : i32
    return %arg0, %c0_i32 : i32, i32
  }
  func.func @transform_1(%arg0: i32) -> (i32, i32, i32) {
    %c0_i32 = arith.constant 0 : i32
    %c0_i32_0 = arith.constant 0 : i32
    %c0_i32_1 = arith.constant 0 : i32
    return %arg0, %c0_i32, %c0_i32_0 : i32, i32, i32
  }
}

module attributes {stable_mosaic.version = 11 : i64} {
  func.func @bn_relu_mm_dual_stats_kernel(%arg0: i32, %arg1: memref<256x128xf32, #tpu.memory_space<vmem>>, %arg2: memref<1x128xf32, #tpu.memory_space<vmem>>, %arg3: memref<1x128xf32, #tpu.memory_space<vmem>>, %arg4: memref<128x128xbf16, #tpu.memory_space<vmem>>, %arg5: memref<128x128xbf16, #tpu.memory_space<vmem>>, %arg6: memref<256x128xbf16, #tpu.memory_space<vmem>>, %arg7: memref<256x128xf32, #tpu.memory_space<vmem>>, %arg8: memref<1x2x128xf32, #tpu.memory_space<vmem>>) attributes {dimension_semantics = [#tpu.dimension_semantics<parallel>], iteration_bounds = array<i64: 2>, scalar_prefetch = 0 : i64, scratch_operands = 0 : i64, tpu.core_type = #tpu.core_type<tc>, window_params = [{transform_indices = @transform_0, window_bounds = array<i64: 256, 128>}, {pipeline_mode = #tpu.pipeline_mode<synchronous>, transform_indices = @transform_1, window_bounds = array<i64: 1, 128>}, {pipeline_mode = #tpu.pipeline_mode<synchronous>, transform_indices = @transform_2, window_bounds = array<i64: 1, 128>}, {pipeline_mode = #tpu.pipeline_mode<synchronous>, transform_indices = @transform_3, window_bounds = array<i64: 128, 128>}, {pipeline_mode = #tpu.pipeline_mode<synchronous>, transform_indices = @transform_4, window_bounds = array<i64: 128, 128>}, {transform_indices = @transform_5, window_bounds = array<i64: 256, 128>}, {transform_indices = @transform_6, window_bounds = array<i64: 256, 128>}, {transform_indices = @transform_7, window_bounds = array<i64: 1, 2, 128>}]} {
    %c0 = arith.constant 0 : index
    %c0_0 = arith.constant 0 : index
    %0 = vector.load %arg1[%c0, %c0_0] : memref<256x128xf32, #tpu.memory_space<vmem>>, vector<256x128xf32>
    %c0_1 = arith.constant 0 : index
    %c0_2 = arith.constant 0 : index
    %1 = vector.load %arg2[%c0_1, %c0_2] : memref<1x128xf32, #tpu.memory_space<vmem>>, vector<1x128xf32>
    %c0_3 = arith.constant 0 : index
    %c0_4 = arith.constant 0 : index
    %2 = vector.load %arg3[%c0_3, %c0_4] : memref<1x128xf32, #tpu.memory_space<vmem>>, vector<1x128xf32>
    %3 = vector.broadcast %1 : vector<1x128xf32> to vector<256x128xf32>
    %4 = arith.subf %0, %3 : vector<256x128xf32>
    %5 = vector.broadcast %2 : vector<1x128xf32> to vector<256x128xf32>
    %6 = arith.mulf %4, %5 : vector<256x128xf32>
    %cst = arith.constant 0.000000e+00 : f32
    %7 = vector.broadcast %cst : f32 to vector<256x128xf32>
    %8 = arith.maximumf %6, %7 : vector<256x128xf32>
    %9 = arith.truncf %8 : vector<256x128xf32> to vector<256x128xbf16>
    %c0_5 = arith.constant 0 : index
    %c0_6 = arith.constant 0 : index
    %10 = vector.load %arg4[%c0_5, %c0_6] : memref<128x128xbf16, #tpu.memory_space<vmem>>, vector<128x128xbf16>
    %cst_7 = arith.constant dense<0.000000e+00> : vector<256x128xf32>
    %11 = tpu.matmul %9, %10, %cst_7 {dimension_numbers = #tpu.dot_dimension_numbers<[1], [0], [0], [1], [0, 0, 1, 1], [], []>} : vector<256x128xbf16>, vector<128x128xbf16>, vector<256x128xf32> -> vector<256x128xf32>
    %12 = arith.truncf %11 : vector<256x128xf32> to vector<256x128xbf16>
    %c0_8 = arith.constant 0 : index
    %c0_9 = arith.constant 0 : index
    %13 = vector.load %arg6[%c0_8, %c0_9] : memref<256x128xbf16, #tpu.memory_space<vmem>>, vector<256x128xbf16>
    tpu.vector_store %arg6[%c0_8, %c0_9], %12 {strides = array<i32>} : memref<256x128xbf16, #tpu.memory_space<vmem>>, vector<256x128xbf16>,
    %c0_10 = arith.constant 0 : index
    %c0_11 = arith.constant 0 : index
    %14 = vector.load %arg5[%c0_10, %c0_11] : memref<128x128xbf16, #tpu.memory_space<vmem>>, vector<128x128xbf16>
    %cst_12 = arith.constant dense<0.000000e+00> : vector<256x128xf32>
    %15 = tpu.matmul %9, %14, %cst_12 {dimension_numbers = #tpu.dot_dimension_numbers<[1], [0], [0], [1], [0, 0, 1, 1], [], []>} : vector<256x128xbf16>, vector<128x128xbf16>, vector<256x128xf32> -> vector<256x128xf32>
    %c0_13 = arith.constant 0 : index
    %c0_14 = arith.constant 0 : index
    %16 = vector.load %arg7[%c0_13, %c0_14] : memref<256x128xf32, #tpu.memory_space<vmem>>, vector<256x128xf32>
    tpu.vector_store %arg7[%c0_13, %c0_14], %15 {strides = array<i32>} : memref<256x128xf32, #tpu.memory_space<vmem>>, vector<256x128xf32>,
    %cst_15 = arith.constant dense<0.000000e+00> : vector<128xf32>
    %17 = vector.multi_reduction <add>, %11, %cst_15 [0] : vector<256x128xf32> to vector<128xf32>
    %18 = vector.shape_cast %17 : vector<128xf32> to vector<1x128xf32>
    %19 = arith.mulf %11, %11 : vector<256x128xf32>
    %cst_16 = arith.constant dense<0.000000e+00> : vector<128xf32>
    %20 = vector.multi_reduction <add>, %19, %cst_16 [0] : vector<256x128xf32> to vector<128xf32>
    %21 = vector.shape_cast %20 : vector<128xf32> to vector<1x128xf32>
    %22 = tpu.concatenate %18, %21 in 0 : vector<1x128xf32>, vector<1x128xf32> -> vector<2x128xf32>
    %23 = vector.shape_cast %22 : vector<2x128xf32> to vector<1x2x128xf32>
    %c0_17 = arith.constant 0 : index
    %c0_18 = arith.constant 0 : index
    %c0_19 = arith.constant 0 : index
    %24 = vector.load %arg8[%c0_17, %c0_18, %c0_19] : memref<1x2x128xf32, #tpu.memory_space<vmem>>, vector<1x2x128xf32>
    tpu.vector_store %arg8[%c0_17, %c0_18, %c0_19], %23 {strides = array<i32>} : memref<1x2x128xf32, #tpu.memory_space<vmem>>, vector<1x2x128xf32>,
    return
  }
  func.func @transform_0(%arg0: i32) -> (i32, i32) {
    %c0_i32 = arith.constant 0 : i32
    %c0_i32_0 = arith.constant 0 : i32
    return %arg0, %c0_i32 : i32, i32
  }
  func.func @transform_1(%arg0: i32) -> (i32, i32) {
    %c0_i32 = arith.constant 0 : i32
    %c0_i32_0 = arith.constant 0 : i32
    %c0_i32_1 = arith.constant 0 : i32
    return %c0_i32, %c0_i32_0 : i32, i32
  }
  func.func @transform_2(%arg0: i32) -> (i32, i32) {
    %c0_i32 = arith.constant 0 : i32
    %c0_i32_0 = arith.constant 0 : i32
    %c0_i32_1 = arith.constant 0 : i32
    return %c0_i32, %c0_i32_0 : i32, i32
  }
  func.func @transform_3(%arg0: i32) -> (i32, i32) {
    %c0_i32 = arith.constant 0 : i32
    %c0_i32_0 = arith.constant 0 : i32
    %c0_i32_1 = arith.constant 0 : i32
    return %c0_i32, %c0_i32_0 : i32, i32
  }
  func.func @transform_4(%arg0: i32) -> (i32, i32) {
    %c0_i32 = arith.constant 0 : i32
    %c0_i32_0 = arith.constant 0 : i32
    %c0_i32_1 = arith.constant 0 : i32
    return %c0_i32, %c0_i32_0 : i32, i32
  }
  func.func @transform_5(%arg0: i32) -> (i32, i32) {
    %c0_i32 = arith.constant 0 : i32
    %c0_i32_0 = arith.constant 0 : i32
    return %arg0, %c0_i32 : i32, i32
  }
  func.func @transform_6(%arg0: i32) -> (i32, i32) {
    %c0_i32 = arith.constant 0 : i32
    %c0_i32_0 = arith.constant 0 : i32
    return %arg0, %c0_i32 : i32, i32
  }
  func.func @transform_7(%arg0: i32) -> (i32, i32, i32) {
    %c0_i32 = arith.constant 0 : i32
    %c0_i32_0 = arith.constant 0 : i32
    %c0_i32_1 = arith.constant 0 : i32
    return %arg0, %c0_i32, %c0_i32_0 : i32, i32, i32
  }
}

module attributes {stable_mosaic.version = 11 : i64} {
  func.func @bn_relu_mm_add_kernel(%arg0: i32, %arg1: memref<256x128xbf16, #tpu.memory_space<vmem>>, %arg2: memref<1x128xf32, #tpu.memory_space<vmem>>, %arg3: memref<1x128xf32, #tpu.memory_space<vmem>>, %arg4: memref<128x128xbf16, #tpu.memory_space<vmem>>, %arg5: memref<256x128xf32, #tpu.memory_space<vmem>>, %arg6: memref<256x128xf32, #tpu.memory_space<vmem>>) attributes {dimension_semantics = [#tpu.dimension_semantics<parallel>], iteration_bounds = array<i64: 2>, scalar_prefetch = 0 : i64, scratch_operands = 0 : i64, tpu.core_type = #tpu.core_type<tc>, window_params = [{transform_indices = @transform_0, window_bounds = array<i64: 256, 128>}, {pipeline_mode = #tpu.pipeline_mode<synchronous>, transform_indices = @transform_1, window_bounds = array<i64: 1, 128>}, {pipeline_mode = #tpu.pipeline_mode<synchronous>, transform_indices = @transform_2, window_bounds = array<i64: 1, 128>}, {pipeline_mode = #tpu.pipeline_mode<synchronous>, transform_indices = @transform_3, window_bounds = array<i64: 128, 128>}, {transform_indices = @transform_4, window_bounds = array<i64: 256, 128>}, {transform_indices = @transform_5, window_bounds = array<i64: 256, 128>}]} {
    %c0 = arith.constant 0 : index
    %c0_0 = arith.constant 0 : index
    %0 = vector.load %arg1[%c0, %c0_0] : memref<256x128xbf16, #tpu.memory_space<vmem>>, vector<256x128xbf16>
    %c0_1 = arith.constant 0 : index
    %c0_2 = arith.constant 0 : index
    %1 = vector.load %arg2[%c0_1, %c0_2] : memref<1x128xf32, #tpu.memory_space<vmem>>, vector<1x128xf32>
    %c0_3 = arith.constant 0 : index
    %c0_4 = arith.constant 0 : index
    %2 = vector.load %arg3[%c0_3, %c0_4] : memref<1x128xf32, #tpu.memory_space<vmem>>, vector<1x128xf32>
    %3 = arith.extf %0 : vector<256x128xbf16> to vector<256x128xf32>
    %4 = vector.broadcast %1 : vector<1x128xf32> to vector<256x128xf32>
    %5 = arith.subf %3, %4 : vector<256x128xf32>
    %6 = vector.broadcast %2 : vector<1x128xf32> to vector<256x128xf32>
    %7 = arith.mulf %5, %6 : vector<256x128xf32>
    %cst = arith.constant 0.000000e+00 : f32
    %8 = vector.broadcast %cst : f32 to vector<256x128xf32>
    %9 = arith.maximumf %7, %8 : vector<256x128xf32>
    %10 = arith.truncf %9 : vector<256x128xf32> to vector<256x128xbf16>
    %c0_5 = arith.constant 0 : index
    %c0_6 = arith.constant 0 : index
    %11 = vector.load %arg4[%c0_5, %c0_6] : memref<128x128xbf16, #tpu.memory_space<vmem>>, vector<128x128xbf16>
    %cst_7 = arith.constant dense<0.000000e+00> : vector<256x128xf32>
    %12 = tpu.matmul %10, %11, %cst_7 {dimension_numbers = #tpu.dot_dimension_numbers<[1], [0], [0], [1], [0, 0, 1, 1], [], []>} : vector<256x128xbf16>, vector<128x128xbf16>, vector<256x128xf32> -> vector<256x128xf32>
    %c0_8 = arith.constant 0 : index
    %c0_9 = arith.constant 0 : index
    %13 = vector.load %arg5[%c0_8, %c0_9] : memref<256x128xf32, #tpu.memory_space<vmem>>, vector<256x128xf32>
    %14 = arith.addf %12, %13 : vector<256x128xf32>
    %c0_10 = arith.constant 0 : index
    %c0_11 = arith.constant 0 : index
    %15 = vector.load %arg6[%c0_10, %c0_11] : memref<256x128xf32, #tpu.memory_space<vmem>>, vector<256x128xf32>
    tpu.vector_store %arg6[%c0_10, %c0_11], %14 {strides = array<i32>} : memref<256x128xf32, #tpu.memory_space<vmem>>, vector<256x128xf32>,
    return
  }
  func.func @transform_0(%arg0: i32) -> (i32, i32) {
    %c0_i32 = arith.constant 0 : i32
    %c0_i32_0 = arith.constant 0 : i32
    return %arg0, %c0_i32 : i32, i32
  }
  func.func @transform_1(%arg0: i32) -> (i32, i32) {
    %c0_i32 = arith.constant 0 : i32
    %c0_i32_0 = arith.constant 0 : i32
    %c0_i32_1 = arith.constant 0 : i32
    return %c0_i32, %c0_i32_0 : i32, i32
  }
  func.func @transform_2(%arg0: i32) -> (i32, i32) {
    %c0_i32 = arith.constant 0 : i32
    %c0_i32_0 = arith.constant 0 : i32
    %c0_i32_1 = arith.constant 0 : i32
    return %c0_i32, %c0_i32_0 : i32, i32
  }
  func.func @transform_3(%arg0: i32) -> (i32, i32) {
    %c0_i32 = arith.constant 0 : i32
    %c0_i32_0 = arith.constant 0 : i32
    %c0_i32_1 = arith.constant 0 : i32
    return %c0_i32, %c0_i32_0 : i32, i32
  }
  func.func @transform_4(%arg0: i32) -> (i32, i32) {
    %c0_i32 = arith.constant 0 : i32
    %c0_i32_0 = arith.constant 0 : i32
    return %arg0, %c0_i32 : i32, i32
  }
  func.func @transform_5(%arg0: i32) -> (i32, i32) {
    %c0_i32 = arith.constant 0 : i32
    %c0_i32_0 = arith.constant 0 : i32
    return %arg0, %c0_i32 : i32, i32
  }
}

module attributes {stable_mosaic.version = 11 : i64} {
  func.func @bn_relu_conv3x3_stats_kernel(%arg0: i32, %arg1: memref<1x18x18x128xbf16, #tpu.memory_space<vmem>>, %arg2: memref<1x128xf32, #tpu.memory_space<vmem>>, %arg3: memref<1x128xf32, #tpu.memory_space<vmem>>, %arg4: memref<1152x128xbf16, #tpu.memory_space<vmem>>, %arg5: memref<1x16x16x128xbf16, #tpu.memory_space<vmem>>, %arg6: memref<1x2x128xf32, #tpu.memory_space<vmem>>) attributes {dimension_semantics = [#tpu.dimension_semantics<parallel>], iteration_bounds = array<i64: 2>, scalar_prefetch = 0 : i64, scratch_operands = 0 : i64, tpu.core_type = #tpu.core_type<tc>, window_params = [{transform_indices = @transform_0, window_bounds = array<i64: 1, 18, 18, 128>}, {pipeline_mode = #tpu.pipeline_mode<synchronous>, transform_indices = @transform_1, window_bounds = array<i64: 1, 128>}, {pipeline_mode = #tpu.pipeline_mode<synchronous>, transform_indices = @transform_2, window_bounds = array<i64: 1, 128>}, {pipeline_mode = #tpu.pipeline_mode<synchronous>, transform_indices = @transform_3, window_bounds = array<i64: 1152, 128>}, {transform_indices = @transform_4, window_bounds = array<i64: 1, 16, 16, 128>}, {transform_indices = @transform_5, window_bounds = array<i64: 1, 2, 128>}]} {
    %c0 = arith.constant 0 : index
    %c0_0 = arith.constant 0 : index
    %0 = vector.load %arg2[%c0, %c0_0] : memref<1x128xf32, #tpu.memory_space<vmem>>, vector<1x128xf32>
    %1 = vector.shape_cast %0 : vector<1x128xf32> to vector<1x1x128xf32>
    %c0_1 = arith.constant 0 : index
    %c0_2 = arith.constant 0 : index
    %2 = vector.load %arg3[%c0_1, %c0_2] : memref<1x128xf32, #tpu.memory_space<vmem>>, vector<1x128xf32>
    %3 = vector.shape_cast %2 : vector<1x128xf32> to vector<1x1x128xf32>
    %c0_3 = arith.constant 0 : index
    %c0_4 = arith.constant 0 : index
    %c0_5 = arith.constant 0 : index
    %c0_6 = arith.constant 0 : index
    %4 = vector.load %arg1[%c0_3, %c0_4, %c0_5, %c0_6] : memref<1x18x18x128xbf16, #tpu.memory_space<vmem>>, vector<1x18x18x128xbf16>
    %5 = vector.shape_cast %4 : vector<1x18x18x128xbf16> to vector<18x18x128xbf16>
    %6 = arith.extf %5 : vector<18x18x128xbf16> to vector<18x18x128xf32>
    %7 = vector.broadcast %1 : vector<1x1x128xf32> to vector<18x18x128xf32>
    %8 = arith.subf %6, %7 : vector<18x18x128xf32>
    %9 = vector.broadcast %3 : vector<1x1x128xf32> to vector<18x18x128xf32>
    %10 = arith.mulf %8, %9 : vector<18x18x128xf32>
    %cst = arith.constant 0.000000e+00 : f32
    %11 = vector.broadcast %cst : f32 to vector<18x18x128xf32>
    %12 = arith.maximumf %10, %11 : vector<18x18x128xf32>
    %13 = arith.truncf %12 : vector<18x18x128xf32> to vector<18x18x128xbf16>
    %14 = vector.extract_strided_slice %13 {offsets = [0, 0, 0], sizes = [16, 16, 128], strides = [1, 1, 1]} : vector<18x18x128xbf16> to vector<16x16x128xbf16>
    %15 = vector.shape_cast %14 : vector<16x16x128xbf16> to vector<256x128xbf16>
    %16 = vector.extract_strided_slice %13 {offsets = [0, 1, 0], sizes = [16, 16, 128], strides = [1, 1, 1]} : vector<18x18x128xbf16> to vector<16x16x128xbf16>
    %17 = vector.shape_cast %16 : vector<16x16x128xbf16> to vector<256x128xbf16>
    %18 = vector.extract_strided_slice %13 {offsets = [0, 2, 0], sizes = [16, 16, 128], strides = [1, 1, 1]} : vector<18x18x128xbf16> to vector<16x16x128xbf16>
    %19 = vector.shape_cast %18 : vector<16x16x128xbf16> to vector<256x128xbf16>
    %20 = vector.extract_strided_slice %13 {offsets = [1, 0, 0], sizes = [16, 16, 128], strides = [1, 1, 1]} : vector<18x18x128xbf16> to vector<16x16x128xbf16>
    %21 = vector.shape_cast %20 : vector<16x16x128xbf16> to vector<256x128xbf16>
    %22 = vector.extract_strided_slice %13 {offsets = [1, 1, 0], sizes = [16, 16, 128], strides = [1, 1, 1]} : vector<18x18x128xbf16> to vector<16x16x128xbf16>
    %23 = vector.shape_cast %22 : vector<16x16x128xbf16> to vector<256x128xbf16>
    %24 = vector.extract_strided_slice %13 {offsets = [1, 2, 0], sizes = [16, 16, 128], strides = [1, 1, 1]} : vector<18x18x128xbf16> to vector<16x16x128xbf16>
    %25 = vector.shape_cast %24 : vector<16x16x128xbf16> to vector<256x128xbf16>
    %26 = vector.extract_strided_slice %13 {offsets = [2, 0, 0], sizes = [16, 16, 128], strides = [1, 1, 1]} : vector<18x18x128xbf16> to vector<16x16x128xbf16>
    %27 = vector.shape_cast %26 : vector<16x16x128xbf16> to vector<256x128xbf16>
    %28 = vector.extract_strided_slice %13 {offsets = [2, 1, 0], sizes = [16, 16, 128], strides = [1, 1, 1]} : vector<18x18x128xbf16> to vector<16x16x128xbf16>
    %29 = vector.shape_cast %28 : vector<16x16x128xbf16> to vector<256x128xbf16>
    %30 = vector.extract_strided_slice %13 {offsets = [2, 2, 0], sizes = [16, 16, 128], strides = [1, 1, 1]} : vector<18x18x128xbf16> to vector<16x16x128xbf16>
    %31 = vector.shape_cast %30 : vector<16x16x128xbf16> to vector<256x128xbf16>
    %32 = tpu.concatenate %15, %17, %19, %21, %23, %25, %27, %29, %31 in 1 : vector<256x128xbf16>, vector<256x128xbf16>, vector<256x128xbf16>, vector<256x128xbf16>, vector<256x128xbf16>, vector<256x128xbf16>, vector<256x128xbf16>, vector<256x128xbf16>, vector<256x128xbf16> -> vector<256x1152xbf16>
    %c0_7 = arith.constant 0 : index
    %c0_8 = arith.constant 0 : index
    %33 = vector.load %arg4[%c0_7, %c0_8] : memref<1152x128xbf16, #tpu.memory_space<vmem>>, vector<1152x128xbf16>
    %cst_9 = arith.constant dense<0.000000e+00> : vector<256x128xf32>
    %34 = tpu.matmul %32, %33, %cst_9 {dimension_numbers = #tpu.dot_dimension_numbers<[1], [0], [0], [1], [0, 0, 1, 1], [], []>} : vector<256x1152xbf16>, vector<1152x128xbf16>, vector<256x128xf32> -> vector<256x128xf32>
    %35 = vector.shape_cast %34 : vector<256x128xf32> to vector<1x16x16x128xf32>
    %36 = arith.truncf %35 : vector<1x16x16x128xf32> to vector<1x16x16x128xbf16>
    %c0_10 = arith.constant 0 : index
    %c0_11 = arith.constant 0 : index
    %c0_12 = arith.constant 0 : index
    %c0_13 = arith.constant 0 : index
    %37 = vector.load %arg5[%c0_10, %c0_11, %c0_12, %c0_13] : memref<1x16x16x128xbf16, #tpu.memory_space<vmem>>, vector<1x16x16x128xbf16>
    tpu.vector_store %arg5[%c0_10, %c0_11, %c0_12, %c0_13], %36 {strides = array<i32>} : memref<1x16x16x128xbf16, #tpu.memory_space<vmem>>, vector<1x16x16x128xbf16>,
    %cst_14 = arith.constant dense<0.000000e+00> : vector<128xf32>
    %38 = vector.multi_reduction <add>, %34, %cst_14 [0] : vector<256x128xf32> to vector<128xf32>
    %39 = vector.shape_cast %38 : vector<128xf32> to vector<1x128xf32>
    %40 = arith.mulf %34, %34 : vector<256x128xf32>
    %cst_15 = arith.constant dense<0.000000e+00> : vector<128xf32>
    %41 = vector.multi_reduction <add>, %40, %cst_15 [0] : vector<256x128xf32> to vector<128xf32>
    %42 = vector.shape_cast %41 : vector<128xf32> to vector<1x128xf32>
    %43 = tpu.concatenate %39, %42 in 0 : vector<1x128xf32>, vector<1x128xf32> -> vector<2x128xf32>
    %44 = vector.shape_cast %43 : vector<2x128xf32> to vector<1x2x128xf32>
    %c0_16 = arith.constant 0 : index
    %c0_17 = arith.constant 0 : index
    %c0_18 = arith.constant 0 : index
    %45 = vector.load %arg6[%c0_16, %c0_17, %c0_18] : memref<1x2x128xf32, #tpu.memory_space<vmem>>, vector<1x2x128xf32>
    tpu.vector_store %arg6[%c0_16, %c0_17, %c0_18], %44 {strides = array<i32>} : memref<1x2x128xf32, #tpu.memory_space<vmem>>, vector<1x2x128xf32>,
    return
  }
  func.func @transform_0(%arg0: i32) -> (i32, i32, i32, i32) {
    %c0_i32 = arith.constant 0 : i32
    %c0_i32_0 = arith.constant 0 : i32
    %c0_i32_1 = arith.constant 0 : i32
    %c0_i32_2 = arith.constant 0 : i32
    return %arg0, %c0_i32, %c0_i32_0, %c0_i32_1 : i32, i32, i32, i32
  }
  func.func @transform_1(%arg0: i32) -> (i32, i32) {
    %c0_i32 = arith.constant 0 : i32
    %c0_i32_0 = arith.constant 0 : i32
    %c0_i32_1 = arith.constant 0 : i32
    return %c0_i32, %c0_i32_0 : i32, i32
  }
  func.func @transform_2(%arg0: i32) -> (i32, i32) {
    %c0_i32 = arith.constant 0 : i32
    %c0_i32_0 = arith.constant 0 : i32
    %c0_i32_1 = arith.constant 0 : i32
    return %c0_i32, %c0_i32_0 : i32, i32
  }
  func.func @transform_3(%arg0: i32) -> (i32, i32) {
    %c0_i32 = arith.constant 0 : i32
    %c0_i32_0 = arith.constant 0 : i32
    %c0_i32_1 = arith.constant 0 : i32
    return %c0_i32, %c0_i32_0 : i32, i32
  }
  func.func @transform_4(%arg0: i32) -> (i32, i32, i32, i32) {
    %c0_i32 = arith.constant 0 : i32
    %c0_i32_0 = arith.constant 0 : i32
    %c0_i32_1 = arith.constant 0 : i32
    %c0_i32_2 = arith.constant 0 : i32
    return %arg0, %c0_i32, %c0_i32_0, %c0_i32_1 : i32, i32, i32, i32
  }
  func.func @transform_5(%arg0: i32) -> (i32, i32, i32) {
    %c0_i32 = arith.constant 0 : i32
    %c0_i32_0 = arith.constant 0 : i32
    %c0_i32_1 = arith.constant 0 : i32
    return %arg0, %c0_i32, %c0_i32_0 : i32, i32, i32
  }
}

</mosaic_0001>

<bundles_post_ra>
// kernel: preact_bottleneck_forward.4
= control target key start
LH: loop header
LB: loop body
LE: loop exit
PB: predicated region body
PF: predicated region fallthrough
CT: control target
= control target key end

     0   :  { %s347_s6 = smov 0   ;;  %s403_s0 = inlined_call_operand.vmem [shape: f32[512,128], index: 0, kind: input, shape index: {}]   ;;  %s404_s1 = inlined_call_operand.vmem [shape: f32[2,2,128], index: 1, kind: output, shape index: {}]  }
   0x1 LB: > { %s353_s7 = sadd.s32 4294967295, %s335_s6   ;;  %p315_p0 = scmp.ge.s32.totalorder %s335_s6, 1  ;;  %s335_s6 = sphi %s347_s6, %s11_s6  }
   0x2   : > { %p88_p1 = scmp.lt.s32.totalorder %s335_s6, 3 }
   0x4   : > { %p89_p2 = pnand %p315_p0, %p88_p1 }
   0x5   : > { %s316_s8 = sshll.u32 (!%p89_p2), %s353_s7, 5  ;;  %p113_p4 = scmp.lt.s32.totalorder (!%p89_p2), %s353_s7, 1  ;;  %vm255_vm0 = vcmask (!%p89_p2), 1040384  }
   0x6   : > { %92 = sbr.rel (%p89_p2) target bundleno = 95 (0x5f), region = 24  ;;  %p108_p3 = scmp.lt.s32.totalorder (!%p89_p2), %s316_s8, 63 }
   0xd   : > { %s406_s8 = smov (!%p108_p3, %s316_s8), 63  ;;  %s408_s7 = smov (!%p113_p4, %s353_s7), 1 }
   0xe   : > { %s317_s9 = sshll.u32 %s406_s8, 3  ;;  %s318_s13 = sshll.u32 %s408_s7, 1 }
   0xf   : > { %s361_s12 = scalar_lea.vmem %s403_s0, %s317_s9  ;;  %s116_s16 = scalar_lea.vmem %s404_s1, %s318_s13 }
  0x10   : > { %v117_v0 = vld [vmem:[%s361_s12] sm:$0xff]  ;;  %v118_v1 = vld [vmem:[%s361_s12 + $0x8] sm:$0xff]  ;;  %v119_v2 = vld [vmem:[%s361_s12 + $0x10] sm:$0xff] }
  0x11   : > { %v120_v3 = vld [vmem:[%s361_s12 + $0x18] sm:$0xff]  ;;  %v149_v4 = vadd.f32 %v118_v1, %v117_v0  ;;  %v186_v5 = vmul.f32 %v117_v0, %v117_v0  ;;  %v187_v6 = vmul.f32 %v118_v1, %v118_v1  ;;  %v188_v7 = vmul.f32 %v119_v2, %v119_v2  ;;  %v121_v8 = vld [vmem:[%s361_s12 + $0x20] sm:$0xff]  ;;  %v122_v12 = vld [vmem:[%s361_s12 + $0x28] sm:$0xff] }
  0x12   : > { %v189_v10 = vmul.f32 %v120_v3, %v120_v3  ;;  %v190_v14 = vmul.f32 %v121_v8, %v121_v8  ;;  %v123_v16 = vld [vmem:[%s361_s12 + $0x30] sm:$0xff]  ;;  %v191_v18 = vmul.f32 %v122_v12, %v122_v12  ;;  %v124_v20 = vld [vmem:[%s361_s12 + $0x38] sm:$0xff]  ;;  %v125_v24 = vld [vmem:[%s361_s12 + $0x40] sm:$0xff] }
  0x13   : > { %v150_v9 = vadd.f32 %v149_v4, %v119_v2  ;;  %v218_v11 = vadd.f32 %v187_v6, %v186_v5  ;;  %v192_v22 = vmul.f32 %v123_v16, %v123_v16  ;;  %v193_v26 = vmul.f32 %v124_v20, %v124_v20  ;;  %v126_v28 = vld [vmem:[%s361_s12 + $0x48] sm:$0xff]  ;;  %v127_v32 = vld [vmem:[%s361_s12 + $0x50] sm:$0xff]  ;;  %v128_v36 = vld [vmem:[%s361_s12 + $0x58] sm:$0xff] }
  0x14   : > { %v194_v30 = vmul.f32 %v125_v24, %v125_v24  ;;  %v195_v34 = vmul.f32 %v126_v28, %v126_v28  ;;  %v196_v38 = vmul.f32 %v127_v32, %v127_v32  ;;  %v129_v40 = vld [vmem:[%s361_s12 + $0x60] sm:$0xff]  ;;  %v197_v42 = vmul.f32 %v128_v36, %v128_v36  ;;  %v130_v44 = vld [vmem:[%s361_s12 + $0x68] sm:$0xff]  ;;  %v131_v48 = vld [vmem:[%s361_s12 + $0x70] sm:$0xff] }
  0x15   : > { %v151_v13 = vadd.f32 %v150_v9, %v120_v3  ;;  %v219_v15 = vadd.f32 %v218_v11, %v188_v7  ;;  %v198_v46 = vmul.f32 %v129_v40, %v129_v40  ;;  %v199_v50 = vmul.f32 %v130_v44, %v130_v44  ;;  %v132_v52 = vld [vmem:[%s361_s12 + $0x78] sm:$0xff]  ;;  %v133_v56 = vld [vmem:[%s361_s12 + $0x80] sm:$0xff]  ;;  %v134_v60 = vld [vmem:[%s361_s12 + $0x88] sm:$0xff] }
  0x16   : > { %v200_v54 = vmul.f32 %v131_v48, %v131_v48  ;;  %v201_v58 = vmul.f32 %v132_v52, %v132_v52  ;;  %v202_v62 = vmul.f32 %v133_v56, %v133_v56  ;;  %v135_v0 = vld [vmem:[%s361_s12 + $0x90] sm:$0xff]  ;;  %v203_v2 = vmul.f32 %v134_v60, %v134_v60  ;;  %v136_v4 = vld [vmem:[%s361_s12 + $0x98] sm:$0xff] }
  0x17   : > { %v152_v17 = vadd.f32 %v151_v13, %v121_v8  ;;  %v220_v19 = vadd.f32 %v219_v15, %v189_v10  ;;  %v204_v6 = vmul.f32 %v135_v0, %v135_v0  ;;  %v137_v8 = vld [vmem:[%s361_s12 + $0xa0] sm:$0xff]  ;;  %v205_v10 = vmul.f32 %v136_v4, %v136_v4 }
  0x19   : > { %v153_v21 = vadd.f32 %v152_v17, %v122_v12  ;;  %v221_v23 = vadd.f32 %v220_v19, %v190_v14  ;;  %v138_v12 = vld [vmem:[%s361_s12 + $0xa8] sm:$0xff]  ;;  %v206_v14 = vmul.f32 %v137_v8, %v137_v8 }
  0x1b   : > { %v154_v25 = vadd.f32 %v153_v21, %v123_v16  ;;  %v222_v27 = vadd.f32 %v221_v23, %v191_v18  ;;  %v139_v16 = vld [vmem:[%s361_s12 + $0xb0] sm:$0xff]  ;;  %v207_v18 = vmul.f32 %v138_v12, %v138_v12 }
  0x1d   : > { %v155_v29 = vadd.f32 %v154_v25, %v124_v20  ;;  %v223_v31 = vadd.f32 %v222_v27, %v192_v22  ;;  %v140_v20 = vld [vmem:[%s361_s12 + $0xb8] sm:$0xff]  ;;  %v208_v22 = vmul.f32 %v139_v16, %v139_v16 }
  0x1f   : > { %v156_v33 = vadd.f32 %v155_v29, %v125_v24  ;;  %v224_v35 = vadd.f32 %v223_v31, %v193_v26  ;;  %v141_v24 = vld [vmem:[%s361_s12 + $0xc0] sm:$0xff]  ;;  %v209_v26 = vmul.f32 %v140_v20, %v140_v20 }
  0x21   : > { %v157_v37 = vadd.f32 %v156_v33, %v126_v28  ;;  %v225_v39 = vadd.f32 %v224_v35, %v194_v30  ;;  %v142_v28 = vld [vmem:[%s361_s12 + $0xc8] sm:$0xff]  ;;  %v210_v30 = vmul.f32 %v141_v24, %v141_v24 }
  0x23   : > { %v158_v41 = vadd.f32 %v157_v37, %v127_v32  ;;  %v226_v43 = vadd.f32 %v225_v39, %v195_v34  ;;  %v143_v32 = vld [vmem:[%s361_s12 + $0xd0] sm:$0xff]  ;;  %v211_v34 = vmul.f32 %v142_v28, %v142_v28 }
  0x25   : > { %v159_v45 = vadd.f32 %v158_v41, %v128_v36  ;;  %v227_v47 = vadd.f32 %v226_v43, %v196_v38  ;;  %v144_v36 = vld [vmem:[%s361_s12 + $0xd8] sm:$0xff]  ;;  %v212_v38 = vmul.f32 %v143_v32, %v143_v32 }
  0x27   : > { %v160_v49 = vadd.f32 %v159_v45, %v129_v40  ;;  %v228_v51 = vadd.f32 %v227_v47, %v197_v42  ;;  %v145_v40 = vld [vmem:[%s361_s12 + $0xe0] sm:$0xff]  ;;  %v213_v42 = vmul.f32 %v144_v36, %v144_v36 }
  0x29   : > { %v161_v53 = vadd.f32 %v160_v49, %v130_v44  ;;  %v229_v55 = vadd.f32 %v228_v51, %v198_v46  ;;  %v146_v44 = vld [vmem:[%s361_s12 + $0xe8] sm:$0xff]  ;;  %v214_v46 = vmul.f32 %v145_v40, %v145_v40 }
  0x2b   : > { %v162_v57 = vadd.f32 %v161_v53, %v131_v48  ;;  %v230_v59 = vadd.f32 %v229_v55, %v199_v50  ;;  %v147_v48 = vld [vmem:[%s361_s12 + $0xf0] sm:$0xff]  ;;  %v215_v50 = vmul.f32 %v146_v44, %v146_v44 }
  0x2d   : > { %v163_v61 = vadd.f32 %v162_v57, %v132_v52  ;;  %v231_v63 = vadd.f32 %v230_v59, %v200_v54  ;;  %v148_v52 = vld [vmem:[%s361_s12 + $0xf8] sm:$0xff]  ;;  %v216_v54 = vmul.f32 %v147_v48, %v147_v48 }
  0x2e   : > { %v217_v57 = vmul.f32 %v148_v52, %v148_v52 }
  0x2f   : > { %v164_v1 = vadd.f32 %v163_v61, %v133_v56  ;;  %v232_v3 = vadd.f32 %v231_v63, %v201_v58 }
  0x31   : > { %v165_v5 = vadd.f32 %v164_v1, %v134_v60  ;;  %v233_v7 = vadd.f32 %v232_v3, %v202_v62 }
  0x33   : > { %v166_v9 = vadd.f32 %v165_v5, %v135_v0  ;;  %v234_v11 = vadd.f32 %v233_v7, %v203_v2 }
  0x35   : > { %v167_v13 = vadd.f32 %v166_v9, %v136_v4  ;;  %v235_v15 = vadd.f32 %v234_v11, %v204_v6 }
  0x37   : > { %v168_v17 = vadd.f32 %v167_v13, %v137_v8  ;;  %v236_v19 = vadd.f32 %v235_v15, %v205_v10 }
  0x39   : > { %v169_v21 = vadd.f32 %v168_v17, %v138_v12  ;;  %v237_v23 = vadd.f32 %v236_v19, %v206_v14 }
  0x3b   : > { %v170_v25 = vadd.f32 %v169_v21, %v139_v16  ;;  %v238_v27 = vadd.f32 %v237_v23, %v207_v18 }
  0x3d   : > { %v171_v29 = vadd.f32 %v170_v25, %v140_v20  ;;  %v239_v31 = vadd.f32 %v238_v27, %v208_v22 }
  0x3f   : > { %v172_v33 = vadd.f32 %v171_v29, %v141_v24  ;;  %v240_v35 = vadd.f32 %v239_v31, %v209_v26 }
  0x41   : > { %v173_v37 = vadd.f32 %v172_v33, %v142_v28  ;;  %v241_v39 = vadd.f32 %v240_v35, %v210_v30 }
  0x43   : > { %v174_v41 = vadd.f32 %v173_v37, %v143_v32  ;;  %v242_v43 = vadd.f32 %v241_v39, %v211_v34 }
  0x45   : > { %v175_v45 = vadd.f32 %v174_v41, %v144_v36  ;;  %v243_v47 = vadd.f32 %v242_v43, %v212_v38 }
  0x47   : > { %v176_v49 = vadd.f32 %v175_v45, %v145_v40  ;;  %v244_v51 = vadd.f32 %v243_v47, %v213_v42 }
  0x49   : > { %v177_v53 = vadd.f32 %v176_v49, %v146_v44  ;;  %v245_v55 = vadd.f32 %v244_v51, %v214_v46 }
  0x4b   : > { %v178_v56 = vadd.f32 %v177_v53, %v147_v48  ;;  %v246_v58 = vadd.f32 %v245_v55, %v215_v50 }
  0x4d   : > { %v179_v59 = vadd.f32 %v178_v56, %v148_v52  ;;  %v247_v60 = vadd.f32 %v246_v58, %v216_v54 }
  0x4f   : > { %v180_v61 = vrot.slane %v179_v59, 4  ;;  %v248_v62 = vadd.f32 %v247_v60, %v217_v57 }
  0x51   : > { %v181_v63 = vadd.f32 %v180_v61, %v179_v59  ;;  %v249_v0 = vrot.slane %v248_v62, 4 }
  0x53   : > { %v182_v1 = vrot.slane %v181_v63, 2  ;;  %v250_v2 = vadd.f32 %v249_v0, %v248_v62 }
  0x55   : > { %v183_v3 = vadd.f32 %v182_v1, %v181_v63  ;;  %v251_v4 = vrot.slane %v250_v2, 2 }
  0x57   : > { %v184_v5 = vrot.slane %v183_v3, 1  ;;  %v252_v6 = vadd.f32 %v251_v4, %v250_v2 }
  0x59   : > { %v185_v7 = vadd.f32 %v184_v5, %v183_v3  ;;  %v253_v8 = vrot.slane %v252_v6, 1 }
  0x5b   : > { %v254_v9 = vadd.f32 %v253_v8, %v252_v6 }
  0x5d   : > { %v256_v10 = vsel %vm255_vm0, %v185_v7, %v254_v9 }
  0x5e   : > { %257 = vst [vmem:[%s116_s16] sm:$0x3] %v256_v10 }
  0x5f PF: > { %s11_s6 = sadd.s32 1, %s335_s6  }
  0x60   : > { %p8_p5 = scmp.ge.s32.totalorder %s11_s6, 4  }
  0x62   :  { %10 = sbr.rel (!%p8_p5) target bundleno = 1 (0x1), region = 54 }

// kernel: preact_bottleneck_forward.5
= control target key start
LH: loop header
LB: loop body
LE: loop exit
PB: predicated region body
PF: predicated region fallthrough
CT: control target
= control target key end

     0   :  { %s1744_s24 = smov 0   ;;  %s1992_s0 = inlined_call_operand.vmem [shape: f32[512,128], index: 0, kind: input, shape index: {}]   ;;  %s1993_s1 = inlined_call_operand.vmem [shape: f32[1,128], index: 1, kind: input, shape index: {}]   ;;  %s1994_s2 = inlined_call_operand.vmem [shape: f32[1,128], index: 2, kind: input, shape index: {}]   ;;  %s1995_s3 = inlined_call_operand.vmem [shape: bf16[128,128], index: 3, kind: input, shape index: {}]   ;;  %s1996_s4 = inlined_call_operand.vmem [shape: bf16[128,128], index: 4, kind: input, shape index: {}]   ;;  %s1997_s5 = inlined_call_operand.vmem [shape: bf16[512,128], index: 5, kind: output, shape index: {0}]   ;;  %s1998_s6 = inlined_call_operand.vmem [shape: f32[512,128], index: 6, kind: output, shape index: {1}]   ;;  %s1999_s7 = inlined_call_operand.vmem [shape: f32[2,2,128], index: 7, kind: output, shape index: {2}]  }
   0x1 LB: > { %s1750_s25 = sadd.s32 4294967295, %s1702_s24   ;;  %p1341_p0 = scmp.ge.s32.totalorder %s1702_s24, 1  ;;  %s1702_s24 = sphi %s1744_s24, %s18_s24  }
   0x2   : > { %p243_p1 = scmp.lt.s32.totalorder %s1702_s24, 3 }
   0x4   : > { %p244_p2 = pnand %p1341_p0, %p243_p1 }
   0x5   : > { %v1680_v0 = vld [vmem:[%s1995_s3] sm:$0xff] (!%p244_p2)   ;;  %s1342_s28 = sshll.u32 (!%p244_p2), %s1750_s25, 5  ;;  %v1681_v1 = vld [vmem:[%s1995_s3 + $0x8] sm:$0xff] (!%p244_p2)   ;;  %v1682_v2 = vld [vmem:[%s1995_s3 + $0x10] sm:$0xff] (!%p244_p2)   ;;  %p302_p4 = scmp.lt.s32.totalorder (!%p244_p2), %s1750_s25, 1  ;;  %vm1213_vm0 = vcmask (!%p244_p2), 1040384  }
   0x6   : > { %247 = sbr.rel (%p244_p2) target bundleno = 331 (0x14b), region = 40  ;;  %p285_p3 = scmp.lt.s32.totalorder (!%p244_p2), %s1342_s28, 63  ;;  %1576 = vmatprep.subr.bf16.mxu0 (!%p244_p2), %v1680_v0  ;;  %v1685_v3 = vld [vmem:[%s1996_s4] sm:$0xff] (!%p244_p2)   ;;  %v1687_v4 = vld [vmem:[%s1996_s4 + $0x8] sm:$0xff] (!%p244_p2)   ;;  %v1683_v5 = vld [vmem:[%s1995_s3 + $0x18] sm:$0xff] (!%p244_p2)  }
   0x7   : > { %1577 = vmatpush3.bf16.msra.mxu0 (!%p244_p2), %v1680_v0  ;;  %1624 = vmatprep.subr.bf16.mxu1 (!%p244_p2), %v1685_v3  ;;  %v1689_v6 = vld [vmem:[%s1996_s4 + $0x10] sm:$0xff] (!%p244_p2)   ;;  %v1684_v7 = vld [vmem:[%s1995_s3 + $0x20] sm:$0xff] (!%p244_p2)   ;;  %v1691_v11 = vld [vmem:[%s1996_s4 + $0x18] sm:$0xff] (!%p244_p2)  }
   0x8   : > { %1578 = vmatprep.subr.bf16.mxu0 (!%p244_p2), %v1681_v1  ;;  %1625 = vmatpush3.bf16.msra.mxu1 (!%p244_p2), %v1685_v3  ;;  %v1794_v10 = vld [vmem:[%s1993_s1] ss:$0 sm:$0xff] (!%p244_p2)  ;;  %v1686_v19 = vld [vmem:[%s1995_s3 + $0x28] sm:$0xff] (!%p244_p2)   ;;  %v1688_v30 = vld [vmem:[%s1995_s3 + $0x30] sm:$0xff] (!%p244_p2)  }
   0x9   : > { %1626 = vmatprep.subr.bf16.mxu1 (!%p244_p2), %v1687_v4  ;;  %v1802_v12 = vld [vmem:[%s1994_s2] ss:$0 sm:$0xff] (!%p244_p2)  ;;  %v1693_v31 = vld [vmem:[%s1996_s4 + $0x28] sm:$0xff] (!%p244_p2)   ;;  %v1690_v38 = vld [vmem:[%s1995_s3 + $0x38] sm:$0xff] (!%p244_p2)  }
   0xa   : > { %v1692_v24 = vld [vmem:[%s1996_s4 + $0x20] sm:$0xff] (!%p244_p2)   ;;  %v1694_v41 = vld [vmem:[%s1996_s4 + $0x30] sm:$0xff] (!%p244_p2)   ;;  %v1695_v50 = vld [vmem:[%s1996_s4 + $0x38] sm:$0xff] (!%p244_p2)  }
   0xb   : > { %1579 = vmatpush3.bf16.msra.mxu0 (!%p244_p2), %v1681_v1 }
   0xc   : > { %1580 = vmatprep.subr.bf16.mxu0 (!%p244_p2), %v1682_v2  ;;  %1627 = vmatpush3.bf16.msra.mxu1 (!%p244_p2), %v1687_v4 }
   0xd   : > { %s2001_s28 = smov (!%p285_p3, %s1342_s28), 63  ;;  %1628 = vmatprep.subr.bf16.mxu1 %v1689_v6  ;;  %s2003_s25 = smov (!%p302_p4, %s1750_s25), 1 }
   0xe   : > { %s1343_s12 = sshll.u32 %s2001_s28, 3 }
   0xf   : > { %s1784_s21 = scalar_lea.vmem %s1992_s0, %s1343_s12  ;;  %1581 = vmatpush3.bf16.msra.mxu0 %v1682_v2  ;;  %s1934_s11 = scalar_lea.vmem %s1998_s6, %s1343_s12 }
  0x10   : > { %1582 = vmatprep.subr.bf16.mxu0 %v1683_v5  ;;  %v307_v8 = vld [vmem:[%s1784_s21] sm:$0xff]  ;;  %v308_v9 = vld [vmem:[%s1784_s21 + $0x8] sm:$0xff]  ;;  %v309_v15 = vld [vmem:[%s1784_s21 + $0x10] sm:$0xff]  ;;  %1629 = vmatpush3.bf16.msra.mxu1 %v1689_v6 }
  0x11   : > { %v347_v13 = vsub.f32 %v307_v8, %v1794_v10  ;;  %v348_v14 = vsub.f32 %v308_v9, %v1794_v10  ;;  %v310_v18 = vld [vmem:[%s1784_s21 + $0x18] sm:$0xff]  ;;  %v311_v20 = vld [vmem:[%s1784_s21 + $0x20] sm:$0xff]  ;;  %v312_v21 = vld [vmem:[%s1784_s21 + $0x28] sm:$0xff]  ;;  %1630 = vmatprep.subr.bf16.mxu1 %v1691_v11  ;;  %v349_v25 = vsub.f32 %v309_v15, %v1794_v10 }
  0x12   : > { %v350_v26 = vsub.f32 %v310_v18, %v1794_v10  ;;  %v351_v28 = vsub.f32 %v311_v20, %v1794_v10  ;;  %v352_v29 = vsub.f32 %v312_v21, %v1794_v10  ;;  %v313_v36 = vld [vmem:[%s1784_s21 + $0x30] sm:$0xff]  ;;  %v314_v37 = vld [vmem:[%s1784_s21 + $0x38] sm:$0xff]  ;;  %v315_v39 = vld [vmem:[%s1784_s21 + $0x40] sm:$0xff] }
  0x13   : > { %1583 = vmatpush3.bf16.msra.mxu0 %v1683_v5  ;;  %v385_v16 = vmul.f32 %v1802_v12, %v347_v13  ;;  %v386_v17 = vmul.f32 %v1802_v12, %v348_v14  ;;  %v387_v32 = vmul.f32 %v1802_v12, %v349_v25  ;;  %v316_v40 = vld [vmem:[%s1784_s21 + $0x48] sm:$0xff]  ;;  %v353_v44 = vsub.f32 %v313_v36, %v1794_v10  ;;  %v317_v54 = vld [vmem:[%s1784_s21 + $0x50] sm:$0xff]  ;;  %v318_v55 = vld [vmem:[%s1784_s21 + $0x58] sm:$0xff] }
  0x14   : > { %1584 = vmatprep.subr.bf16.mxu0 %v1684_v7  ;;  %1631 = vmatpush3.bf16.msra.mxu1 %v1691_v11  ;;  %v388_v33 = vmul.f32 %v1802_v12, %v350_v26  ;;  %v389_v34 = vmul.f32 %v1802_v12, %v351_v28  ;;  %v390_v35 = vmul.f32 %v1802_v12, %v352_v29  ;;  %v319_v59 = vld [vmem:[%s1784_s21 + $0x60] sm:$0xff]  ;;  %v320_v60 = vld [vmem:[%s1784_s21 + $0x68] sm:$0xff]  ;;  %v338_v8 = vld [vmem:[%s1784_s21 + $0xf8] sm:$0xff] }
  0x15   : > { %v417_v22 = vmax.f32 %v385_v16, 0.0  ;;  %v418_v23 = vmax.f32 %v386_v17, 0.0  ;;  %1632 = vmatprep.subr.bf16.mxu1 %v1692_v24  ;;  %v419_v42 = vmax.f32 %v387_v32, 0.0  ;;  %v354_v45 = vsub.f32 %v314_v37, %v1794_v10  ;;  %v321_v15 = vld [vmem:[%s1784_s21 + $0x70] sm:$0xff]  ;;  %v322_v16 = vld [vmem:[%s1784_s21 + $0x78] sm:$0xff]  ;;  %v323_v17 = vld [vmem:[%s1784_s21 + $0x80] sm:$0xff] }
  0x16   : > { %v420_v43 = vmax.f32 %v388_v33, 0.0  ;;  %v421_v46 = vmax.f32 %v389_v34, 0.0  ;;  %v422_v47 = vmax.f32 %v390_v35, 0.0  ;;  %v355_v48 = vsub.f32 %v315_v39, %v1794_v10  ;;  %v324_v18 = vld [vmem:[%s1784_s21 + $0x88] sm:$0xff] }
  0x17   : > { %1585 = vmatpush3.bf16.msra.mxu0 %v1684_v7  ;;  %v449_v27 = vpack.c.bf16 %v418_v23, %v417_v22  ;;  %v356_v49 = vsub.f32 %v316_v40, %v1794_v10  ;;  %v391_v52 = vmul.f32 %v1802_v12, %v353_v44  ;;  %v392_v53 = vmul.f32 %v1802_v12, %v354_v45  ;;  %v337_v7 = vld [vmem:[%s1784_s21 + $0xf0] sm:$0xff] }
  0x18   : > { %1586 = vmatprep.subr.bf16.mxu0 %v1686_v19  ;;  %1633 = vmatpush3.bf16.msra.mxu1 %v1692_v24  ;;  %v450_v51 = vpack.c.bf16 %v420_v43, %v419_v42  ;;  %v451_v56 = vpack.c.bf16 %v422_v47, %v421_v46  ;;  %v393_v57 = vmul.f32 %v1802_v12, %v355_v48  ;;  %v325_v40 = vld [vmem:[%s1784_s21 + $0x90] sm:$0xff]  ;;  %v327_v42 = vld [vmem:[%s1784_s21 + $0xa0] sm:$0xff]  ;;  %v328_v43 = vld [vmem:[%s1784_s21 + $0xa8] sm:$0xff] }
  0x19   : > { %1592 = vmatprep.mubr.bf16.mxu0 %v449_v27  ;;  %1640 = vmatprep.mubr.bf16.mxu1 %v449_v27  ;;  %v394_v58 = vmul.f32 %v1802_v12, %v356_v49  ;;  %v357_v61 = vsub.f32 %v317_v54, %v1794_v10  ;;  %v358_v62 = vsub.f32 %v318_v55, %v1794_v10  ;;  %v423_v63 = vmax.f32 %v391_v52, 0.0 }
  0x1a   : > { %1634 = vmatprep.subr.bf16.mxu1 %v1693_v31  ;;  %v424_v0 = vmax.f32 %v392_v53, 0.0  ;;  %v425_v1 = vmax.f32 %v393_v57, 0.0  ;;  %v359_v3 = vsub.f32 %v319_v59, %v1794_v10  ;;  %v360_v4 = vsub.f32 %v320_v60, %v1794_v10  ;;  %v330_v59 = vld [vmem:[%s1784_s21 + $0xb8] sm:$0xff]  ;;  %v331_v60 = vld [vmem:[%s1784_s21 + $0xc0] sm:$0xff] }
  0x1b   : > { %1587 = vmatpush3.bf16.msra.mxu0 %v1686_v19  ;;  %v426_v2 = vmax.f32 %v394_v58, 0.0  ;;  %v395_v5 = vmul.f32 %v1802_v12, %v357_v61  ;;  %v396_v6 = vmul.f32 %v1802_v12, %v358_v62  ;;  %v377_v19 = vsub.f32 %v337_v7, %v1794_v10  ;;  %v329_v58 = vld [vmem:[%s1784_s21 + $0xb0] sm:$0xff]  ;;  %v332_v61 = vld [vmem:[%s1784_s21 + $0xc8] sm:$0xff] }
  0x1c   : > { %1588 = vmatprep.subr.bf16.mxu0 %v1688_v30  ;;  %1635 = vmatpush3.bf16.msra.mxu1 %v1693_v31  ;;  %v452_v9 = vpack.c.bf16 %v424_v0, %v423_v63  ;;  %v397_v13 = vmul.f32 %v1802_v12, %v359_v3  ;;  %v398_v14 = vmul.f32 %v1802_v12, %v360_v4 }
  0x1d   : > { %1636 = vmatprep.subr.bf16.mxu1 %v1694_v41  ;;  %v453_v11 = vpack.c.bf16 %v426_v2, %v425_v1  ;;  %v378_v20 = vsub.f32 %v338_v8, %v1794_v10  ;;  %v427_v21 = vmax.f32 %v395_v5, 0.0  ;;  %v428_v22 = vmax.f32 %v396_v6, 0.0 }
  0x1e   : > { %v361_v23 = vsub.f32 %v321_v15, %v1794_v10  ;;  %v362_v24 = vsub.f32 %v322_v16, %v1794_v10  ;;  %v415_v25 = vmul.f32 %v1802_v12, %v377_v19  ;;  %v429_v27 = vmax.f32 %v397_v13, 0.0  ;;  %v334_v15 = vld [vmem:[%s1784_s21 + $0xd8] sm:$0xff]  ;;  %v335_v16 = vld [vmem:[%s1784_s21 + $0xe0] sm:$0xff] }
  0x1f   : > { %1589 = vmatpush3.bf16.msra.mxu0 %v1688_v30  ;;  %v416_v26 = vmul.f32 %v1802_v12, %v378_v20  ;;  %v430_v28 = vmax.f32 %v398_v14, 0.0  ;;  %v363_v29 = vsub.f32 %v323_v17, %v1794_v10  ;;  %v364_v30 = vsub.f32 %v324_v18, %v1794_v10  ;;  %v333_v14 = vld [vmem:[%s1784_s21 + $0xd0] sm:$0xff]  ;;  %v336_v17 = vld [vmem:[%s1784_s21 + $0xe8] sm:$0xff] }
  0x20   : > { %1590 = vmatprep.subr.bf16.mxu0 %v1690_v38  ;;  %1637 = vmatpush3.bf16.msra.mxu1 %v1694_v41  ;;  %v447_v31 = vmax.f32 %v415_v25, 0.0  ;;  %v454_v33 = vpack.c.bf16 %v428_v22, %v427_v21  ;;  %v399_v34 = vmul.f32 %v1802_v12, %v361_v23  ;;  %v400_v35 = vmul.f32 %v1802_v12, %v362_v24  ;;  %v326_v41 = vld [vmem:[%s1784_s21 + $0x98] sm:$0xff]  ;;  %s1345_s21 = sshll.u32 %s2001_s28, 2  ;;  %s1348_s28 = sshll.u32 %s2003_s25, 1 }
  0x21   : > { %1638 = vmatprep.subr.bf16.mxu1 %v1695_v50  ;;  %v448_v32 = vmax.f32 %v416_v26, 0.0  ;;  %v455_v37 = vpack.c.bf16 %v430_v28, %v429_v27  ;;  %v402_v39 = vmul.f32 %v1802_v12, %v364_v30  ;;  %v365_v46 = vsub.f32 %v325_v40, %v1794_v10  ;;  %s1927_s8 = scalar_lea.vmem %s1997_s5, %s1345_s21  ;;  %s305_s14 = scalar_lea.vmem %s1999_s7, %s1348_s28 }
  0x22   : > { %v431_v44 = vmax.f32 %v399_v34, 0.0  ;;  %v432_v45 = vmax.f32 %v400_v35, 0.0  ;;  %v366_v47 = vsub.f32 %v326_v41, %v1794_v10  ;;  %v369_v0 = vsub.f32 %v329_v58, %v1794_v10 }
  0x23   : > { %1591 = vmatpush3.bf16.msra.mxu0 %v1690_v38  ;;  %v1881_v36 = vpack.c.bf16 %v448_v32, %v447_v31  ;;  %v401_v38 = vmul.f32 %v1802_v12, %v363_v29  ;;  %v434_v49 = vmax.f32 %v402_v39, 0.0  ;;  %v403_v53 = vmul.f32 %v1802_v12, %v365_v46 }
  0x24   : > { %1639 = vmatpush3.bf16.msra.mxu1 %v1695_v50  ;;  %v367_v50 = vsub.f32 %v327_v42, %v1794_v10  ;;  %v456_v52 = vpack.c.bf16 %v432_v45, %v431_v44  ;;  %v404_v54 = vmul.f32 %v1802_v12, %v366_v47  ;;  %v370_v1 = vsub.f32 %v330_v59, %v1794_v10 }
  0x25   : > { %v433_v48 = vmax.f32 %v401_v38, 0.0  ;;  %v435_v62 = vmax.f32 %v403_v53, 0.0  ;;  %v371_v4 = vsub.f32 %v331_v60, %v1794_v10  ;;  %v372_v5 = vsub.f32 %v332_v61, %v1794_v10 }
  0x26   : > { %1593 = vmatmul.mubr.bf16.vlgmr.msra.gmra.mrb[0].mxu0 %v450_v51  ;;  %v436_v63 = vmax.f32 %v404_v54, 0.0  ;;  %v407_v7 = vmul.f32 %v1802_v12, %v369_v0  ;;  %v408_v8 = vmul.f32 %v1802_v12, %v370_v1  ;;  %v373_v20 = vsub.f32 %v333_v14, %v1794_v10 }
  0x27   : > { %1596 = vmatprep.mubr.bf16.mxu0 %v451_v56  ;;  %1641 = vmatmul.mubr.bf16.vlgmr.msra.gmra.mrb[0].mxu1 %v450_v51  ;;  %v368_v51 = vsub.f32 %v328_v43, %v1794_v10  ;;  %v457_v55 = vpack.c.bf16 %v434_v49, %v433_v48  ;;  %v410_v13 = vmul.f32 %v1802_v12, %v372_v5 }
  0x28   : > { %1644 = vmatprep.mubr.bf16.mxu1 %v451_v56  ;;  %v405_v56 = vmul.f32 %v1802_v12, %v367_v50  ;;  %v458_v6 = vpack.c.bf16 %v436_v63, %v435_v62  ;;  %v439_v18 = vmax.f32 %v407_v7, 0.0  ;;  %v440_v19 = vmax.f32 %v408_v8, 0.0 }
  0x29   : > { %v406_v57 = vmul.f32 %v1802_v12, %v368_v51  ;;  %v374_v21 = vsub.f32 %v334_v15, %v1794_v10  ;;  %v442_v23 = vmax.f32 %v410_v13, 0.0  ;;  %v375_v24 = vsub.f32 %v335_v16, %v1794_v10 }
  0x2a   : > { %v437_v2 = vmax.f32 %v405_v56, 0.0  ;;  %v376_v25 = vsub.f32 %v336_v17, %v1794_v10  ;;  %v460_v26 = vpack.c.bf16 %v440_v19, %v439_v18  ;;  %v411_v27 = vmul.f32 %v1802_v12, %v373_v20 }
  0x2b   : > { %v438_v3 = vmax.f32 %v406_v57, 0.0  ;;  %v412_v28 = vmul.f32 %v1802_v12, %v374_v21  ;;  %v413_v30 = vmul.f32 %v1802_v12, %v375_v24 }
  0x2c   : > { %v414_v31 = vmul.f32 %v1802_v12, %v376_v25  ;;  %v443_v32 = vmax.f32 %v411_v27, 0.0 }
  0x2d   : > { %v445_v34 = vmax.f32 %v413_v30, 0.0 }
  0x2e   : > { %1597 = vmatmul.mubr.bf16.gmra.mrb[4].mxu0 %v452_v9  ;;  %v446_v35 = vmax.f32 %v414_v31, 0.0 }
  0x2f   : > { %1600 = vmatprep.mubr.bf16.mxu0 %v453_v11  ;;  %1645 = vmatmul.mubr.bf16.gmra.mrb[4].mxu1 %v452_v9  ;;  %v459_v9 = vpack.c.bf16 %v438_v3, %v437_v2 }
  0x30   : > { %1648 = vmatprep.mubr.bf16.mxu1 %v453_v11  ;;  %v409_v11 = vmul.f32 %v1802_v12, %v371_v4 }
  0x32   : > { %v441_v22 = vmax.f32 %v409_v11, 0.0 }
  0x34   : > { %v461_v29 = vpack.c.bf16 %v442_v23, %v441_v22 }
  0x36   : > { %1601 = vmatmul.mubr.bf16.gmra.mrb[8].mxu0 %v454_v33 }
  0x37   : > { %1604 = vmatprep.mubr.bf16.mxu0 %v455_v37  ;;  %1649 = vmatmul.mubr.bf16.gmra.mrb[8].mxu1 %v454_v33  ;;  %v444_v33 = vmax.f32 %v412_v28, 0.0 }
  0x38   : > { %1652 = vmatprep.mubr.bf16.mxu1 %v455_v37  ;;  %v463_v37 = vpack.c.bf16 %v446_v35, %v445_v34 }
  0x39   : > { %v462_v10 = vpack.c.bf16 %v444_v33, %v443_v32 }
  0x3e   : > { %1605 = vmatmul.mubr.bf16.gmra.mrb[12].mxu0 %v456_v52 }
  0x3f   : > { %1608 = vmatprep.mubr.bf16.mxu0 %v457_v55  ;;  %1653 = vmatmul.mubr.bf16.gmra.mrb[12].mxu1 %v456_v52 }
  0x40   : > { %1656 = vmatprep.mubr.bf16.mxu1 %v457_v55 }
  0x46   : > { %1609 = vmatmul.mubr.bf16.gmra.mrb[16].mxu0 %v458_v6 }
  0x47   : > { %1612 = vmatprep.mubr.bf16.mxu0 %v459_v9  ;;  %1657 = vmatmul.mubr.bf16.gmra.mrb[16].mxu1 %v458_v6 }
  0x48   : > { %1660 = vmatprep.mubr.bf16.mxu1 %v459_v9 }
  0x4e   : > { %1613 = vmatmul.mubr.bf16.gmra.mrb[20].mxu0 %v460_v26 }
  0x4f   : > { %1616 = vmatprep.mubr.bf16.mxu0 %v461_v29  ;;  %1661 = vmatmul.mubr.bf16.gmra.mrb[20].mxu1 %v460_v26 }
  0x50   : > { %1664 = vmatprep.mubr.bf16.mxu1 %v461_v29 }
  0x56   : > { %1617 = vmatmul.mubr.bf16.gmra.mrb[24].mxu0 %v462_v10 }
  0x57   : > { %1620 = vmatprep.mubr.bf16.mxu0 %v463_v37  ;;  %1665 = vmatmul.mubr.bf16.gmra.mrb[24].mxu1 %v462_v10 }
  0x58   : > { %1668 = vmatprep.mubr.bf16.mxu1 %v463_v37 }
  0x5e   : > { %1621 = vmatmul.mubr.bf16.gmra.mrb[28].mxu0 %v1881_v36 }
  0x5f   : > { %1669 = vmatmul.mubr.bf16.gmra.mrb[28].mxu1 %v1881_v36 }
  0xf9   : > { %v1594_v12 = vpop.f32.mrb[0].mxu0 }
  0xfa   : > { %v563_v38 = vpop.f32.mrb[1].mxu0  ;;  %v1642_v45 = vpop.f32.mrb[0].mxu1  ;;  %v1146_v46 = vmul.f32 %v1594_v12, %v1594_v12 }
  0xfb   : > { %v1595_v39 = vpop.f32.mrb[2].mxu0  ;;  %v1144_v36 = vmul.f32 %v563_v38, %v563_v38  ;;  %1077 = vst [vmem:[%s1934_s11 + $0x10] sm:$0xff] %v1642_v45  ;;  %v948_v49 = vpop.f32.mrb[1].mxu1 }
  0xfc   : > { %v1441_v40 = vpack.c.bf16 %v1595_v39, %v1594_v12  ;;  %v566_v41 = vpop.f32.mrb[3].mxu0  ;;  %1075 = vst [vmem:[%s1934_s11] sm:$0xff] %v948_v49  ;;  %v1643_v50 = vpop.f32.mrb[2].mxu1  ;;  %v1147_v51 = vmul.f32 %v1595_v39, %v1595_v39 }
  0xfd   : > { %v1436_v42 = vpack.c.bf16 %v566_v41, %v563_v38  ;;  %v1107_v43 = vadd.f32 %v566_v41, %v563_v38  ;;  %v1145_v44 = vmul.f32 %v566_v41, %v566_v41  ;;  %1078 = vst [vmem:[%s1934_s11 + $0x18] sm:$0xff] %v1643_v50  ;;  %v951_v55 = vpop.f32.mrb[3].mxu1 }
  0xfe   : > { %1513 = vst [vmem:[%s1927_s8 + $0x8] sm:$0xff] %v1441_v40   ;;  %1076 = vst [vmem:[%s1934_s11 + $0x8] sm:$0xff] %v951_v55 }
  0xff   : > { %1437 = vst [vmem:[%s1927_s8] sm:$0xff] %v1436_v42   ;;  %v1108_v47 = vadd.f32 %v1594_v12, %v1107_v43  ;;  %v1176_v48 = vadd.f32 %v1145_v44, %v1144_v36 }
 0x101   : > { %v1177_v52 = vadd.f32 %v1176_v48, %v1146_v46  ;;  %v1598_v53 = vpop.f32.mrb[4].mxu0  ;;  %v1109_v54 = vadd.f32 %v1595_v39, %v1108_v47 }
 0x102   : > { %v579_v56 = vpop.f32.mrb[5].mxu0  ;;  %v1646_v3 = vpop.f32.mrb[4].mxu1  ;;  %v1150_v4 = vmul.f32 %v1598_v53, %v1598_v53 }
 0x103   : > { %v1110_v57 = vadd.f32 %v1109_v54, %v579_v56  ;;  %v1148_v58 = vmul.f32 %v579_v56, %v579_v56  ;;  %v1178_v59 = vadd.f32 %v1177_v52, %v1147_v51  ;;  %v1599_v60 = vpop.f32.mrb[6].mxu0  ;;  %1081 = vst [vmem:[%s1934_s11 + $0x30] sm:$0xff] %v1646_v3  ;;  %v964_v7 = vpop.f32.mrb[5].mxu1 }
 0x104   : > { %v1451_v61 = vpack.c.bf16 %v1599_v60, %v1598_v53  ;;  %v582_v62 = vpop.f32.mrb[7].mxu0  ;;  %1079 = vst [vmem:[%s1934_s11 + $0x20] sm:$0xff] %v964_v7  ;;  %v1647_v8 = vpop.f32.mrb[6].mxu1  ;;  %v1151_v9 = vmul.f32 %v1599_v60, %v1599_v60 }
 0x105   : > { %v1179_v63 = vadd.f32 %v1178_v59, %v1148_v58  ;;  %v1446_v0 = vpack.c.bf16 %v582_v62, %v579_v56  ;;  %v1111_v1 = vadd.f32 %v1110_v57, %v582_v62  ;;  %v1149_v2 = vmul.f32 %v582_v62, %v582_v62  ;;  %1082 = vst [vmem:[%s1934_s11 + $0x38] sm:$0xff] %v1647_v8  ;;  %v967_v15 = vpop.f32.mrb[7].mxu1 }
 0x106   : > { %1515 = vst [vmem:[%s1927_s8 + $0x18] sm:$0xff] %v1451_v61   ;;  %1080 = vst [vmem:[%s1934_s11 + $0x28] sm:$0xff] %v967_v15 }
 0x107   : > { %1514 = vst [vmem:[%s1927_s8 + $0x10] sm:$0xff] %v1446_v0   ;;  %v1112_v5 = vadd.f32 %v1598_v53, %v1111_v1  ;;  %v1180_v6 = vadd.f32 %v1179_v63, %v1149_v2 }
 0x109   : > { %v1181_v11 = vadd.f32 %v1180_v6, %v1150_v4  ;;  %v1602_v13 = vpop.f32.mrb[8].mxu0  ;;  %v1113_v14 = vadd.f32 %v1599_v60, %v1112_v5 }
 0x10a   : > { %v595_v16 = vpop.f32.mrb[9].mxu0  ;;  %v1650_v27 = vpop.f32.mrb[8].mxu1  ;;  %v1154_v28 = vmul.f32 %v1602_v13, %v1602_v13 }
 0x10b   : > { %v1114_v17 = vadd.f32 %v1113_v14, %v595_v16  ;;  %v1152_v18 = vmul.f32 %v595_v16, %v595_v16  ;;  %v1182_v19 = vadd.f32 %v1181_v11, %v1151_v9  ;;  %v1603_v20 = vpop.f32.mrb[10].mxu0  ;;  %1085 = vst [vmem:[%s1934_s11 + $0x50] sm:$0xff] %v1650_v27  ;;  %v980_v31 = vpop.f32.mrb[9].mxu1 }
 0x10c   : > { %v1461_v21 = vpack.c.bf16 %v1603_v20, %v1602_v13  ;;  %v598_v22 = vpop.f32.mrb[11].mxu0  ;;  %1083 = vst [vmem:[%s1934_s11 + $0x40] sm:$0xff] %v980_v31  ;;  %v1651_v32 = vpop.f32.mrb[10].mxu1  ;;  %v1155_v33 = vmul.f32 %v1603_v20, %v1603_v20 }
 0x10d   : > { %v1183_v23 = vadd.f32 %v1182_v19, %v1152_v18  ;;  %v1456_v24 = vpack.c.bf16 %v598_v22, %v595_v16  ;;  %v1115_v25 = vadd.f32 %v1114_v17, %v598_v22  ;;  %v1153_v26 = vmul.f32 %v598_v22, %v598_v22  ;;  %1086 = vst [vmem:[%s1934_s11 + $0x58] sm:$0xff] %v1651_v32  ;;  %v983_v37 = vpop.f32.mrb[11].mxu1 }
 0x10e   : > { %1517 = vst [vmem:[%s1927_s8 + $0x28] sm:$0xff] %v1461_v21   ;;  %1084 = vst [vmem:[%s1934_s11 + $0x48] sm:$0xff] %v983_v37 }
 0x10f   : > { %1516 = vst [vmem:[%s1927_s8 + $0x20] sm:$0xff] %v1456_v24   ;;  %v1116_v29 = vadd.f32 %v1602_v13, %v1115_v25  ;;  %v1184_v30 = vadd.f32 %v1183_v23, %v1153_v26 }
 0x111   : > { %v1185_v34 = vadd.f32 %v1184_v30, %v1154_v28  ;;  %v1606_v35 = vpop.f32.mrb[12].mxu0  ;;  %v1117_v10 = vadd.f32 %v1603_v20, %v1116_v29 }
 0x112   : > { %v611_v12 = vpop.f32.mrb[13].mxu0  ;;  %v1654_v47 = vpop.f32.mrb[12].mxu1  ;;  %v1158_v48 = vmul.f32 %v1606_v35, %v1606_v35 }
 0x113   : > { %v1118_v38 = vadd.f32 %v1117_v10, %v611_v12  ;;  %v1156_v39 = vmul.f32 %v611_v12, %v611_v12  ;;  %v1186_v40 = vadd.f32 %v1185_v34, %v1155_v33  ;;  %v1607_v41 = vpop.f32.mrb[14].mxu0  ;;  %1089 = vst [vmem:[%s1934_s11 + $0x70] sm:$0xff] %v1654_v47  ;;  %v996_v51 = vpop.f32.mrb[13].mxu1 }
 0x114   : > { %v1471_v36 = vpack.c.bf16 %v1607_v41, %v1606_v35  ;;  %v614_v42 = vpop.f32.mrb[15].mxu0  ;;  %1087 = vst [vmem:[%s1934_s11 + $0x60] sm:$0xff] %v996_v51  ;;  %v1655_v52 = vpop.f32.mrb[14].mxu1  ;;  %v1159_v53 = vmul.f32 %v1607_v41, %v1607_v41 }
 0x115   : > { %v1187_v43 = vadd.f32 %v1186_v40, %v1156_v39  ;;  %v1466_v44 = vpack.c.bf16 %v614_v42, %v611_v12  ;;  %v1119_v45 = vadd.f32 %v1118_v38, %v614_v42  ;;  %v1157_v46 = vmul.f32 %v614_v42, %v614_v42  ;;  %1090 = vst [vmem:[%s1934_s11 + $0x78] sm:$0xff] %v1655_v52  ;;  %v999_v57 = vpop.f32.mrb[15].mxu1 }
 0x116   : > { %1519 = vst [vmem:[%s1927_s8 + $0x38] sm:$0xff] %v1471_v36   ;;  %1088 = vst [vmem:[%s1934_s11 + $0x68] sm:$0xff] %v999_v57 }
 0x117   : > { %1518 = vst [vmem:[%s1927_s8 + $0x30] sm:$0xff] %v1466_v44   ;;  %v1120_v49 = vadd.f32 %v1606_v35, %v1119_v45  ;;  %v1188_v50 = vadd.f32 %v1187_v43, %v1157_v46 }
 0x119   : > { %v1189_v54 = vadd.f32 %v1188_v50, %v1158_v48  ;;  %v1610_v55 = vpop.f32.mrb[16].mxu0  ;;  %v1121_v56 = vadd.f32 %v1607_v41, %v1120_v49 }
 0x11a   : > { %v627_v58 = vpop.f32.mrb[17].mxu0  ;;  %v1658_v5 = vpop.f32.mrb[16].mxu1  ;;  %v1162_v6 = vmul.f32 %v1610_v55, %v1610_v55 }
 0x11b   : > { %v1122_v59 = vadd.f32 %v1121_v56, %v627_v58  ;;  %v1160_v60 = vmul.f32 %v627_v58, %v627_v58  ;;  %v1190_v61 = vadd.f32 %v1189_v54, %v1159_v53  ;;  %v1611_v62 = vpop.f32.mrb[18].mxu0  ;;  %1093 = vst [vmem:[%s1934_s11 + $0x90] sm:$0xff] %v1658_v5  ;;  %v1012_v9 = vpop.f32.mrb[17].mxu1 }
 0x11c   : > { %v1481_v63 = vpack.c.bf16 %v1611_v62, %v1610_v55  ;;  %v630_v0 = vpop.f32.mrb[19].mxu0  ;;  %1091 = vst [vmem:[%s1934_s11 + $0x80] sm:$0xff] %v1012_v9  ;;  %v1659_v11 = vpop.f32.mrb[18].mxu1  ;;  %v1163_v13 = vmul.f32 %v1611_v62, %v1611_v62 }
 0x11d   : > { %v1191_v1 = vadd.f32 %v1190_v61, %v1160_v60  ;;  %v1476_v2 = vpack.c.bf16 %v630_v0, %v627_v58  ;;  %v1123_v3 = vadd.f32 %v1122_v59, %v630_v0  ;;  %v1161_v4 = vmul.f32 %v630_v0, %v630_v0  ;;  %1094 = vst [vmem:[%s1934_s11 + $0x98] sm:$0xff] %v1659_v11  ;;  %v1015_v17 = vpop.f32.mrb[19].mxu1 }
 0x11e   : > { %1521 = vst [vmem:[%s1927_s8 + $0x48] sm:$0xff] %v1481_v63   ;;  %1092 = vst [vmem:[%s1934_s11 + $0x88] sm:$0xff] %v1015_v17 }
 0x11f   : > { %1520 = vst [vmem:[%s1927_s8 + $0x40] sm:$0xff] %v1476_v2   ;;  %v1124_v7 = vadd.f32 %v1610_v55, %v1123_v3  ;;  %v1192_v8 = vadd.f32 %v1191_v1, %v1161_v4 }
 0x121   : > { %v1193_v14 = vadd.f32 %v1192_v8, %v1162_v6  ;;  %v1614_v15 = vpop.f32.mrb[20].mxu0  ;;  %v1125_v16 = vadd.f32 %v1611_v62, %v1124_v7 }
 0x122   : > { %v643_v18 = vpop.f32.mrb[21].mxu0  ;;  %v1662_v29 = vpop.f32.mrb[20].mxu1  ;;  %v1166_v30 = vmul.f32 %v1614_v15, %v1614_v15 }
 0x123   : > { %v1126_v19 = vadd.f32 %v1125_v16, %v643_v18  ;;  %v1164_v20 = vmul.f32 %v643_v18, %v643_v18  ;;  %v1194_v21 = vadd.f32 %v1193_v14, %v1163_v13  ;;  %v1615_v22 = vpop.f32.mrb[22].mxu0  ;;  %1097 = vst [vmem:[%s1934_s11 + $0xb0] sm:$0xff] %v1662_v29  ;;  %v1028_v33 = vpop.f32.mrb[21].mxu1 }
 0x124   : > { %v1491_v23 = vpack.c.bf16 %v1615_v22, %v1614_v15  ;;  %v646_v24 = vpop.f32.mrb[23].mxu0  ;;  %1095 = vst [vmem:[%s1934_s11 + $0xa0] sm:$0xff] %v1028_v33  ;;  %v1663_v34 = vpop.f32.mrb[22].mxu1  ;;  %v1167_v35 = vmul.f32 %v1615_v22, %v1615_v22 }
 0x125   : > { %v1195_v25 = vadd.f32 %v1194_v21, %v1164_v20  ;;  %v1486_v26 = vpack.c.bf16 %v646_v24, %v643_v18  ;;  %v1127_v27 = vadd.f32 %v1126_v19, %v646_v24  ;;  %v1165_v28 = vmul.f32 %v646_v24, %v646_v24  ;;  %1098 = vst [vmem:[%s1934_s11 + $0xb8] sm:$0xff] %v1663_v34  ;;  %v1031_v38 = vpop.f32.mrb[23].mxu1 }
 0x126   : > { %1523 = vst [vmem:[%s1927_s8 + $0x58] sm:$0xff] %v1491_v23   ;;  %1096 = vst [vmem:[%s1934_s11 + $0xa8] sm:$0xff] %v1031_v38 }
 0x127   : > { %1522 = vst [vmem:[%s1927_s8 + $0x50] sm:$0xff] %v1486_v26   ;;  %v1128_v31 = vadd.f32 %v1614_v15, %v1127_v27  ;;  %v1196_v32 = vadd.f32 %v1195_v25, %v1165_v28 }
 0x129   : > { %v1197_v10 = vadd.f32 %v1196_v32, %v1166_v30  ;;  %v1618_v37 = vpop.f32.mrb[24].mxu0  ;;  %v1129_v12 = vadd.f32 %v1615_v22, %v1128_v31 }
 0x12a   : > { %v659_v39 = vpop.f32.mrb[25].mxu0  ;;  %v1666_v49 = vpop.f32.mrb[24].mxu1  ;;  %v1170_v50 = vmul.f32 %v1618_v37, %v1618_v37 }
 0x12b   : > { %v1130_v40 = vadd.f32 %v1129_v12, %v659_v39  ;;  %v1168_v41 = vmul.f32 %v659_v39, %v659_v39  ;;  %v1198_v36 = vadd.f32 %v1197_v10, %v1167_v35  ;;  %v1619_v42 = vpop.f32.mrb[26].mxu0  ;;  %1101 = vst [vmem:[%s1934_s11 + $0xd0] sm:$0xff] %v1666_v49  ;;  %v1044_v53 = vpop.f32.mrb[25].mxu1 }
 0x12c   : > { %v1501_v43 = vpack.c.bf16 %v1619_v42, %v1618_v37  ;;  %v662_v44 = vpop.f32.mrb[27].mxu0  ;;  %1099 = vst [vmem:[%s1934_s11 + $0xc0] sm:$0xff] %v1044_v53  ;;  %v1667_v54 = vpop.f32.mrb[26].mxu1  ;;  %v1171_v55 = vmul.f32 %v1619_v42, %v1619_v42 }
 0x12d   : > { %v1199_v45 = vadd.f32 %v1198_v36, %v1168_v41  ;;  %v1496_v46 = vpack.c.bf16 %v662_v44, %v659_v39  ;;  %v1131_v47 = vadd.f32 %v1130_v40, %v662_v44  ;;  %v1169_v48 = vmul.f32 %v662_v44, %v662_v44  ;;  %1102 = vst [vmem:[%s1934_s11 + $0xd8] sm:$0xff] %v1667_v54  ;;  %v1047_v59 = vpop.f32.mrb[27].mxu1 }
 0x12e   : > { %1525 = vst [vmem:[%s1927_s8 + $0x68] sm:$0xff] %v1501_v43   ;;  %1100 = vst [vmem:[%s1934_s11 + $0xc8] sm:$0xff] %v1047_v59 }
 0x12f   : > { %1524 = vst [vmem:[%s1927_s8 + $0x60] sm:$0xff] %v1496_v46   ;;  %v1132_v51 = vadd.f32 %v1618_v37, %v1131_v47  ;;  %v1200_v52 = vadd.f32 %v1199_v45, %v1169_v48 }
 0x131   : > { %v1201_v56 = vadd.f32 %v1200_v52, %v1170_v50  ;;  %v1622_v57 = vpop.f32.mrb[28].mxu0  ;;  %v1133_v58 = vadd.f32 %v1619_v42, %v1132_v51 }
 0x132   : > { %v675_v60 = vpop.f32.mrb[29].mxu0  ;;  %v1670_v7 = vpop.f32.mrb[28].mxu1  ;;  %v1174_v8 = vmul.f32 %v1622_v57, %v1622_v57 }
 0x133   : > { %v1134_v61 = vadd.f32 %v1133_v58, %v675_v60  ;;  %v1172_v62 = vmul.f32 %v675_v60, %v675_v60  ;;  %v1202_v63 = vadd.f32 %v1201_v56, %v1171_v55  ;;  %v1623_v0 = vpop.f32.mrb[30].mxu0  ;;  %1105 = vst [vmem:[%s1934_s11 + $0xf0] sm:$0xff] %v1670_v7  ;;  %v1060_v13 = vpop.f32.mrb[29].mxu1 }
 0x134   : > { %v1511_v1 = vpack.c.bf16 %v1623_v0, %v1622_v57  ;;  %v678_v2 = vpop.f32.mrb[31].mxu0  ;;  %1103 = vst [vmem:[%s1934_s11 + $0xe0] sm:$0xff] %v1060_v13  ;;  %v1671_v14 = vpop.f32.mrb[30].mxu1  ;;  %v1175_v15 = vmul.f32 %v1623_v0, %v1623_v0 }
 0x135   : > { %v1203_v3 = vadd.f32 %v1202_v63, %v1172_v62  ;;  %v1506_v4 = vpack.c.bf16 %v678_v2, %v675_v60  ;;  %v1135_v5 = vadd.f32 %v1134_v61, %v678_v2  ;;  %v1173_v6 = vmul.f32 %v678_v2, %v678_v2  ;;  %1106 = vst [vmem:[%s1934_s11 + $0xf8] sm:$0xff] %v1671_v14  ;;  %v1063_v18 = vpop.f32.mrb[31].mxu1 }
 0x136   : > { %1527 = vst [vmem:[%s1927_s8 + $0x78] sm:$0xff] %v1511_v1   ;;  %1104 = vst [vmem:[%s1934_s11 + $0xe8] sm:$0xff] %v1063_v18 }
 0x137   : > { %1526 = vst [vmem:[%s1927_s8 + $0x70] sm:$0xff] %v1506_v4   ;;  %v1136_v9 = vadd.f32 %v1622_v57, %v1135_v5  ;;  %v1204_v11 = vadd.f32 %v1203_v3, %v1173_v6 }
 0x139   : > { %v1137_v16 = vadd.f32 %v1623_v0, %v1136_v9  ;;  %v1205_v17 = vadd.f32 %v1204_v11, %v1174_v8 }
 0x13b   : > { %v1138_v19 = vrot.slane %v1137_v16, 4  ;;  %v1206_v20 = vadd.f32 %v1205_v17, %v1175_v15 }
 0x13d   : > { %v1139_v21 = vadd.f32 %v1138_v19, %v1137_v16  ;;  %v1207_v22 = vrot.slane %v1206_v20, 4 }
 0x13f   : > { %v1140_v23 = vrot.slane %v1139_v21, 2  ;;  %v1208_v24 = vadd.f32 %v1207_v22, %v1206_v20 }
 0x141   : > { %v1141_v25 = vadd.f32 %v1140_v23, %v1139_v21  ;;  %v1209_v26 = vrot.slane %v1208_v24, 2 }
 0x143   : > { %v1142_v27 = vrot.slane %v1141_v25, 1  ;;  %v1210_v28 = vadd.f32 %v1209_v26, %v1208_v24 }
 0x145   : > { %v1211_v29 = vrot.slane %v1210_v28, 1  ;;  %v1143_v30 = vadd.f32 %v1142_v27, %v1141_v25 }
 0x147   : > { %v1212_v31 = vadd.f32 %v1211_v29, %v1210_v28 }
 0x149   : > { %v1214_v32 = vsel %vm1213_vm0, %v1143_v30, %v1212_v31 }
 0x14a   : > { %1215 = vst [vmem:[%s305_s14] sm:$0x3] %v1214_v32 }
 0x14b PF: > { %s18_s24 = sadd.s32 1, %s1702_s24  }
 0x14c   : > { %p15_p5 = scmp.ge.s32.totalorder %s18_s24, 4  }
 0x14e   :  { %17 = sbr.rel (!%p15_p5) target bundleno = 1 (0x1), region = 94 }

// kernel: preact_bottleneck_forward.7
= control target key start
LH: loop header
LB: loop body
LE: loop exit
PB: predicated region body
PF: predicated region fallthrough
CT: control target
= control target key end

     0   :  { %s1042_s18 = smov 0   ;;  %s1250_s0 = inlined_call_operand.vmem [shape: bf16[512,128], index: 0, kind: input, shape index: {}]   ;;  %s1251_s1 = inlined_call_operand.vmem [shape: f32[1,128], index: 1, kind: input, shape index: {}]   ;;  %s1252_s2 = inlined_call_operand.vmem [shape: f32[1,128], index: 2, kind: input, shape index: {}]   ;;  %s1253_s3 = inlined_call_operand.vmem [shape: bf16[128,128], index: 3, kind: input, shape index: {}]   ;;  %s1254_s4 = inlined_call_operand.vmem [shape: f32[512,128], index: 4, kind: input, shape index: {}]   ;;  %s1255_s5 = inlined_call_operand.vmem [shape: f32[512,128], index: 5, kind: output, shape index: {}]  }
   0x1 LB: > { %s798_s19 = sadd.s32 4294967295, %s1010_s18   ;;  %p802_p0 = scmp.ge.s32.totalorder %s1010_s18, 1  ;;  %s1010_s18 = sphi %s1042_s18, %s15_s18  }
   0x2   : > { %p199_p1 = scmp.lt.s32.totalorder %s1010_s18, 3 }
   0x4   : > { %p200_p2 = pnand %p802_p0, %p199_p1 }
   0x5   : > { %v996_v0 = vld [vmem:[%s1253_s3] sm:$0xff] (!%p200_p2)   ;;  %s803_s22 = sshll.u32 (!%p200_p2), %s798_s19, 5  ;;  %v997_v1 = vld [vmem:[%s1253_s3 + $0x8] sm:$0xff] (!%p200_p2)   ;;  %v998_v2 = vld [vmem:[%s1253_s3 + $0x10] sm:$0xff] (!%p200_p2)  }
   0x6   : > { %203 = sbr.rel (%p200_p2) target bundleno = 281 (0x119), region = 40  ;;  %p233_p3 = scmp.lt.s32.totalorder (!%p200_p2), %s803_s22, 63  ;;  %924 = vmatprep.subr.bf16.mxu0 (!%p200_p2), %v996_v0  ;;  %972 = vmatprep.subr.bf16.mxu1 (!%p200_p2), %v996_v0  ;;  %v999_v3 = vld [vmem:[%s1253_s3 + $0x18] sm:$0xff] (!%p200_p2)   ;;  %v1074_v5 = vld [vmem:[%s1251_s1] ss:$0 sm:$0xff] (!%p200_p2)  ;;  %v1001_v37 = vld [vmem:[%s1253_s3 + $0x28] sm:$0xff] (!%p200_p2)  }
   0x7   : > { %925 = vmatpush3.bf16.msra.mxu0 (!%p200_p2), %v996_v0  ;;  %980 = vmatpush3.bf16.msra.mxu1 (!%p200_p2), %v996_v0  ;;  %v1082_v11 = vld [vmem:[%s1252_s2] ss:$0 sm:$0xff] (!%p200_p2)  ;;  %v1002_v54 = vld [vmem:[%s1253_s3 + $0x30] sm:$0xff] (!%p200_p2)  }
   0x8   : > { %926 = vmatprep.subr.bf16.mxu0 (!%p200_p2), %v997_v1  ;;  %973 = vmatprep.subr.bf16.mxu1 (!%p200_p2), %v997_v1  ;;  %v1000_v21 = vld [vmem:[%s1253_s3 + $0x20] sm:$0xff] (!%p200_p2)  }
   0xb   : > { %927 = vmatpush3.bf16.msra.mxu0 (!%p200_p2), %v997_v1  ;;  %981 = vmatpush3.bf16.msra.mxu1 (!%p200_p2), %v997_v1 }
   0xc   : > { %928 = vmatprep.subr.bf16.mxu0 (!%p200_p2), %v998_v2  ;;  %974 = vmatprep.subr.bf16.mxu1 (!%p200_p2), %v998_v2 }
   0xd   : > { %s1257_s22 = smov (!%p233_p3, %s803_s22), 63 }
   0xe   : > { %s804_s27 = sshll.u32 %s1257_s22, 2  ;;  %s806_s21 = sshll.u32 %s1257_s22, 3 }
   0xf   : > { %s1065_s30 = scalar_lea.vmem %s1250_s0, %s804_s27  ;;  %929 = vmatpush3.bf16.msra.mxu0 %v998_v2  ;;  %982 = vmatpush3.bf16.msra.mxu1 %v998_v2  ;;  %s1176_s25 = scalar_lea.vmem %s1254_s4, %s806_s21 }
  0x10   : > { %v822_v4 = vld [vmem:[%s1065_s30] sm:$0xff]   ;;  %v885_v9 = vld [vmem:[%s1065_s30 + $0x8] sm:$0xff]   ;;  %v886_v20 = vld [vmem:[%s1065_s30 + $0x10] sm:$0xff]   ;;  %930 = vmatprep.subr.bf16.mxu0 %v999_v3  ;;  %975 = vmatprep.subr.bf16.mxu1 %v999_v3  ;;  %s1185_s22 = scalar_lea.vmem %s1255_s5, %s806_s21 }
  0x11   : > { %v823_v6 = vunpack.c.l.bf16 %v822_v4  ;;  %v824_v7 = vunpack.c.h.bf16 %v822_v4  ;;  %v892_v8 = vld [vmem:[%s1065_s30 + $0x40] sm:$0xff]   ;;  %v893_v10 = vld [vmem:[%s1065_s30 + $0x48] sm:$0xff]   ;;  %v827_v14 = vunpack.c.l.bf16 %v885_v9  ;;  %v828_v15 = vunpack.c.h.bf16 %v885_v9  ;;  %v894_v36 = vld [vmem:[%s1065_s30 + $0x50] sm:$0xff]  }
  0x12   : > { %v855_v12 = vunpack.c.l.bf16 %v892_v8  ;;  %v856_v13 = vunpack.c.h.bf16 %v892_v8  ;;  %v859_v18 = vunpack.c.l.bf16 %v893_v10  ;;  %v860_v19 = vunpack.c.h.bf16 %v893_v10  ;;  %v887_v41 = vld [vmem:[%s1065_s30 + $0x18] sm:$0xff]   ;;  %v888_v63 = vld [vmem:[%s1065_s30 + $0x20] sm:$0xff]  }
  0x13   : > { %v323_v16 = vsub.f32 %v823_v6, %v1074_v5  ;;  %v324_v17 = vsub.f32 %v824_v7, %v1074_v5  ;;  %v325_v24 = vsub.f32 %v827_v14, %v1074_v5  ;;  %v326_v27 = vsub.f32 %v828_v15, %v1074_v5  ;;  %931 = vmatpush3.bf16.msra.mxu0 %v999_v3  ;;  %v895_v49 = vld [vmem:[%s1065_s30 + $0x58] sm:$0xff]   ;;  %v896_v15 = vld [vmem:[%s1065_s30 + $0x60] sm:$0xff]  }
  0x14   : > { %v339_v22 = vsub.f32 %v855_v12, %v1074_v5  ;;  %v340_v23 = vsub.f32 %v856_v13, %v1074_v5  ;;  %v341_v28 = vsub.f32 %v859_v18, %v1074_v5  ;;  %v831_v32 = vunpack.c.l.bf16 %v886_v20  ;;  %983 = vmatpush3.bf16.msra.mxu1 %v999_v3  ;;  %932 = vmatprep.subr.bf16.mxu0 %v1000_v21  ;;  %v1003_v9 = vld [vmem:[%s1253_s3 + $0x38] sm:$0xff]  }
  0x15   : > { %v361_v25 = vmul.f32 %v1082_v11, %v323_v16  ;;  %v362_v26 = vmul.f32 %v1082_v11, %v324_v17  ;;  %v363_v31 = vmul.f32 %v1082_v11, %v325_v24  ;;  %v342_v35 = vsub.f32 %v860_v19, %v1074_v5  ;;  %976 = vmatprep.subr.bf16.mxu1 %v1000_v21 }
  0x16   : > { %v377_v29 = vmul.f32 %v1082_v11, %v339_v22  ;;  %v378_v30 = vmul.f32 %v1082_v11, %v340_v23  ;;  %v364_v40 = vmul.f32 %v1082_v11, %v326_v27  ;;  %v379_v43 = vmul.f32 %v1082_v11, %v341_v28  ;;  %v889_v22 = vld [vmem:[%s1065_s30 + $0x28] sm:$0xff]  }
  0x17   : > { %v393_v33 = vmax.f32 %v361_v25, 0.0  ;;  %v394_v34 = vmax.f32 %v362_v26, 0.0  ;;  %v832_v44 = vunpack.c.h.bf16 %v886_v20  ;;  %v395_v46 = vmax.f32 %v363_v31, 0.0  ;;  %933 = vmatpush3.bf16.msra.mxu0 %v1000_v21  ;;  %v897_v27 = vld [vmem:[%s1065_s30 + $0x68] sm:$0xff]  }
  0x18   : > { %v409_v38 = vmax.f32 %v377_v29, 0.0  ;;  %v410_v39 = vmax.f32 %v378_v30, 0.0  ;;  %v327_v47 = vsub.f32 %v831_v32, %v1074_v5  ;;  %v863_v48 = vunpack.c.l.bf16 %v894_v36  ;;  %984 = vmatpush3.bf16.msra.mxu1 %v1000_v21  ;;  %934 = vmatprep.subr.bf16.mxu0 %v1001_v37 }
  0x19   : > { %v425_v42 = vpack.c.bf16 %v394_v34, %v393_v33  ;;  %v380_v50 = vmul.f32 %v1082_v11, %v342_v35  ;;  %v328_v51 = vsub.f32 %v832_v44, %v1074_v5  ;;  %v864_v52 = vunpack.c.h.bf16 %v894_v36  ;;  %977 = vmatprep.subr.bf16.mxu1 %v1001_v37  ;;  %v890_v36 = vld [vmem:[%s1065_s30 + $0x30] sm:$0xff]  }
  0x1a   : > { %v433_v45 = vpack.c.bf16 %v410_v39, %v409_v38  ;;  %v835_v53 = vunpack.c.l.bf16 %v887_v41  ;;  %v396_v55 = vmax.f32 %v364_v40, 0.0  ;;  %v365_v56 = vmul.f32 %v1082_v11, %v327_v47 }
  0x1b   : > { %v343_v57 = vsub.f32 %v863_v48, %v1074_v5  ;;  %v836_v58 = vunpack.c.h.bf16 %v887_v41  ;;  %940 = vmatprep.mubr.bf16.mxu0 %v425_v42  ;;  %v366_v59 = vmul.f32 %v1082_v11, %v328_v51  ;;  %v344_v60 = vsub.f32 %v864_v52, %v1074_v5  ;;  %935 = vmatpush3.bf16.msra.mxu0 %v1001_v37  ;;  %v898_v52 = vld [vmem:[%s1065_s30 + $0x70] sm:$0xff]  }
  0x1c   : > { %956 = vmatprep.mubr.bf16.mxu1 %v433_v45  ;;  %v329_v61 = vsub.f32 %v835_v53, %v1074_v5  ;;  %v867_v62 = vunpack.c.l.bf16 %v895_v49  ;;  %v411_v0 = vmax.f32 %v379_v43, 0.0  ;;  %v868_v3 = vunpack.c.h.bf16 %v895_v49  ;;  %985 = vmatpush3.bf16.msra.mxu1 %v1001_v37 }
  0x1d   : > { %v381_v1 = vmul.f32 %v1082_v11, %v343_v57  ;;  %v330_v2 = vsub.f32 %v836_v58, %v1074_v5  ;;  %v412_v4 = vmax.f32 %v380_v50, 0.0  ;;  %v397_v6 = vmax.f32 %v365_v56, 0.0  ;;  %936 = vmatprep.subr.bf16.mxu0 %v1002_v54  ;;  %978 = vmatprep.subr.bf16.mxu1 %v1002_v54 }
  0x1e   : > { %v398_v7 = vmax.f32 %v366_v59, 0.0  ;;  %v382_v8 = vmul.f32 %v1082_v11, %v344_v60  ;;  %v367_v10 = vmul.f32 %v1082_v11, %v329_v61  ;;  %v345_v12 = vsub.f32 %v867_v62, %v1074_v5  ;;  %v891_v60 = vld [vmem:[%s1065_s30 + $0x38] sm:$0xff]  }
  0x1f   : > { %v346_v13 = vsub.f32 %v868_v3, %v1074_v5  ;;  %v839_v14 = vunpack.c.l.bf16 %v888_v63  ;;  %v426_v16 = vpack.c.bf16 %v396_v55, %v395_v46  ;;  %v413_v17 = vmax.f32 %v381_v1, 0.0  ;;  %937 = vmatpush3.bf16.msra.mxu0 %v1002_v54 }
  0x20   : > { %v414_v18 = vmax.f32 %v382_v8, 0.0  ;;  %v368_v19 = vmul.f32 %v1082_v11, %v330_v2  ;;  %v840_v20 = vunpack.c.h.bf16 %v888_v63  ;;  %986 = vmatpush3.bf16.msra.mxu1 %v1002_v54  ;;  %v434_v23 = vpack.c.bf16 %v412_v4, %v411_v0  ;;  %938 = vmatprep.subr.bf16.mxu0 %v1003_v9 }
  0x21   : > { %v331_v21 = vsub.f32 %v839_v14, %v1074_v5  ;;  %v427_v24 = vpack.c.bf16 %v398_v7, %v397_v6  ;;  %v871_v25 = vunpack.c.l.bf16 %v896_v15  ;;  %v872_v26 = vunpack.c.h.bf16 %v896_v15  ;;  %979 = vmatprep.subr.bf16.mxu1 %v1003_v9  ;;  %v899_v6 = vld [vmem:[%s1065_s30 + $0x78] sm:$0xff]  }
  0x22   : > { %v399_v28 = vmax.f32 %v367_v10, 0.0  ;;  %v383_v29 = vmul.f32 %v1082_v11, %v345_v12  ;;  %v384_v30 = vmul.f32 %v1082_v11, %v346_v13  ;;  %v332_v31 = vsub.f32 %v840_v20, %v1074_v5 }
  0x23   : > { %v347_v32 = vsub.f32 %v871_v25, %v1074_v5  ;;  %v348_v33 = vsub.f32 %v872_v26, %v1074_v5  ;;  %v843_v34 = vunpack.c.l.bf16 %v889_v22  ;;  %v844_v35 = vunpack.c.h.bf16 %v889_v22  ;;  %939 = vmatpush3.bf16.msra.mxu0 %v1003_v9 }
  0x24   : > { %v435_v37 = vpack.c.bf16 %v414_v18, %v413_v17  ;;  %v400_v38 = vmax.f32 %v368_v19, 0.0  ;;  %v369_v39 = vmul.f32 %v1082_v11, %v331_v21  ;;  %v875_v40 = vunpack.c.l.bf16 %v897_v27  ;;  %987 = vmatpush3.bf16.msra.mxu1 %v1003_v9 }
  0x25   : > { %v370_v41 = vmul.f32 %v1082_v11, %v332_v31  ;;  %v385_v42 = vmul.f32 %v1082_v11, %v347_v32  ;;  %v386_v43 = vmul.f32 %v1082_v11, %v348_v33  ;;  %v876_v44 = vunpack.c.h.bf16 %v897_v27 }
  0x26   : > { %v333_v45 = vsub.f32 %v843_v34, %v1074_v5  ;;  %v334_v46 = vsub.f32 %v844_v35, %v1074_v5  ;;  %v847_v47 = vunpack.c.l.bf16 %v890_v36  ;;  %v415_v48 = vmax.f32 %v383_v29, 0.0  ;;  %941 = vmatmul.mubr.bf16.vlgmr.msra.gmra.mrb[0].mxu0 %v426_v16 }
  0x27   : > { %v416_v49 = vmax.f32 %v384_v30, 0.0  ;;  %v349_v50 = vsub.f32 %v875_v40, %v1074_v5  ;;  %v350_v51 = vsub.f32 %v876_v44, %v1074_v5  ;;  %957 = vmatmul.mubr.bf16.vlgmr.msra.gmra.mrb[0].mxu1 %v434_v23  ;;  %v428_v53 = vpack.c.bf16 %v400_v38, %v399_v28  ;;  %944 = vmatprep.mubr.bf16.mxu0 %v427_v24 }
  0x28   : > { %v401_v54 = vmax.f32 %v369_v39, 0.0  ;;  %v848_v55 = vunpack.c.h.bf16 %v890_v36  ;;  %960 = vmatprep.mubr.bf16.mxu1 %v435_v37  ;;  %v402_v56 = vmax.f32 %v370_v41, 0.0  ;;  %v417_v57 = vmax.f32 %v385_v42, 0.0 }
  0x29   : > { %v418_v58 = vmax.f32 %v386_v43, 0.0  ;;  %v335_v59 = vsub.f32 %v847_v47, %v1074_v5  ;;  %v371_v61 = vmul.f32 %v1082_v11, %v333_v45  ;;  %v372_v62 = vmul.f32 %v1082_v11, %v334_v46  ;;  %v475_v45 = vld [vmem:[%s1176_s25 + $0x90] sm:$0xff]  ;;  %v457_v46 = vld [vmem:[%s1176_s25] sm:$0xff] }
  0x2a   : > { %v336_v63 = vsub.f32 %v848_v55, %v1074_v5  ;;  %v879_v0 = vunpack.c.l.bf16 %v898_v52  ;;  %v436_v1 = vpack.c.bf16 %v416_v49, %v415_v48  ;;  %v387_v2 = vmul.f32 %v1082_v11, %v349_v50  ;;  %v473_v47 = vld [vmem:[%s1176_s25 + $0x80] sm:$0xff]  ;;  %v460_v50 = vld [vmem:[%s1176_s25 + $0x18] sm:$0xff] }
  0x2b   : > { %v388_v3 = vmul.f32 %v1082_v11, %v350_v51  ;;  %v880_v4 = vunpack.c.h.bf16 %v898_v52  ;;  %v373_v7 = vmul.f32 %v1082_v11, %v335_v59  ;;  %v851_v9 = vunpack.c.l.bf16 %v891_v60  ;;  %v476_v51 = vld [vmem:[%s1176_s25 + $0x98] sm:$0xff] }
  0x2c   : > { %v351_v8 = vsub.f32 %v879_v0, %v1074_v5  ;;  %v852_v10 = vunpack.c.h.bf16 %v891_v60  ;;  %v429_v12 = vpack.c.bf16 %v402_v56, %v401_v54  ;;  %v437_v13 = vpack.c.bf16 %v418_v58, %v417_v57  ;;  %v458_v56 = vld [vmem:[%s1176_s25 + $0x8] sm:$0xff] }
  0x2d   : > { %v374_v14 = vmul.f32 %v1082_v11, %v336_v63  ;;  %v352_v15 = vsub.f32 %v880_v4, %v1074_v5  ;;  %v403_v16 = vmax.f32 %v371_v61, 0.0  ;;  %v404_v17 = vmax.f32 %v372_v62, 0.0  ;;  %v474_v57 = vld [vmem:[%s1176_s25 + $0x88] sm:$0xff]  ;;  %v463_v4 = vld [vmem:[%s1176_s25 + $0x30] sm:$0xff] }
  0x2e   : > { %v389_v18 = vmul.f32 %v1082_v11, %v351_v8  ;;  %v883_v19 = vunpack.c.l.bf16 %v899_v6  ;;  %v419_v20 = vmax.f32 %v387_v2, 0.0  ;;  %v420_v21 = vmax.f32 %v388_v3, 0.0  ;;  %945 = vmatmul.mubr.bf16.gmra.mrb[4].mxu0 %v428_v53  ;;  %v477_v8 = vld [vmem:[%s1176_s25 + $0xa0] sm:$0xff] }
  0x2f   : > { %v390_v22 = vmul.f32 %v1082_v11, %v352_v15  ;;  %v884_v23 = vunpack.c.h.bf16 %v899_v6  ;;  %961 = vmatmul.mubr.bf16.gmra.mrb[4].mxu1 %v436_v1  ;;  %v405_v24 = vmax.f32 %v373_v7, 0.0  ;;  %v337_v25 = vsub.f32 %v851_v9, %v1074_v5  ;;  %948 = vmatprep.mubr.bf16.mxu0 %v429_v12  ;;  %v479_v6 = vld [vmem:[%s1176_s25 + $0xb0] sm:$0xff]  ;;  %v461_v7 = vld [vmem:[%s1176_s25 + $0x20] sm:$0xff]  ;;  %v464_v12 = vld [vmem:[%s1176_s25 + $0x38] sm:$0xff] }
  0x30   : > { %v338_v26 = vsub.f32 %v852_v10, %v1074_v5  ;;  %v353_v27 = vsub.f32 %v883_v19, %v1074_v5  ;;  %964 = vmatprep.mubr.bf16.mxu1 %v437_v13  ;;  %v406_v28 = vmax.f32 %v374_v14, 0.0  ;;  %v421_v29 = vmax.f32 %v389_v18, 0.0  ;;  %v480_v13 = vld [vmem:[%s1176_s25 + $0xb8] sm:$0xff]  ;;  %v462_v18 = vld [vmem:[%s1176_s25 + $0x28] sm:$0xff] }
  0x31   : > { %v422_v30 = vmax.f32 %v390_v22, 0.0  ;;  %v354_v31 = vsub.f32 %v884_v23, %v1074_v5  ;;  %v430_v32 = vpack.c.bf16 %v404_v17, %v403_v16  ;;  %v438_v33 = vpack.c.bf16 %v420_v21, %v419_v20  ;;  %v478_v19 = vld [vmem:[%s1176_s25 + $0xa8] sm:$0xff] }
  0x32   : > { %v375_v34 = vmul.f32 %v1082_v11, %v337_v25  ;;  %v376_v35 = vmul.f32 %v1082_v11, %v338_v26  ;;  %v391_v36 = vmul.f32 %v1082_v11, %v353_v27  ;;  %v431_v38 = vpack.c.bf16 %v406_v28, %v405_v24 }
  0x33   : > { %v392_v37 = vmul.f32 %v1082_v11, %v354_v31  ;;  %v439_v39 = vpack.c.bf16 %v422_v30, %v421_v29  ;;  %v459_v11 = vld [vmem:[%s1176_s25 + $0x10] sm:$0xff] }
  0x34   : > { %v407_v40 = vmax.f32 %v375_v34, 0.0  ;;  %v408_v41 = vmax.f32 %v376_v35, 0.0  ;;  %v423_v42 = vmax.f32 %v391_v36, 0.0  ;;  %v467_v30 = vld [vmem:[%s1176_s25 + $0x50] sm:$0xff]  ;;  %v468_v36 = vld [vmem:[%s1176_s25 + $0x58] sm:$0xff] }
  0x35   : > { %v424_v43 = vmax.f32 %v392_v37, 0.0  ;;  %v483_v31 = vld [vmem:[%s1176_s25 + $0xd0] sm:$0xff]  ;;  %v484_v37 = vld [vmem:[%s1176_s25 + $0xd8] sm:$0xff] }
  0x36   : > { %949 = vmatmul.mubr.bf16.gmra.mrb[8].mxu0 %v430_v32  ;;  %v432_v5 = vpack.c.bf16 %v408_v41, %v407_v40  ;;  %v465_v32 = vld [vmem:[%s1176_s25 + $0x40] sm:$0xff] }
  0x37   : > { %965 = vmatmul.mubr.bf16.gmra.mrb[8].mxu1 %v438_v33  ;;  %952 = vmatprep.mubr.bf16.mxu0 %v431_v38  ;;  %v440_v44 = vpack.c.bf16 %v424_v43, %v423_v42  ;;  %v481_v33 = vld [vmem:[%s1176_s25 + $0xc0] sm:$0xff]  ;;  %v466_v42 = vld [vmem:[%s1176_s25 + $0x48] sm:$0xff] }
  0x38   : > { %968 = vmatprep.mubr.bf16.mxu1 %v439_v39  ;;  %v482_v43 = vld [vmem:[%s1176_s25 + $0xc8] sm:$0xff] }
  0x3e   : > { %953 = vmatmul.mubr.bf16.gmra.mrb[12].mxu0 %v432_v5 }
  0x3f   : > { %969 = vmatmul.mubr.bf16.gmra.mrb[12].mxu1 %v440_v44 }
  0xf9   : > { %v942_v48 = vpop.f32.mrb[0].mxu0 }
  0xfa   : > { %v958_v49 = vpop.f32.mrb[0].mxu1  ;;  %v580_v52 = vadd.f32 %v942_v48, %v459_v11  ;;  %v571_v54 = vpop.f32.mrb[1].mxu0 }
  0xfb   : > { %v644_v53 = vadd.f32 %v958_v49, %v475_v45  ;;  %v635_v55 = vpop.f32.mrb[1].mxu1  ;;  %v572_v58 = vadd.f32 %v571_v54, %v457_v46  ;;  %v943_v60 = vpop.f32.mrb[2].mxu0  ;;  %v469_v54 = vld [vmem:[%s1176_s25 + $0x60] sm:$0xff] }
  0xfc   : > { %v636_v59 = vadd.f32 %v635_v55, %v473_v47  ;;  %v959_v61 = vpop.f32.mrb[2].mxu1  ;;  %700 = vst [vmem:[%s1185_s22 + $0x10] sm:$0xff] %v580_v52  ;;  %v583_v62 = vadd.f32 %v943_v60, %v460_v50  ;;  %v574_v0 = vpop.f32.mrb[3].mxu0  ;;  %v471_v52 = vld [vmem:[%s1176_s25 + $0x70] sm:$0xff]  ;;  %v485_v55 = vld [vmem:[%s1176_s25 + $0xe0] sm:$0xff] }
  0xfd   : > { %716 = vst [vmem:[%s1185_s22 + $0x90] sm:$0xff] %v644_v53  ;;  %v647_v63 = vadd.f32 %v959_v61, %v476_v51  ;;  %v638_v1 = vpop.f32.mrb[3].mxu1  ;;  %698 = vst [vmem:[%s1185_s22] sm:$0xff] %v572_v58  ;;  %v575_v2 = vadd.f32 %v574_v0, %v458_v56  ;;  %v487_v53 = vld [vmem:[%s1176_s25 + $0xf0] sm:$0xff]  ;;  %v472_v58 = vld [vmem:[%s1176_s25 + $0x78] sm:$0xff] }
  0xfe   : > { %714 = vst [vmem:[%s1185_s22 + $0x80] sm:$0xff] %v636_v59  ;;  %v639_v3 = vadd.f32 %v638_v1, %v474_v57  ;;  %701 = vst [vmem:[%s1185_s22 + $0x18] sm:$0xff] %v583_v62  ;;  %v488_v59 = vld [vmem:[%s1176_s25 + $0xf8] sm:$0xff]  ;;  %v470_v0 = vld [vmem:[%s1176_s25 + $0x68] sm:$0xff] }
  0xff   : > { %717 = vst [vmem:[%s1185_s22 + $0x98] sm:$0xff] %v647_v63  ;;  %699 = vst [vmem:[%s1185_s22 + $0x8] sm:$0xff] %v575_v2  ;;  %v486_v1 = vld [vmem:[%s1176_s25 + $0xe8] sm:$0xff] }
 0x100   : > { %715 = vst [vmem:[%s1185_s22 + $0x88] sm:$0xff] %v639_v3 }
 0x101   : > { %v946_v9 = vpop.f32.mrb[4].mxu0 }
 0x102   : > { %v962_v10 = vpop.f32.mrb[4].mxu1  ;;  %v596_v14 = vadd.f32 %v946_v9, %v463_v4  ;;  %v587_v16 = vpop.f32.mrb[5].mxu0 }
 0x103   : > { %v660_v15 = vadd.f32 %v962_v10, %v479_v6  ;;  %v651_v17 = vpop.f32.mrb[5].mxu1  ;;  %v588_v20 = vadd.f32 %v587_v16, %v461_v7  ;;  %v947_v22 = vpop.f32.mrb[6].mxu0 }
 0x104   : > { %v652_v21 = vadd.f32 %v651_v17, %v477_v8  ;;  %v963_v23 = vpop.f32.mrb[6].mxu1  ;;  %704 = vst [vmem:[%s1185_s22 + $0x30] sm:$0xff] %v596_v14  ;;  %v599_v24 = vadd.f32 %v947_v22, %v464_v12  ;;  %v590_v26 = vpop.f32.mrb[7].mxu0 }
 0x105   : > { %720 = vst [vmem:[%s1185_s22 + $0xb0] sm:$0xff] %v660_v15  ;;  %v663_v25 = vadd.f32 %v963_v23, %v480_v13  ;;  %v654_v27 = vpop.f32.mrb[7].mxu1  ;;  %702 = vst [vmem:[%s1185_s22 + $0x20] sm:$0xff] %v588_v20  ;;  %v591_v28 = vadd.f32 %v590_v26, %v462_v18 }
 0x106   : > { %718 = vst [vmem:[%s1185_s22 + $0xa0] sm:$0xff] %v652_v21  ;;  %v655_v29 = vadd.f32 %v654_v27, %v478_v19  ;;  %705 = vst [vmem:[%s1185_s22 + $0x38] sm:$0xff] %v599_v24 }
 0x107   : > { %721 = vst [vmem:[%s1185_s22 + $0xb8] sm:$0xff] %v663_v25  ;;  %703 = vst [vmem:[%s1185_s22 + $0x28] sm:$0xff] %v591_v28 }
 0x108   : > { %719 = vst [vmem:[%s1185_s22 + $0xa8] sm:$0xff] %v655_v29 }
 0x109   : > { %v950_v34 = vpop.f32.mrb[8].mxu0 }
 0x10a   : > { %v966_v35 = vpop.f32.mrb[8].mxu1  ;;  %v612_v38 = vadd.f32 %v950_v34, %v467_v30  ;;  %v603_v40 = vpop.f32.mrb[9].mxu0 }
 0x10b   : > { %v676_v39 = vadd.f32 %v966_v35, %v483_v31  ;;  %v667_v41 = vpop.f32.mrb[9].mxu1  ;;  %v604_v5 = vadd.f32 %v603_v40, %v465_v32  ;;  %v951_v11 = vpop.f32.mrb[10].mxu0 }
 0x10c   : > { %v668_v44 = vadd.f32 %v667_v41, %v481_v33  ;;  %v967_v45 = vpop.f32.mrb[10].mxu1  ;;  %708 = vst [vmem:[%s1185_s22 + $0x50] sm:$0xff] %v612_v38  ;;  %v615_v46 = vadd.f32 %v951_v11, %v468_v36  ;;  %v606_v48 = vpop.f32.mrb[11].mxu0 }
 0x10d   : > { %724 = vst [vmem:[%s1185_s22 + $0xd0] sm:$0xff] %v676_v39  ;;  %v679_v47 = vadd.f32 %v967_v45, %v484_v37  ;;  %v670_v49 = vpop.f32.mrb[11].mxu1  ;;  %706 = vst [vmem:[%s1185_s22 + $0x40] sm:$0xff] %v604_v5  ;;  %v607_v50 = vadd.f32 %v606_v48, %v466_v42 }
 0x10e   : > { %722 = vst [vmem:[%s1185_s22 + $0xc0] sm:$0xff] %v668_v44  ;;  %v671_v51 = vadd.f32 %v670_v49, %v482_v43  ;;  %709 = vst [vmem:[%s1185_s22 + $0x58] sm:$0xff] %v615_v46 }
 0x10f   : > { %725 = vst [vmem:[%s1185_s22 + $0xd8] sm:$0xff] %v679_v47  ;;  %707 = vst [vmem:[%s1185_s22 + $0x48] sm:$0xff] %v607_v50 }
 0x110   : > { %723 = vst [vmem:[%s1185_s22 + $0xc8] sm:$0xff] %v671_v51 }
 0x111   : > { %v954_v56 = vpop.f32.mrb[12].mxu0 }
 0x112   : > { %v970_v57 = vpop.f32.mrb[12].mxu1  ;;  %v628_v60 = vadd.f32 %v954_v56, %v471_v52  ;;  %v619_v62 = vpop.f32.mrb[13].mxu0 }
 0x113   : > { %v692_v61 = vadd.f32 %v970_v57, %v487_v53  ;;  %v683_v63 = vpop.f32.mrb[13].mxu1  ;;  %v620_v2 = vadd.f32 %v619_v62, %v469_v54  ;;  %v955_v4 = vpop.f32.mrb[14].mxu0 }
 0x114   : > { %v684_v3 = vadd.f32 %v683_v63, %v485_v55  ;;  %v971_v6 = vpop.f32.mrb[14].mxu1  ;;  %712 = vst [vmem:[%s1185_s22 + $0x70] sm:$0xff] %v628_v60  ;;  %v631_v7 = vadd.f32 %v955_v4, %v472_v58  ;;  %v622_v9 = vpop.f32.mrb[15].mxu0 }
 0x115   : > { %728 = vst [vmem:[%s1185_s22 + $0xf0] sm:$0xff] %v692_v61  ;;  %v695_v8 = vadd.f32 %v971_v6, %v488_v59  ;;  %v686_v10 = vpop.f32.mrb[15].mxu1  ;;  %710 = vst [vmem:[%s1185_s22 + $0x60] sm:$0xff] %v620_v2  ;;  %v623_v12 = vadd.f32 %v622_v9, %v470_v0 }
 0x116   : > { %726 = vst [vmem:[%s1185_s22 + $0xe0] sm:$0xff] %v684_v3  ;;  %v687_v13 = vadd.f32 %v686_v10, %v486_v1  ;;  %713 = vst [vmem:[%s1185_s22 + $0x78] sm:$0xff] %v631_v7 }
 0x117   : > { %729 = vst [vmem:[%s1185_s22 + $0xf8] sm:$0xff] %v695_v8  ;;  %711 = vst [vmem:[%s1185_s22 + $0x68] sm:$0xff] %v623_v12 }
 0x118   : > { %727 = vst [vmem:[%s1185_s22 + $0xe8] sm:$0xff] %v687_v13 }
 0x119 PF: > { %s15_s18 = sadd.s32 1, %s1010_s18  }
 0x11a   : > { %p12_p4 = scmp.ge.s32.totalorder %s15_s18, 4  }
 0x11c   :  { %14 = sbr.rel (!%p12_p4) target bundleno = 1 (0x1), region = 73 }

// kernel: preact_bottleneck_forward.6
= control target key start
LH: loop header
LB: loop body
LE: loop exit
PB: predicated region body
PF: predicated region fallthrough
CT: control target
= control target key end

     0   :  { %s3583_s18 = smov 0   ;;  %s4760_s0 = inlined_call_operand.vmem [shape: bf16[2,18,18,128], index: 0, kind: input, shape index: {}]   ;;  %s4761_s1 = inlined_call_operand.vmem [shape: f32[1,128], index: 1, kind: input, shape index: {}]   ;;  %s4762_s2 = inlined_call_operand.vmem [shape: f32[1,128], index: 2, kind: input, shape index: {}]   ;;  %s4763_s3 = inlined_call_operand.vmem [shape: bf16[1152,128], index: 3, kind: input, shape index: {}]   ;;  %s4764_s4 = inlined_call_operand.vmem [shape: bf16[2,16,16,128], index: 4, kind: output, shape index: {0}]   ;;  %s4765_s5 = inlined_call_operand.vmem [shape: f32[2,2,128], index: 5, kind: output, shape index: {1}]  }
   0x1 LB: > { %s2637_s19 = sadd.s32 4294967295, %s3551_s18   ;;  %p2641_p0 = scmp.ge.s32.totalorder %s3551_s18, 1  ;;  %s3551_s18 = sphi %s3583_s18, %s16_s18  }
   0x2   : > { %p190_p1 = scmp.lt.s32.totalorder %s3551_s18, 3 }
   0x4   : > { %p191_p2 = pnand %p2641_p0, %p190_p1 }
   0x5   : > { %v3471_v0 = vld [vmem:[%s4763_s3 + $0x40] sm:$0xff] (!%p191_p2)   ;;  %p222_p3 = scmp.lt.s32.totalorder (!%p191_p2), %s2637_s19, 1  ;;  %v3473_v2 = vld [vmem:[%s4763_s3 + $0x48] sm:$0xff] (!%p191_p2)   ;;  %v3475_v4 = vld [vmem:[%s4763_s3 + $0x50] sm:$0xff] (!%p191_p2)   ;;  %vm557_vm0 = vsmask.f32 (!%p191_p2), 7424 }
   0x6   : > { %194 = sbr.rel (%p191_p2) target bundleno = 564 (0x234), region = 36  ;;  %v3472_v1 = vld [vmem:[%s4763_s3] sm:$0xff] (!%p191_p2)   ;;  %2926 = vmatprep.subr.bf16.mxu0 (!%p191_p2), %v3471_v0  ;;  %3446 = vmatprep.subr.bf16.mxu1 (!%p191_p2), %v3471_v0  ;;  %v3474_v3 = vld [vmem:[%s4763_s3 + $0x8] sm:$0xff] (!%p191_p2)   ;;  %v3476_v5 = vld [vmem:[%s4763_s3 + $0x10] sm:$0xff] (!%p191_p2)   ;;  %vm798_vm1 = vcmask (!%p191_p2), 1046528   ;;  %vm2548_vm2 = vcmask (!%p191_p2), 1040384  }
   0x7   : > { %2927 = vmatpush3.bf16.msra.mxu0 (!%p191_p2), %v3472_v1  ;;  %3454 = vmatpush3.bf16.msra.mxu1 (!%p191_p2), %v3472_v1  ;;  %v3477_v6 = vld [vmem:[%s4763_s3 + $0x58] sm:$0xff] (!%p191_p2)   ;;  %v3479_v8 = vld [vmem:[%s4763_s3 + $0x60] sm:$0xff] (!%p191_p2)   ;;  %v3481_v10 = vld [vmem:[%s4763_s3 + $0x68] sm:$0xff] (!%p191_p2)  }
   0x8   : > { %2928 = vmatprep.subr.bf16.mxu0 (!%p191_p2), %v3473_v2  ;;  %3447 = vmatprep.subr.bf16.mxu1 (!%p191_p2), %v3473_v2  ;;  %v3478_v7 = vld [vmem:[%s4763_s3 + $0x18] sm:$0xff] (!%p191_p2)   ;;  %v3480_v9 = vld [vmem:[%s4763_s3 + $0x20] sm:$0xff] (!%p191_p2)   ;;  %v3482_v22 = vld [vmem:[%s4763_s3 + $0x28] sm:$0xff] (!%p191_p2)  }
   0x9   : > { %v3635_v11 = vld [vmem:[%s4761_s1] ss:$0 sm:$0xff] (!%p191_p2)  ;;  %v3483_v26 = vld [vmem:[%s4763_s3 + $0x70] sm:$0xff] (!%p191_p2)   ;;  %v3485_v34 = vld [vmem:[%s4763_s3 + $0x78] sm:$0xff] (!%p191_p2)  }
   0xa   : > { %v3641_v13 = vld [vmem:[%s4762_s2] ss:$0 sm:$0xff] (!%p191_p2)  ;;  %v3484_v30 = vld [vmem:[%s4763_s3 + $0x30] sm:$0xff] (!%p191_p2)   ;;  %v3486_v45 = vld [vmem:[%s4763_s3 + $0x38] sm:$0xff] (!%p191_p2)  }
   0xb   : > { %2929 = vmatpush3.bf16.msra.mxu0 (!%p191_p2), %v3474_v3  ;;  %3455 = vmatpush3.bf16.msra.mxu1 (!%p191_p2), %v3474_v3  ;;  %v3487_v54 = vld [vmem:[%s4763_s3 + $0xc0] sm:$0xff] (!%p191_p2)  }
   0xc   : > { %2930 = vmatprep.subr.bf16.mxu0 (!%p191_p2), %v3475_v4  ;;  %3448 = vmatprep.subr.bf16.mxu1 (!%p191_p2), %v3475_v4  ;;  %v3488_v0 = vld [vmem:[%s4763_s3 + $0x140] sm:$0xff] (!%p191_p2)  }
   0xd   : > { %s4767_s19 = smov (!%p222_p3, %s2637_s19), 1 }
   0xe   : > { %s3462_s9 = smul.u32 216, %s4767_s19  ;;  %s2645_s24 = sshll.u32 %s4767_s19, 1 }
   0xf   : > { %2931 = vmatpush3.bf16.msra.mxu0 %v3476_v5  ;;  %3456 = vmatpush3.bf16.msra.mxu1 %v3476_v5  ;;  %s235_s27 = scalar_lea.vmem %s4765_s5, %s2645_s24 }
  0x10   : > { %2932 = vmatprep.subr.bf16.mxu0 %v3477_v6  ;;  %3449 = vmatprep.subr.bf16.mxu1 %v3477_v6  ;;  %s3624_s16 = scalar_lea.vmem %s4760_s0, %s3462_s9 }
  0x11   : > { %v2788_v12 = vld [vmem:[%s3624_s16] sm:$0xff]   ;;  %v241_v16 = vld [vmem:[%s3624_s16 + $0x8] sm:$0x1]  ;;  %v2908_v17 = vld [vmem:[%s3624_s16 + $0x90] sm:$0xff]  }
  0x12   : > { %v2789_v14 = vunpack.c.l.bf16 %v2788_v12  ;;  %v2790_v15 = vunpack.c.h.bf16 %v2788_v12  ;;  %v295_v18 = vunpack.c.l.bf16 %v241_v16  ;;  %v2813_v19 = vunpack.c.l.bf16 %v2908_v17  ;;  %v277_v21 = vld [vmem:[%s3624_s16 + $0x98] sm:$0x1]  ;;  %v242_v44 = vld [vmem:[%s3624_s16 + $0xc] sm:$0xff]   ;;  %v244_v48 = vld [vmem:[%s3624_s16 + $0x14] sm:$0x1] }
  0x13   : > { %2933 = vmatpush3.bf16.msra.mxu0 %v3478_v7  ;;  %3457 = vmatpush3.bf16.msra.mxu1 %v3478_v7  ;;  %v2814_v20 = vunpack.c.h.bf16 %v2908_v17  ;;  %v331_v25 = vunpack.c.l.bf16 %v277_v21  ;;  %v296_v49 = vunpack.c.l.bf16 %v242_v44  ;;  %v297_v50 = vunpack.c.h.bf16 %v242_v44  ;;  %v278_v51 = vld [vmem:[%s3624_s16 + $0x9c] sm:$0xff]   ;;  %v280_v60 = vld [vmem:[%s3624_s16 + $0xa4] sm:$0x1]  ;;  %v2909_v44 = vld [vmem:[%s3624_s16 + $0xa8] sm:$0xff]  }
  0x14   : > { %2934 = vmatprep.subr.bf16.mxu0 %v3479_v8  ;;  %3450 = vmatprep.subr.bf16.mxu1 %v3479_v8  ;;  %v353_v23 = vsub.f32 %v2789_v14, %v3635_v11  ;;  %v354_v24 = vsub.f32 %v2790_v15, %v3635_v11  ;;  %v355_v27 = vsub.f32 %v295_v18, %v3635_v11  ;;  %v298_v55 = vunpack.c.l.bf16 %v244_v48  ;;  %v3490_v14 = vld [vmem:[%s4763_s3 + $0x100] sm:$0xff]   ;;  %v2903_v21 = vld [vmem:[%s3624_s16 + $0x18] sm:$0xff]  }
  0x15   : > { %v389_v28 = vsub.f32 %v2813_v19, %v3635_v11  ;;  %v390_v29 = vsub.f32 %v2814_v20, %v3635_v11  ;;  %v391_v33 = vsub.f32 %v331_v25, %v3635_v11  ;;  %v356_v59 = vsub.f32 %v296_v49, %v3635_v11 }
  0x16   : > { %v413_v31 = vmul.f32 %v3641_v13, %v353_v23  ;;  %v414_v32 = vmul.f32 %v3641_v13, %v354_v24  ;;  %v415_v35 = vmul.f32 %v3641_v13, %v355_v27  ;;  %v332_v1 = vunpack.c.l.bf16 %v278_v51  ;;  %v3489_v23 = vld [vmem:[%s4763_s3 + $0x80] sm:$0xff]   ;;  %v3496_v27 = vld [vmem:[%s4763_s3 + $0x148] sm:$0xff]  }
  0x17   : > { %2935 = vmatpush3.bf16.msra.mxu0 %v3480_v9  ;;  %3458 = vmatpush3.bf16.msra.mxu1 %v3480_v9  ;;  %v449_v36 = vmul.f32 %v3641_v13, %v389_v28  ;;  %v450_v37 = vmul.f32 %v3641_v13, %v390_v29  ;;  %v451_v40 = vmul.f32 %v3641_v13, %v391_v33  ;;  %v333_v9 = vunpack.c.h.bf16 %v278_v51  ;;  %v247_v28 = vld [vmem:[%s3624_s16 + $0x20] sm:$0x1]  ;;  %v3493_v51 = vld [vmem:[%s4763_s3 + $0xd0] sm:$0xff]  }
  0x18   : > { %2936 = vmatprep.subr.bf16.mxu0 %v3481_v10  ;;  %3451 = vmatprep.subr.bf16.mxu1 %v3481_v10  ;;  %v467_v38 = vmax.f32 %v413_v31, 0.0  ;;  %v468_v39 = vmax.f32 %v414_v32, 0.0  ;;  %v469_v41 = vmax.f32 %v415_v35, 0.0  ;;  %v357_v4 = vsub.f32 %v297_v50, %v3635_v11 }
  0x19   : > { %v503_v42 = vmax.f32 %v449_v36, 0.0  ;;  %v504_v43 = vmax.f32 %v450_v37, 0.0  ;;  %v505_v47 = vmax.f32 %v451_v40, 0.0  ;;  %v358_v5 = vsub.f32 %v298_v55, %v3635_v11 }
  0x1a   : > { %v3674_v46 = vpack.c.bf16 %v468_v39, %v467_v38  ;;  %v3678_v52 = vpack.c.bf16 %v469_v41, %v469_v41  ;;  %v416_v8 = vmul.f32 %v3641_v13, %v356_v59  ;;  %v417_v15 = vmul.f32 %v3641_v13, %v357_v4  ;;  %v3498_v38 = vld [vmem:[%s4763_s3 + $0x108] sm:$0xff]  }
  0x1b   : > { %2937 = vmatpush3.bf16.msra.mxu0 %v3482_v22  ;;  %3459 = vmatpush3.bf16.msra.mxu1 %v3482_v22  ;;  %v3680_v53 = vpack.c.bf16 %v504_v43, %v503_v42  ;;  %v3687_v58 = vpack.c.bf16 %v505_v47, %v505_v47  ;;  %v418_v16 = vmul.f32 %v3641_v13, %v358_v5  ;;  %v334_v19 = vunpack.c.l.bf16 %v280_v60  ;;  %v3504_v5 = vld [vmem:[%s4763_s3 + $0x150] sm:$0xff]  }
  0x1c   : > { %2938 = vmatprep.subr.bf16.mxu0 %v3483_v26  ;;  %3452 = vmatprep.subr.bf16.mxu1 %v3483_v26  ;;  %v559_v56 = vshrl.u32 %v3674_v46, 16  ;;  %v561_v57 = vshll.u32 %v3674_v46, 16  ;;  %v566_v61 = vshll.u32 %v3678_v52, 16  ;;  %v470_v18 = vmax.f32 %v416_v8, 0.0 }
  0x1d   : > { %v703_v62 = vshrl.u32 %v3680_v53, 16  ;;  %v705_v63 = vshll.u32 %v3680_v53, 16  ;;  %v710_v3 = vshll.u32 %v3687_v58, 16  ;;  %v392_v20 = vsub.f32 %v332_v1, %v3635_v11  ;;  %v3495_v1 = vld [vmem:[%s4763_s3 + $0xd8] sm:$0xff]  }
  0x1e   : > { %v563_v2 = vrot.slane %v561_v57, 1  ;;  %v568_v6 = vrot.slane %v566_v61, 1  ;;  %v471_v24 = vmax.f32 %v417_v15, 0.0  ;;  %v472_v25 = vmax.f32 %v418_v16, 0.0  ;;  %v3494_v61 = vld [vmem:[%s4763_s3 + $0x90] sm:$0xff]   ;;  %v248_v16 = vld [vmem:[%s3624_s16 + $0x24] sm:$0xff]  }
  0x1f   : > { %2939 = vmatpush3.bf16.msra.mxu0 %v3484_v30  ;;  %3460 = vmatpush3.bf16.msra.mxu1 %v3484_v30  ;;  %v707_v7 = vrot.slane %v705_v63, 1  ;;  %v712_v12 = vrot.slane %v710_v3, 1  ;;  %v393_v26 = vsub.f32 %v333_v9, %v3635_v11  ;;  %v3491_v30 = vld [vmem:[%s4763_s3 + $0xc8] sm:$0xff]   ;;  %v394_v31 = vsub.f32 %v334_v19, %v3635_v11  ;;  %v283_v63 = vld [vmem:[%s3624_s16 + $0xb0] sm:$0x1] }
  0x20   : > { %2940 = vmatprep.subr.bf16.mxu0 %v3485_v34  ;;  %3453 = vmatprep.subr.bf16.mxu1 %v3485_v34  ;;  %v564_v10 = vor.u32 %v563_v2, %v559_v56  ;;  %v452_v32 = vmul.f32 %v3641_v13, %v392_v20  ;;  %v2793_v33 = vunpack.c.l.bf16 %v2903_v21  ;;  %v3492_v34 = vld [vmem:[%s4763_s3 + $0x88] sm:$0xff]   ;;  %v3730_v35 = vpack.c.bf16 %v471_v24, %v470_v18  ;;  %v3497_v24 = vld [vmem:[%s4763_s3 + $0x98] sm:$0xff]  }
  0x21   : > { %v708_v17 = vor.u32 %v707_v7, %v703_v62  ;;  %v3732_v36 = vpack.c.bf16 %v472_v25, %v472_v25  ;;  %v453_v37 = vmul.f32 %v3641_v13, %v393_v26  ;;  %v2794_v39 = vunpack.c.h.bf16 %v2903_v21  ;;  %v250_v21 = vld [vmem:[%s3624_s16 + $0x2c] sm:$0x1] }
  0x22   : > { %v569_v22 = vsel %vm557_vm0, %v564_v10, %v568_v6  ;;  %v454_v40 = vmul.f32 %v3641_v13, %v394_v31  ;;  %v506_v41 = vmax.f32 %v452_v32, 0.0  ;;  %v301_v42 = vunpack.c.l.bf16 %v247_v28 }
  0x23   : > { %2941 = vmatpush3.bf16.msra.mxu0 %v3486_v45  ;;  %3461 = vmatpush3.bf16.msra.mxu1 %v3486_v45  ;;  %v3718_v29 = vsel %vm557_vm0, %v708_v17, %v712_v12  ;;  %v359_v43 = vsub.f32 %v2793_v33, %v3635_v11  ;;  %v571_v45 = vshrl.u32 %v3730_v35, 16  ;;  %v573_v47 = vshll.u32 %v3730_v35, 16 }
  0x24   : > { %3038 = vmatprep.subr.bf16.mxu1 %v3487_v54  ;;  %3150 = vmatprep.subr.bf16.mxu0 %v3488_v0  ;;  %v578_v48 = vshll.u32 %v3732_v36, 16  ;;  %v507_v49 = vmax.f32 %v453_v37, 0.0  ;;  %v508_v50 = vmax.f32 %v454_v40, 0.0  ;;  %v360_v54 = vsub.f32 %v2794_v39, %v3635_v11  ;;  %v284_v39 = vld [vmem:[%s3624_s16 + $0xb4] sm:$0xff]  }
  0x25   : > { %1509 = vmatprep.mubr.bf16.mxu0 %v569_v22  ;;  %1605 = vmatprep.mubr.bf16.mxu1 %v3718_v29  ;;  %v361_v55 = vsub.f32 %v301_v42, %v3635_v11  ;;  %v419_v56 = vmul.f32 %v3641_v13, %v359_v43  ;;  %v575_v57 = vrot.slane %v573_v47, 1  ;;  %v2817_v62 = vunpack.c.l.bf16 %v2909_v44  ;;  %v3506_v22 = vld [vmem:[%s4763_s3 + $0x110] sm:$0xff]   ;;  %v3499_v43 = vld [vmem:[%s4763_s3 + $0xe0] sm:$0xff]  }
  0x26   : > { %1510 = vmatmul.mubr.bf16.vlgmr.msra.gmra.mrb[0].mxu0 %v3674_v46  ;;  %1606 = vmatmul.mubr.bf16.vlgmr.msra.gmra.mrb[0].mxu1 %v3680_v53  ;;  %v580_v59 = vrot.slane %v578_v48, 1  ;;  %v3751_v60 = vpack.c.bf16 %v507_v49, %v506_v41  ;;  %v3757_v0 = vpack.c.bf16 %v508_v50, %v508_v50  ;;  %v420_v2 = vmul.f32 %v3641_v13, %v360_v54  ;;  %v3500_v50 = vld [vmem:[%s4763_s3 + $0xa0] sm:$0xff]  }
  0x27   : > { %3151 = vmatpush3.bf16.msra.mxu0 %v3490_v14  ;;  %3039 = vmatpush3.bf16.msra.mxu1 %v3489_v23  ;;  %v421_v3 = vmul.f32 %v3641_v13, %v361_v55  ;;  %v473_v4 = vmax.f32 %v419_v56, 0.0  ;;  %v576_v6 = vor.u32 %v575_v57, %v571_v45  ;;  %v2818_v9 = vunpack.c.h.bf16 %v2909_v44  ;;  %v286_v45 = vld [vmem:[%s3624_s16 + $0xbc] sm:$0x1]  ;;  %v3501_v55 = vld [vmem:[%s4763_s3 + $0xe8] sm:$0xff]  }
  0x28   : > { %3152 = vmatprep.subr.bf16.mxu0 %v3496_v27  ;;  %3040 = vmatprep.subr.bf16.mxu1 %v3491_v30  ;;  %v715_v7 = vshrl.u32 %v3751_v60, 16  ;;  %v717_v8 = vshll.u32 %v3751_v60, 16  ;;  %v722_v10 = vshll.u32 %v3757_v0, 16  ;;  %v474_v12 = vmax.f32 %v420_v2, 0.0  ;;  %v3511_v2 = vld [vmem:[%s4763_s3 + $0x158] sm:$0xff]  }
  0x29   : > { %v475_v14 = vmax.f32 %v421_v3, 0.0  ;;  %v337_v15 = vunpack.c.l.bf16 %v283_v63  ;;  %v3772_v17 = vsel %vm557_vm0, %v576_v6, %v580_v59  ;;  %v395_v19 = vsub.f32 %v2817_v62, %v3635_v11 }
  0x2a   : > { %v719_v18 = vrot.slane %v717_v8, 1  ;;  %v396_v20 = vsub.f32 %v2818_v9, %v3635_v11  ;;  %1517 = vmatprep.mubr.bf16.mxu0 %v3772_v17  ;;  %v724_v23 = vrot.slane %v722_v10, 1  ;;  %v3784_v25 = vpack.c.bf16 %v474_v12, %v473_v4  ;;  %v3502_v9 = vld [vmem:[%s4763_s3 + $0xa8] sm:$0xff]  }
  0x2b   : > { %3153 = vmatpush3.bf16.msra.mxu0 %v3498_v38  ;;  %3041 = vmatpush3.bf16.msra.mxu1 %v3492_v34  ;;  %v3786_v26 = vpack.c.bf16 %v475_v14, %v475_v14  ;;  %v397_v27 = vsub.f32 %v337_v15, %v3635_v11  ;;  %v455_v30 = vmul.f32 %v3641_v13, %v395_v19  ;;  %v302_v32 = vunpack.c.l.bf16 %v248_v16  ;;  %v2904_v14 = vld [vmem:[%s3624_s16 + $0x30] sm:$0xff]   ;;  %v3512_v15 = vld [vmem:[%s4763_s3 + $0x118] sm:$0xff]  }
  0x2c   : > { %3042 = vmatprep.subr.bf16.mxu1 %v3493_v51  ;;  %3154 = vmatprep.subr.bf16.mxu0 %v3504_v5  ;;  %v720_v28 = vor.u32 %v719_v18, %v715_v7  ;;  %v456_v31 = vmul.f32 %v3641_v13, %v396_v20  ;;  %v583_v33 = vshrl.u32 %v3784_v25, 16  ;;  %v585_v34 = vshll.u32 %v3784_v25, 16 }
  0x2d   : > { %v590_v37 = vshll.u32 %v3786_v26, 16  ;;  %v457_v38 = vmul.f32 %v3641_v13, %v397_v27  ;;  %v509_v41 = vmax.f32 %v455_v30, 0.0  ;;  %v303_v44 = vunpack.c.h.bf16 %v248_v16 }
  0x2e   : > { %1518 = vmatmul.mubr.bf16.gmra.mrb[4].mxu0 %v3730_v35  ;;  %v3798_v40 = vsel %vm557_vm0, %v720_v28, %v724_v23  ;;  %v510_v42 = vmax.f32 %v456_v31, 0.0  ;;  %v587_v47 = vrot.slane %v585_v34, 1  ;;  %v304_v51 = vunpack.c.l.bf16 %v250_v21  ;;  %v3503_v21 = vld [vmem:[%s4763_s3 + $0xf0] sm:$0xff]   ;;  %v3513_v34 = vld [vmem:[%s4763_s3 + $0x160] sm:$0xff]  }
  0x2f   : > { %3043 = vmatpush3.bf16.msra.mxu1 %v3494_v61  ;;  %3155 = vmatpush3.bf16.msra.mxu0 %v3506_v22  ;;  %v592_v48 = vrot.slane %v590_v37, 1  ;;  %v511_v49 = vmax.f32 %v457_v38, 0.0  ;;  %v362_v56 = vsub.f32 %v302_v32, %v3635_v11  ;;  %v363_v57 = vsub.f32 %v303_v44, %v3635_v11  ;;  %v253_v22 = vld [vmem:[%s3624_s16 + $0x38] sm:$0x1] }
  0x30   : > { %3044 = vmatprep.subr.bf16.mxu1 %v3495_v1  ;;  %1613 = vmatprep.mubr.bf16.mxu1 %v3798_v40  ;;  %v3809_v54 = vpack.c.bf16 %v510_v42, %v509_v41  ;;  %v338_v59 = vunpack.c.l.bf16 %v284_v39  ;;  %v588_v61 = vor.u32 %v587_v47, %v583_v33  ;;  %v364_v63 = vsub.f32 %v304_v51, %v3635_v11  ;;  %v3515_v47 = vld [vmem:[%s4763_s3 + $0x120] sm:$0xff]   ;;  %v3505_v51 = vld [vmem:[%s4763_s3 + $0xb0] sm:$0xff]  }
  0x31   : > { %1614 = vmatmul.mubr.bf16.gmra.mrb[4].mxu1 %v3751_v60  ;;  %v3816_v62 = vpack.c.bf16 %v511_v49, %v511_v49  ;;  %v339_v1 = vunpack.c.h.bf16 %v284_v39  ;;  %v422_v5 = vmul.f32 %v3641_v13, %v362_v56  ;;  %v423_v6 = vmul.f32 %v3641_v13, %v363_v57  ;;  %3156 = vmatprep.subr.bf16.mxu0 %v3511_v2  ;;  %v3507_v57 = vld [vmem:[%s4763_s3 + $0xf8] sm:$0xff]  }
  0x32   : > { %v727_v3 = vshrl.u32 %v3809_v54, 16  ;;  %v729_v4 = vshll.u32 %v3809_v54, 16  ;;  %v3827_v7 = vsel %vm557_vm0, %v588_v61, %v592_v48  ;;  %v424_v10 = vmul.f32 %v3641_v13, %v364_v63  ;;  %v254_v63 = vld [vmem:[%s3624_s16 + $0x3c] sm:$0xff]  }
  0x33   : > { %3045 = vmatpush3.bf16.msra.mxu1 %v3497_v24  ;;  %v734_v8 = vshll.u32 %v3816_v62, 16  ;;  %v340_v12 = vunpack.c.l.bf16 %v286_v45  ;;  %1525 = vmatprep.mubr.bf16.mxu0 %v3827_v7  ;;  %v476_v18 = vmax.f32 %v422_v5, 0.0  ;;  %v477_v19 = vmax.f32 %v423_v6, 0.0  ;;  %v3518_v6 = vld [vmem:[%s4763_s3 + $0x128] sm:$0xff]  }
  0x34   : > { %3046 = vmatprep.subr.bf16.mxu1 %v3499_v43  ;;  %v731_v16 = vrot.slane %v729_v4, 1  ;;  %v398_v20 = vsub.f32 %v338_v59, %v3635_v11  ;;  %v478_v24 = vmax.f32 %v424_v10, 0.0  ;;  %v399_v27 = vsub.f32 %v339_v1, %v3635_v11  ;;  %3157 = vmatpush3.bf16.msra.mxu0 %v3512_v15  ;;  %v3517_v1 = vld [vmem:[%s4763_s3 + $0x168] sm:$0xff]  }
  0x35   : > { %v736_v23 = vrot.slane %v734_v8, 1  ;;  %v400_v28 = vsub.f32 %v340_v12, %v3635_v11  ;;  %v3847_v31 = vpack.c.bf16 %v477_v19, %v476_v18  ;;  %v2797_v33 = vunpack.c.l.bf16 %v2904_v14  ;;  %3158 = vmatprep.subr.bf16.mxu0 %v3513_v34  ;;  %v3509_v19 = vld [vmem:[%s4763_s3 + $0x1c0] sm:$0xff]  }
  0x36   : > { %1526 = vmatmul.mubr.bf16.gmra.mrb[8].mxu0 %v3784_v25  ;;  %v732_v30 = vor.u32 %v731_v16, %v727_v3  ;;  %v458_v32 = vmul.f32 %v3641_v13, %v398_v20  ;;  %v3853_v37 = vpack.c.bf16 %v478_v24, %v478_v24  ;;  %v459_v38 = vmul.f32 %v3641_v13, %v399_v27  ;;  %v256_v20 = vld [vmem:[%s3624_s16 + $0x44] sm:$0x1] }
  0x37   : > { %3047 = vmatpush3.bf16.msra.mxu1 %v3500_v50  ;;  %v460_v39 = vmul.f32 %v3641_v13, %v400_v28  ;;  %v2798_v41 = vunpack.c.h.bf16 %v2904_v14  ;;  %v595_v43 = vshrl.u32 %v3847_v31, 16  ;;  %v597_v44 = vshll.u32 %v3847_v31, 16 }
  0x38   : > { %3048 = vmatprep.subr.bf16.mxu1 %v3501_v55  ;;  %v3858_v42 = vsel %vm557_vm0, %v732_v30, %v736_v23  ;;  %v512_v45 = vmax.f32 %v458_v32, 0.0  ;;  %v602_v48 = vshll.u32 %v3853_v37, 16  ;;  %v513_v49 = vmax.f32 %v459_v38, 0.0  ;;  %3159 = vmatpush3.bf16.msra.mxu0 %v3515_v47 }
  0x39   : > { %1621 = vmatprep.mubr.bf16.mxu1 %v3858_v42  ;;  %v514_v50 = vmax.f32 %v460_v39, 0.0  ;;  %v307_v55 = vunpack.c.l.bf16 %v253_v22  ;;  %v599_v56 = vrot.slane %v597_v44, 1  ;;  %v365_v59 = vsub.f32 %v2797_v33, %v3635_v11  ;;  %3160 = vmatprep.subr.bf16.mxu0 %v3517_v1  ;;  %v2905_v39 = vld [vmem:[%s3624_s16 + $0x48] sm:$0xff]  }
  0x3a   : > { %1622 = vmatmul.mubr.bf16.gmra.mrb[8].mxu1 %v3809_v54  ;;  %v366_v61 = vsub.f32 %v2798_v41, %v3635_v11  ;;  %v604_v2 = vrot.slane %v602_v48, 1  ;;  %v3880_v3 = vpack.c.bf16 %v513_v49, %v512_v45  ;;  %v308_v24 = vunpack.c.l.bf16 %v254_v63  ;;  %v259_v41 = vld [vmem:[%s3624_s16 + $0x50] sm:$0x1] }
  0x3b   : > { %3049 = vmatpush3.bf16.msra.mxu1 %v3502_v9  ;;  %v3882_v4 = vpack.c.bf16 %v514_v50, %v514_v50  ;;  %v367_v5 = vsub.f32 %v307_v55, %v3635_v11  ;;  %v600_v8 = vor.u32 %v599_v56, %v595_v43  ;;  %v3508_v9 = vld [vmem:[%s4763_s3 + $0xb8] sm:$0xff]   ;;  %v425_v10 = vmul.f32 %v3641_v13, %v365_v59  ;;  %v3521_v48 = vld [vmem:[%s4763_s3 + $0x170] sm:$0xff]  }
  0x3c   : > { %3050 = vmatprep.subr.bf16.mxu1 %v3503_v21  ;;  %v426_v12 = vmul.f32 %v3641_v13, %v366_v61  ;;  %v739_v14 = vshrl.u32 %v3880_v3, 16  ;;  %v741_v15 = vshll.u32 %v3880_v3, 16  ;;  %v309_v32 = vunpack.c.h.bf16 %v254_v63  ;;  %3161 = vmatpush3.bf16.msra.mxu0 %v3518_v6  ;;  %v3522_v61 = vld [vmem:[%s4763_s3 + $0x130] sm:$0xff]  }
  0x3d   : > { %v746_v16 = vshll.u32 %v3882_v4, 16  ;;  %v427_v18 = vmul.f32 %v3641_v13, %v367_v5  ;;  %v3902_v21 = vsel %vm557_vm0, %v600_v8, %v604_v2  ;;  %v479_v22 = vmax.f32 %v425_v10, 0.0  ;;  %3162 = vmatprep.subr.bf16.mxu0 %v3521_v48  ;;  %v260_v10 = vld [vmem:[%s3624_s16 + $0x54] sm:$0xff]  }
  0x3e   : > { %v480_v23 = vmax.f32 %v426_v12, 0.0  ;;  %1533 = vmatprep.mubr.bf16.mxu0 %v3902_v21  ;;  %v743_v27 = vrot.slane %v741_v15, 1  ;;  %v310_v34 = vunpack.c.l.bf16 %v256_v20  ;;  %v368_v38 = vsub.f32 %v308_v24, %v3635_v11 }
  0x3f   : > { %3051 = vmatpush3.bf16.msra.mxu1 %v3505_v51  ;;  %v748_v28 = vrot.slane %v746_v16, 1  ;;  %v481_v30 = vmax.f32 %v427_v18, 0.0  ;;  %1534 = vmatmul.mubr.bf16.gmra.mrb[12].mxu0 %v3847_v31  ;;  %v800_v43 = vrot.slane %v3678_v52, 1  ;;  %v369_v47 = vsub.f32 %v309_v32, %v3635_v11  ;;  %v3526_v32 = vld [vmem:[%s4763_s3 + $0x138] sm:$0xff]  }
  0x40   : > { %3052 = vmatprep.subr.bf16.mxu1 %v3507_v57  ;;  %v3906_v33 = vpack.c.bf16 %v480_v23, %v479_v22  ;;  %v744_v44 = vor.u32 %v743_v27, %v739_v14  ;;  %v370_v51 = vsub.f32 %v310_v34, %v3635_v11  ;;  %v428_v55 = vmul.f32 %v3641_v13, %v368_v38  ;;  %v3525_v22 = vld [vmem:[%s4763_s3 + $0x178] sm:$0xff]   ;;  %v3510_v34 = vld [vmem:[%s4763_s3 + $0x180] sm:$0xff]  }
  0x41   : > { %v3912_v45 = vpack.c.bf16 %v481_v30, %v481_v30  ;;  %v799_v57 = vrot.slane %v3674_v46, 1  ;;  %v429_v59 = vmul.f32 %v3641_v13, %v369_v47  ;;  %v2801_v5 = vunpack.c.l.bf16 %v2905_v39  ;;  %3163 = vmatpush3.bf16.msra.mxu0 %v3522_v61  ;;  %v2906_v61 = vld [vmem:[%s3624_s16 + $0x60] sm:$0xff]  }
  0x42   : > { %v607_v49 = vshrl.u32 %v3906_v33, 16  ;;  %v609_v50 = vshll.u32 %v3906_v33, 16  ;;  %v3923_v52 = vsel %vm557_vm0, %v744_v44, %v748_v28  ;;  %v430_v1 = vmul.f32 %v3641_v13, %v370_v51  ;;  %v262_v28 = vld [vmem:[%s3624_s16 + $0x5c] sm:$0x1]  ;;  %v3514_v44 = vld [vmem:[%s4763_s3 + $0x1c8] sm:$0xff]   ;;  %3164 = vmatprep.subr.bf16.mxu0 %v3525_v22  ;;  %v3972_v51 = vld [vmem:[%s4763_s3 + $0x200] sm:$0xff]  }
  0x43   : > { %3053 = vmatpush3.bf16.msra.mxu1 %v3508_v9  ;;  %v614_v56 = vshll.u32 %v3912_v45, 16  ;;  %1629 = vmatprep.mubr.bf16.mxu1 %v3923_v52  ;;  %v482_v2 = vmax.f32 %v428_v55, 0.0  ;;  %v483_v8 = vmax.f32 %v429_v59, 0.0  ;;  %v2802_v9 = vunpack.c.h.bf16 %v2905_v39  ;;  %v3519_v22 = vld [vmem:[%s4763_s3 + $0x1d0] sm:$0xff]  }
  0x44   : > { %3262 = vmatprep.subr.bf16.mxu1 %v3509_v19  ;;  %v611_v63 = vrot.slane %v609_v50, 1  ;;  %1630 = vmatmul.mubr.bf16.gmra.mrb[12].mxu1 %v3880_v3  ;;  %v313_v46 = vunpack.c.l.bf16 %v259_v41  ;;  %v484_v14 = vmax.f32 %v430_v1, 0.0  ;;  %v371_v15 = vsub.f32 %v2801_v5, %v3635_v11 }
  0x45   : > { %v616_v6 = vrot.slane %v614_v56, 1  ;;  %1670 = vmatprep.mubr.bf16.mxu1 %v3730_v35  ;;  %v801_v16 = vsel %vm798_vm1, %v799_v57, %v800_v43  ;;  %v3938_v18 = vpack.c.bf16 %v483_v8, %v482_v2  ;;  %v372_v19 = vsub.f32 %v2802_v9, %v3635_v11  ;;  %3165 = vmatpush3.bf16.msra.mxu0 %v3526_v32 }
  0x46   : > { %v612_v12 = vor.u32 %v611_v63, %v607_v49  ;;  %v373_v20 = vsub.f32 %v313_v46, %v3635_v11  ;;  %v3948_v24 = vpack.c.bf16 %v484_v14, %v484_v14  ;;  %v431_v27 = vmul.f32 %v3641_v13, %v371_v15  ;;  %3398 = vmatprep.subr.bf16.mxu0 %v3972_v51  ;;  %v265_v14 = vld [vmem:[%s3624_s16 + $0x68] sm:$0x1] }
  0x47   : > { %v314_v30 = vunpack.c.l.bf16 %v260_v10  ;;  %v619_v38 = vshrl.u32 %v3938_v18, 16  ;;  %v621_v39 = vshll.u32 %v3938_v18, 16  ;;  %v432_v41 = vmul.f32 %v3641_v13, %v372_v19 }
  0x48   : > { %v3946_v23 = vsel %vm557_vm0, %v612_v12, %v616_v6  ;;  %v433_v43 = vmul.f32 %v3641_v13, %v373_v20  ;;  %v626_v47 = vshll.u32 %v3948_v24, 16  ;;  %v802_v48 = vrot.slane %v3730_v35, 1  ;;  %v3516_v35 = vld [vmem:[%s4763_s3 + $0x188] sm:$0xff]  }
  0x49   : > { %1541 = vmatprep.mubr.bf16.mxu0 %v3946_v23  ;;  %v485_v49 = vmax.f32 %v431_v27, 0.0  ;;  %v315_v50 = vunpack.c.h.bf16 %v260_v10  ;;  %v623_v55 = vrot.slane %v621_v39, 1  ;;  %v486_v56 = vmax.f32 %v432_v41, 0.0 }
  0x4a   : > { %1542 = vmatmul.mubr.bf16.gmra.mrb[16].mxu0 %v3906_v33  ;;  %v487_v57 = vmax.f32 %v433_v43, 0.0  ;;  %v316_v59 = vunpack.c.l.bf16 %v262_v28  ;;  %v628_v63 = vrot.slane %v626_v47, 1  ;;  %v803_v1 = vrot.slane %v3732_v36, 1  ;;  %v3520_v43 = vld [vmem:[%s4763_s3 + $0x190] sm:$0xff]  }
  0x4b   : > { %v374_v2 = vsub.f32 %v314_v30, %v3635_v11  ;;  %v375_v5 = vsub.f32 %v315_v50, %v3635_v11  ;;  %v624_v6 = vor.u32 %v623_v55, %v619_v38  ;;  %v3982_v8 = vpack.c.bf16 %v486_v56, %v485_v49  ;;  %v268_v50 = vld [vmem:[%s3624_s16 + $0x74] sm:$0x1] }
  0x4c   : > { %1671 = vmatmul.mubr.bf16.vlgmr.msra.gmra.mrb[16].mxu1 %v801_v16  ;;  %v3984_v9 = vpack.c.bf16 %v487_v57, %v487_v57  ;;  %v376_v46 = vsub.f32 %v316_v59, %v3635_v11  ;;  %v2805_v12 = vunpack.c.l.bf16 %v2906_v61  ;;  %v4002_v27 = vsel %vm798_vm1, %v802_v48, %v803_v1 }
  0x4d   : > { %3263 = vmatpush3.bf16.msra.mxu1 %v3510_v34  ;;  %1678 = vmatprep.mubr.bf16.mxu1 %v3784_v25  ;;  %v434_v36 = vmul.f32 %v3641_v13, %v374_v2  ;;  %v435_v10 = vmul.f32 %v3641_v13, %v375_v5  ;;  %v3992_v15 = vsel %vm557_vm0, %v624_v6, %v628_v63  ;;  %v631_v16 = vshrl.u32 %v3982_v8, 16  ;;  %v3523_v5 = vld [vmem:[%s4763_s3 + $0x1d8] sm:$0xff]  }
  0x4e   : > { %v633_v19 = vshll.u32 %v3982_v8, 16  ;;  %v638_v20 = vshll.u32 %v3984_v9, 16  ;;  %3264 = vmatprep.subr.bf16.mxu1 %v3514_v44  ;;  %1549 = vmatprep.mubr.bf16.mxu0 %v3992_v15  ;;  %v436_v28 = vmul.f32 %v3641_v13, %v376_v46  ;;  %v2806_v39 = vunpack.c.h.bf16 %v2906_v61  ;;  %v266_v61 = vld [vmem:[%s3624_s16 + $0x6c] sm:$0xff]  }
  0x4f   : > { %v488_v30 = vmax.f32 %v434_v36, 0.0  ;;  %v489_v32 = vmax.f32 %v435_v10, 0.0  ;;  %v319_v41 = vunpack.c.l.bf16 %v265_v14  ;;  %v805_v44 = vrot.slane %v3784_v25, 1 }
  0x50   : > { %v635_v34 = vrot.slane %v633_v19, 1  ;;  %v640_v38 = vrot.slane %v638_v20, 1  ;;  %v490_v47 = vmax.f32 %v436_v28, 0.0  ;;  %v377_v49 = vsub.f32 %v2805_v12, %v3635_v11  ;;  %v3524_v28 = vld [vmem:[%s4763_s3 + $0x198] sm:$0xff]  }
  0x51   : > { %3265 = vmatpush3.bf16.msra.mxu1 %v3516_v35  ;;  %v4010_v48 = vpack.c.bf16 %v489_v32, %v488_v30  ;;  %v806_v56 = vrot.slane %v3786_v26, 1  ;;  %v378_v57 = vsub.f32 %v2806_v39, %v3635_v11  ;;  %v379_v59 = vsub.f32 %v319_v41, %v3635_v11  ;;  %v4033_v11 = vld [vmem:[%s4762_s2] ss:$0 sm:$0xff] }
  0x52   : > { %1550 = vmatmul.mubr.bf16.gmra.mrb[20].mxu0 %v3938_v18  ;;  %v636_v55 = vor.u32 %v635_v34, %v631_v16  ;;  %3266 = vmatprep.subr.bf16.mxu1 %v3519_v22  ;;  %v4018_v63 = vpack.c.bf16 %v490_v47, %v490_v47  ;;  %v437_v2 = vmul.f32 %v3641_v13, %v377_v49  ;;  %v320_v12 = vunpack.c.l.bf16 %v266_v61  ;;  %v2907_v22 = vld [vmem:[%s3624_s16 + $0x78] sm:$0xff]   ;;  %v4047_v34 = vld [vmem:[%s4761_s1] ss:$0 sm:$0xff] }
  0x53   : > { %v643_v1 = vshrl.u32 %v4010_v48, 16  ;;  %v645_v35 = vshll.u32 %v4010_v48, 16  ;;  %v438_v6 = vmul.f32 %v4033_v11, %v378_v57  ;;  %v439_v46 = vmul.f32 %v4033_v11, %v379_v59  ;;  %v3527_v39 = vld [vmem:[%s4763_s3 + $0x1e0] sm:$0xff]  }
  0x54   : > { %1679 = vmatmul.mubr.bf16.gmra.mrb[20].mxu1 %v4002_v27  ;;  %v4028_v26 = vsel %vm557_vm0, %v636_v55, %v640_v38  ;;  %v650_v36 = vshll.u32 %v4018_v63, 16  ;;  %v491_v10 = vmax.f32 %v437_v2, 0.0  ;;  %v321_v19 = vunpack.c.h.bf16 %v266_v61  ;;  %v271_v61 = vld [vmem:[%s3624_s16 + $0x80] sm:$0x1] }
  0x55   : > { %1557 = vmatprep.mubr.bf16.mxu0 %v4028_v26  ;;  %1686 = vmatprep.mubr.bf16.mxu1 %v3847_v31  ;;  %v647_v13 = vrot.slane %v645_v35, 1  ;;  %v492_v14 = vmax.f32 %v438_v6, 0.0  ;;  %v493_v16 = vmax.f32 %v439_v46, 0.0  ;;  %v322_v20 = vunpack.c.l.bf16 %v268_v50 }
  0x56   : > { %3267 = vmatpush3.bf16.msra.mxu1 %v3520_v43  ;;  %v652_v32 = vrot.slane %v650_v36, 1  ;;  %v380_v38 = vsub.f32 %v320_v12, %v4047_v34  ;;  %v381_v47 = vsub.f32 %v321_v19, %v4047_v34  ;;  %v4061_v50 = vsel %vm798_vm1, %v805_v44, %v806_v56  ;;  %v3529_v44 = vld [vmem:[%s4763_s3 + $0x1a0] sm:$0xff]   ;;  %v3530_v36 = vld [vmem:[%s4763_s3 + $0x1e8] sm:$0xff]  }
  0x57   : > { %v648_v30 = vor.u32 %v647_v13, %v643_v1  ;;  %3268 = vmatprep.subr.bf16.mxu1 %v3523_v5  ;;  %v4053_v41 = vpack.c.bf16 %v492_v14, %v491_v10  ;;  %v4055_v43 = vpack.c.bf16 %v493_v16, %v493_v16  ;;  %v382_v49 = vsub.f32 %v322_v20, %v4047_v34  ;;  %v272_v19 = vld [vmem:[%s3624_s16 + $0x84] sm:$0xff]  }
  0x58   : > { %v440_v57 = vmul.f32 %v4033_v11, %v380_v38  ;;  %v2809_v59 = vunpack.c.l.bf16 %v2907_v22  ;;  %v441_v5 = vmul.f32 %v4033_v11, %v381_v47  ;;  %v808_v56 = vrot.slane %v3847_v31, 1  ;;  %v3532_v47 = vld [vmem:[%s4763_s3 + $0x1a8] sm:$0xff]  }
  0x59   : > { %v4064_v55 = vsel %vm557_vm0, %v648_v30, %v652_v32  ;;  %v655_v1 = vshrl.u32 %v4053_v41, 16  ;;  %v657_v35 = vshll.u32 %v4053_v41, 16  ;;  %v662_v2 = vshll.u32 %v4055_v43, 16 }
  0x5a   : > { %1558 = vmatmul.mubr.bf16.gmra.mrb[24].mxu0 %v3982_v8  ;;  %3269 = vmatpush3.bf16.msra.mxu1 %v3524_v28  ;;  %v442_v6 = vmul.f32 %v4033_v11, %v382_v49  ;;  %v494_v46 = vmax.f32 %v440_v57, 0.0  ;;  %v2810_v13 = vunpack.c.h.bf16 %v2907_v22  ;;  %v495_v14 = vmax.f32 %v441_v5, 0.0 }
  0x5b   : > { %1565 = vmatprep.mubr.bf16.mxu0 %v4064_v55  ;;  %3270 = vmatprep.subr.bf16.mxu1 %v3527_v39  ;;  %v659_v10 = vrot.slane %v657_v35, 1  ;;  %v664_v12 = vrot.slane %v662_v2, 1  ;;  %v325_v16 = vunpack.c.l.bf16 %v271_v61  ;;  %v809_v20 = vrot.slane %v3853_v37, 1  ;;  %v274_v61 = vld [vmem:[%s3624_s16 + $0x8c] sm:$0x1] }
  0x5c   : > { %1687 = vmatmul.mubr.bf16.gmra.mrb[24].mxu1 %v4061_v50  ;;  %v496_v28 = vmax.f32 %v442_v6, 0.0  ;;  %v383_v22 = vsub.f32 %v2809_v59, %v4047_v34  ;;  %v384_v30 = vsub.f32 %v2810_v13, %v4047_v34  ;;  %v4087_v38 = vpack.c.bf16 %v495_v14, %v494_v46 }
  0x5d   : > { %1694 = vmatprep.mubr.bf16.mxu1 %v3906_v33  ;;  %v660_v32 = vor.u32 %v659_v10, %v655_v1  ;;  %v385_v39 = vsub.f32 %v325_v16, %v4047_v34  ;;  %v326_v59 = vunpack.c.l.bf16 %v272_v19  ;;  %v3533_v1 = vld [vmem:[%s4763_s3 + $0x1f0] sm:$0xff]   ;;  %v4109_v6 = vsel %vm798_vm1, %v808_v56, %v809_v20  ;;  %v3536_v20 = vld [vmem:[%s4763_s3 + $0x1f8] sm:$0xff]  }
  0x5e   : > { %3271 = vmatpush3.bf16.msra.mxu1 %v3529_v44  ;;  %v4093_v49 = vpack.c.bf16 %v496_v28, %v496_v28  ;;  %v443_v57 = vmul.f32 %v4033_v11, %v383_v22  ;;  %v444_v37 = vmul.f32 %v4033_v11, %v384_v30  ;;  %v667_v2 = vshrl.u32 %v4087_v38, 16  ;;  %v3535_v28 = vld [vmem:[%s4763_s3 + $0x1b0] sm:$0xff]  }
  0x5f   : > { %3272 = vmatprep.subr.bf16.mxu1 %v3530_v36  ;;  %v4102_v35 = vsel %vm557_vm0, %v660_v32, %v664_v12  ;;  %v669_v5 = vshll.u32 %v4087_v38, 16  ;;  %v445_v44 = vmul.f32 %v4033_v11, %v385_v39  ;;  %v327_v14 = vunpack.c.h.bf16 %v272_v19 }
  0x60   : > { %v674_v46 = vshll.u32 %v4093_v49, 16  ;;  %v497_v13 = vmax.f32 %v443_v57, 0.0  ;;  %v498_v36 = vmax.f32 %v444_v37, 0.0  ;;  %v328_v16 = vunpack.c.l.bf16 %v274_v61 }
  0x61   : > { %v671_v10 = vrot.slane %v669_v5, 1  ;;  %v499_v12 = vmax.f32 %v445_v44, 0.0  ;;  %v386_v56 = vsub.f32 %v326_v59, %v4047_v34  ;;  %v387_v39 = vsub.f32 %v327_v14, %v4047_v34  ;;  %v3538_v44 = vld [vmem:[%s4763_s3 + $0x1b8] sm:$0xff]  }
  0x62   : > { %1566 = vmatmul.mubr.bf16.gmra.mrb[28].mxu0 %v4010_v48  ;;  %3273 = vmatpush3.bf16.msra.mxu1 %v3532_v47  ;;  %v676_v22 = vrot.slane %v674_v46, 1  ;;  %v4116_v30 = vpack.c.bf16 %v498_v36, %v497_v13  ;;  %v388_v47 = vsub.f32 %v328_v16, %v4047_v34  ;;  %v811_v57 = vrot.slane %v3906_v33, 1 }
  0x63   : > { %1573 = vmatprep.mubr.bf16.mxu0 %v4102_v35  ;;  %3274 = vmatprep.subr.bf16.mxu1 %v3533_v1  ;;  %v672_v32 = vor.u32 %v671_v10, %v667_v2  ;;  %v4123_v19 = vpack.c.bf16 %v499_v12, %v499_v12  ;;  %v812_v37 = vrot.slane %v3912_v45, 1  ;;  %v446_v59 = vmul.f32 %v4033_v11, %v386_v56 }
  0x64   : > { %1695 = vmatmul.mubr.bf16.gmra.mrb[28].mxu1 %v4109_v6  ;;  %v681_v61 = vshll.u32 %v4116_v30, 16  ;;  %v679_v1 = vshrl.u32 %v4116_v30, 16  ;;  %v447_v2 = vmul.f32 %v4033_v11, %v387_v39  ;;  %v448_v5 = vmul.f32 %v4033_v11, %v388_v47 }
  0x65   : > { %1702 = vmatprep.mubr.bf16.mxu1 %v3938_v18  ;;  %v4139_v46 = vsel %vm557_vm0, %v672_v32, %v676_v22  ;;  %v686_v45 = vshll.u32 %v4123_v19, 16  ;;  %v500_v36 = vmax.f32 %v446_v59, 0.0  ;;  %v4144_v14 = vsel %vm798_vm1, %v811_v57, %v812_v37 }
  0x66   : > { %3275 = vmatpush3.bf16.msra.mxu1 %v3535_v28  ;;  %v683_v13 = vrot.slane %v681_v61, 1  ;;  %v501_v10 = vmax.f32 %v447_v2, 0.0  ;;  %v502_v12 = vmax.f32 %v448_v5, 0.0  ;;  %v814_v32 = vrot.slane %v3938_v18, 1 }
  0x67   : > { %3276 = vmatprep.subr.bf16.mxu1 %v3536_v20  ;;  %v688_v22 = vrot.slane %v686_v45, 1  ;;  %v815_v39 = vrot.slane %v3948_v24, 1  ;;  %v817_v24 = vrot.slane %v3982_v8, 1  ;;  %v818_v5 = vrot.slane %v3984_v9, 1 }
  0x68   : > { %v4147_v16 = vpack.c.bf16 %v501_v10, %v500_v36  ;;  %v684_v28 = vor.u32 %v683_v13, %v679_v1  ;;  %v4149_v56 = vpack.c.bf16 %v502_v12, %v502_v12  ;;  %v820_v45 = vrot.slane %v4010_v48, 1 }
  0x69   : > { %v4163_v59 = vsel %vm798_vm1, %v814_v32, %v815_v39  ;;  %v4175_v13 = vsel %vm798_vm1, %v817_v24, %v818_v5  ;;  %v821_v36 = vrot.slane %v4018_v63, 1  ;;  %v823_v10 = vrot.slane %v4053_v41, 1  ;;  %v3540_v39 = vld [vmem:[%s4763_s3 + $0x228] sm:$0xff]   ;;  %v2910_v5 = vld [vmem:[%s3624_s16 + $0xc0] sm:$0xff]  }
  0x6a   : > { %1574 = vmatmul.mubr.bf16.gmra.mrb[32].mxu0 %v4053_v41  ;;  %3277 = vmatpush3.bf16.msra.mxu1 %v3538_v44  ;;  %v693_v20 = vshll.u32 %v4147_v16, 16  ;;  %v4157_v47 = vsel %vm557_vm0, %v684_v28, %v688_v22  ;;  %v691_v57 = vshrl.u32 %v4147_v16, 16  ;;  %v698_v61 = vshll.u32 %v4149_v56, 16  ;;  %v3531_v28 = vld [vmem:[%s4763_s3 + $0x208] sm:$0xff]  }
  0x6b   : > { %1581 = vmatprep.mubr.bf16.mxu0 %v4139_v46  ;;  %v4184_v9 = vsel %vm798_vm1, %v820_v45, %v821_v36  ;;  %v824_v12 = vrot.slane %v4055_v43, 1  ;;  %v826_v43 = vrot.slane %v4087_v38, 1  ;;  %v827_v22 = vrot.slane %v4093_v49, 1 }
  0x6c   : > { %1703 = vmatmul.mubr.bf16.gmra.mrb[32].mxu1 %v4144_v14  ;;  %v695_v37 = vrot.slane %v693_v20, 1  ;;  %v700_v2 = vrot.slane %v698_v61, 1  ;;  %v3539_v20 = vld [vmem:[%s4763_s3 + $0x220] sm:$0xff]   ;;  %v829_v49 = vrot.slane %v4116_v30, 1  ;;  %v830_v32 = vrot.slane %v4123_v19, 1 }
  0x6d   : > { %1710 = vmatprep.mubr.bf16.mxu1 %v3982_v8  ;;  %v4195_v63 = vsel %vm798_vm1, %v823_v10, %v824_v12  ;;  %v832_v19 = vrot.slane %v4147_v16, 1  ;;  %v833_v61 = vrot.slane %v4149_v56, 1  ;;  %v835_v56 = vrot.slane %v3680_v53, 1 }
  0x6e   : > { %v696_v1 = vor.u32 %v695_v37, %v691_v57  ;;  %v4226_v57 = vsel %vm798_vm1, %v829_v49, %v830_v32  ;;  %v3541_v37 = vld [vmem:[%s4763_s3 + $0x230] sm:$0xff]   ;;  %v836_v24 = vrot.slane %v3687_v58, 1  ;;  %v2821_v36 = vunpack.c.l.bf16 %v2910_v5 }
  0x6f   : > { %v2822_v10 = vunpack.c.h.bf16 %v2910_v5  ;;  %v838_v12 = vrot.slane %v3751_v60, 1 }
  0x70   : > { %v4171_v44 = vsel %vm557_vm0, %v696_v1, %v700_v2  ;;  %v3542_v1 = vld [vmem:[%s4763_s3 + $0x238] sm:$0xff]   ;;  %v4241_v2 = vsel %vm798_vm1, %v832_v19, %v833_v61  ;;  %v4251_v45 = vsel %vm798_vm1, %v835_v56, %v836_v24  ;;  %v401_v58 = vsub.f32 %v2821_v36, %v4047_v34 }
  0x71   : > { %v844_v19 = vrot.slane %v3880_v3, 1  ;;  %v845_v61 = vrot.slane %v3882_v4, 1 }
  0x72   : > { %1582 = vmatmul.mubr.bf16.gmra.mrb[36].mxu0 %v4087_v38 }
  0x73   : > { %1589 = vmatprep.mubr.bf16.mxu0 %v4157_v47 }
  0x74   : > { %1711 = vmatmul.mubr.bf16.gmra.mrb[36].mxu1 %v4163_v59 }
  0x75   : > { %1718 = vmatprep.mubr.bf16.mxu1 %v4010_v48 }
  0x7a   : > { %1590 = vmatmul.mubr.bf16.gmra.mrb[40].mxu0 %v4116_v30 }
  0x7b   : > { %1597 = vmatprep.mubr.bf16.mxu0 %v4171_v44 }
  0x7c   : > { %1719 = vmatmul.mubr.bf16.gmra.mrb[40].mxu1 %v4175_v13 }
  0x7d   : > { %1726 = vmatprep.mubr.bf16.mxu1 %v4053_v41 }
  0x82   : > { %1598 = vmatmul.mubr.bf16.gmra.mrb[44].mxu0 %v4147_v16 }
  0x83   : > { %1831 = vmatprep.mubr.bf16.mxu0 %v4002_v27  ;;  %v3534_v27 = vld [vmem:[%s4763_s3 + $0x210] sm:$0xff]  }
  0x84   : > { %1727 = vmatmul.mubr.bf16.gmra.mrb[44].mxu1 %v4184_v9 }
  0x85   : > { %1734 = vmatprep.mubr.bf16.mxu1 %v4087_v38 }
  0x8a   : > { %1832 = vmatmul.mubr.bf16.vlgmr.msra.gmra.mrb[48].mxu0 %v3772_v17  ;;  %v3537_v17 = vld [vmem:[%s4763_s3 + $0x218] sm:$0xff]  }
  0x8b   : > { %3399 = vmatpush3.bf16.msra.mxu0 %v3972_v51  ;;  %1839 = vmatprep.mubr.bf16.mxu0 %v4061_v50  ;;  %v4211_v51 = vsel %vm798_vm1, %v826_v43, %v827_v22  ;;  %v461_v22 = vmul.f32 %v4033_v11, %v401_v58 }
  0x8c   : > { %3400 = vmatprep.subr.bf16.mxu0 %v3531_v28  ;;  %1735 = vmatmul.mubr.bf16.gmra.mrb[48].mxu1 %v4195_v63 }
  0x8d   : > { %1742 = vmatprep.mubr.bf16.mxu1 %v4116_v30  ;;  %v515_v49 = vmax.f32 %v461_v22, 0.0 }
  0x8f   : > { %3401 = vmatpush3.bf16.msra.mxu0 %v3531_v28  ;;  %v839_v28 = vrot.slane %v3757_v0, 1  ;;  %v841_v0 = vrot.slane %v3809_v54, 1 }
  0x90   : > { %3402 = vmatprep.subr.bf16.mxu0 %v3534_v27 }
  0x91   : > { %v4262_v43 = vsel %vm798_vm1, %v838_v12, %v839_v28 }
  0x92   : > { %1840 = vmatmul.mubr.bf16.gmra.mrb[52].mxu0 %v3827_v7 }
  0x93   : > { %1847 = vmatprep.mubr.bf16.mxu0 %v4109_v6  ;;  %3403 = vmatpush3.bf16.msra.mxu0 %v3534_v27  ;;  %v402_v27 = vsub.f32 %v2822_v10, %v4047_v34 }
  0x94   : > { %3404 = vmatprep.subr.bf16.mxu0 %v3537_v17  ;;  %1743 = vmatmul.mubr.bf16.gmra.mrb[52].mxu1 %v4211_v51 }
  0x95   : > { %1750 = vmatprep.mubr.bf16.mxu1 %v4147_v16 }
  0x97   : > { %3405 = vmatpush3.bf16.msra.mxu0 %v3537_v17  ;;  %v462_v17 = vmul.f32 %v4033_v11, %v402_v27 }
  0x98   : > { %3406 = vmatprep.subr.bf16.mxu0 %v3539_v20 }
  0x99   : > { %v516_v32 = vmax.f32 %v462_v17, 0.0 }
  0x9a   : > { %1848 = vmatmul.mubr.bf16.gmra.mrb[56].mxu0 %v3902_v21 }
  0x9b   : > { %1855 = vmatprep.mubr.bf16.mxu0 %v4144_v14  ;;  %3407 = vmatpush3.bf16.msra.mxu0 %v3539_v20  ;;  %v842_v20 = vrot.slane %v3816_v62, 1  ;;  %v4284_v62 = vsel %vm798_vm1, %v844_v19, %v845_v61 }
  0x9c   : > { %3408 = vmatprep.subr.bf16.mxu0 %v3540_v39  ;;  %1751 = vmatmul.mubr.bf16.gmra.mrb[56].mxu1 %v4226_v57 }
  0x9d   : > { %1758 = vmatprep.mubr.bf16.mxu1 %v3680_v53 }
  0x9f   : > { %3409 = vmatpush3.bf16.msra.mxu0 %v3540_v39  ;;  %v4273_v39 = vsel %vm798_vm1, %v841_v0, %v842_v20 }
  0xa0   : > { %3410 = vmatprep.subr.bf16.mxu0 %v3541_v37 }
  0xa2   : > { %1856 = vmatmul.mubr.bf16.gmra.mrb[60].mxu0 %v3946_v23 }
  0xa3   : > { %1863 = vmatprep.mubr.bf16.mxu0 %v4163_v59  ;;  %3411 = vmatpush3.bf16.msra.mxu0 %v3541_v37  ;;  %v4276_v37 = vpack.c.bf16 %v516_v32, %v515_v49 }
  0xa4   : > { %3412 = vmatprep.subr.bf16.mxu0 %v3542_v1  ;;  %1759 = vmatmul.mubr.bf16.gmra.mrb[60].mxu1 %v4241_v2 }
  0xa5   : > { %1766 = vmatprep.mubr.bf16.mxu1 %v3751_v60  ;;  %v864_v5 = vshrl.u32 %v4276_v37, 16 }
  0xa7   : > { %3413 = vmatpush3.bf16.msra.mxu0 %v3542_v1 }
  0xaa   : > { %1864 = vmatmul.mubr.bf16.gmra.mrb[64].mxu0 %v3992_v15 }
  0xab   : > { %1871 = vmatprep.mubr.bf16.mxu0 %v4175_v13 }
  0xac   : > { %1767 = vmatmul.mubr.bf16.gmra.mrb[64].mxu1 %v4251_v45 }
  0xad   : > { %1774 = vmatprep.mubr.bf16.mxu1 %v3809_v54 }
  0xb2   : > { %1872 = vmatmul.mubr.bf16.gmra.mrb[68].mxu0 %v4028_v26 }
  0xb3   : > { %1879 = vmatprep.mubr.bf16.mxu0 %v4184_v9 }
  0xb4   : > { %1775 = vmatmul.mubr.bf16.gmra.mrb[68].mxu1 %v4262_v43 }
  0xb5   : > { %1782 = vmatprep.mubr.bf16.mxu1 %v3880_v3 }
  0xba   : > { %1880 = vmatmul.mubr.bf16.gmra.mrb[72].mxu0 %v4064_v55 }
  0xbb   : > { %1887 = vmatprep.mubr.bf16.mxu0 %v4195_v63 }
  0xbc   : > { %1783 = vmatmul.mubr.bf16.gmra.mrb[72].mxu1 %v4273_v39 }
  0xbd   : > { %1790 = vmatprep.mubr.bf16.mxu1 %v4276_v37 }
  0xc2   : > { %1888 = vmatmul.mubr.bf16.gmra.mrb[76].mxu0 %v4102_v35 }
  0xc3   : > { %1895 = vmatprep.mubr.bf16.mxu0 %v4211_v51 }
  0xc4   : > { %1791 = vmatmul.mubr.bf16.gmra.mrb[76].mxu1 %v4284_v62 }
  0xc5   : > { %1992 = vmatprep.mubr.bf16.mxu1 %v3827_v7  ;;  %v289_v7 = vld [vmem:[%s3624_s16 + $0xc8] sm:$0x1] }
  0xca   : > { %1896 = vmatmul.mubr.bf16.gmra.mrb[80].mxu0 %v4139_v46 }
  0xcb   : > { %1903 = vmatprep.mubr.bf16.mxu0 %v4226_v57 }
  0xcc   : > { %1993 = vmatmul.mubr.bf16.vlgmr.msra.gmra.mrb[80].mxu1 %v3784_v25  ;;  %v343_v25 = vunpack.c.l.bf16 %v289_v7 }
  0xcd   : > { %2000 = vmatprep.mubr.bf16.mxu1 %v3902_v21 }
  0xce   : > { %v403_v4 = vsub.f32 %v343_v25, %v4047_v34 }
  0xd2   : > { %1904 = vmatmul.mubr.bf16.gmra.mrb[84].mxu0 %v4157_v47 }
  0xd3   : > { %1911 = vmatprep.mubr.bf16.mxu0 %v4241_v2 }
  0xd4   : > { %2001 = vmatmul.mubr.bf16.gmra.mrb[84].mxu1 %v3847_v31  ;;  %v463_v31 = vmul.f32 %v4033_v11, %v403_v4 }
  0xd5   : > { %2008 = vmatprep.mubr.bf16.mxu1 %v3946_v23  ;;  %v878_v23 = vrot.slane %v4276_v37, 1 }
  0xd6   : > { %v517_v21 = vmax.f32 %v463_v31, 0.0 }
  0xda   : > { %1912 = vmatmul.mubr.bf16.gmra.mrb[88].mxu0 %v4171_v44 }
  0xdb   : > { %1919 = vmatprep.mubr.bf16.mxu0 %v4251_v45 }
  0xdc   : > { %2009 = vmatmul.mubr.bf16.gmra.mrb[88].mxu1 %v3906_v33  ;;  %v554_v33 = vpack.c.bf16 %v517_v21, %v517_v21 }
  0xdd   : > { %2016 = vmatprep.mubr.bf16.mxu1 %v3992_v15 }
  0xde   : > { %v879_v15 = vrot.slane %v554_v33, 1  ;;  %v871_v10 = vshll.u32 %v554_v33, 16 }
  0xe0   : > { %v4325_v27 = vsel %vm798_vm1, %v878_v23, %v879_v15  ;;  %v873_v0 = vrot.slane %v871_v10, 1 }
  0xe2   : > { %1920 = vmatmul.mubr.bf16.gmra.mrb[92].mxu0 %v3718_v29 }
  0xe3   : > { %1927 = vmatprep.mubr.bf16.mxu0 %v4262_v43 }
  0xe4   : > { %2017 = vmatmul.mubr.bf16.gmra.mrb[92].mxu1 %v3938_v18  ;;  %v866_v18 = vshll.u32 %v4276_v37, 16 }
  0xe5   : > { %2024 = vmatprep.mubr.bf16.mxu1 %v4028_v26 }
  0xe6   : > { %v868_v36 = vrot.slane %v866_v18, 1 }
  0xe8   : > { %v869_v17 = vor.u32 %v868_v36, %v864_v5 }
  0xea   : > { %1928 = vmatmul.mubr.bf16.gmra.mrb[96].mxu0 %v3798_v40  ;;  %v4336_v20 = vsel %vm557_vm0, %v869_v17, %v873_v0 }
  0xeb   : > { %1935 = vmatprep.mubr.bf16.mxu0 %v4273_v39 }
  0xec   : > { %2025 = vmatmul.mubr.bf16.gmra.mrb[96].mxu1 %v3982_v8 }
  0xed   : > { %2032 = vmatprep.mubr.bf16.mxu1 %v4064_v55 }
  0xf2   : > { %1936 = vmatmul.mubr.bf16.gmra.mrb[100].mxu0 %v3858_v42 }
  0xf3   : > { %1943 = vmatprep.mubr.bf16.mxu0 %v4284_v62 }
  0xf4   : > { %2033 = vmatmul.mubr.bf16.gmra.mrb[100].mxu1 %v4010_v48 }
  0xf5   : > { %2040 = vmatprep.mubr.bf16.mxu1 %v4102_v35 }
  0xf9   : > { %v2942_v26 = vpop.f32.mrb[0].mxu0  ;;  %v3014_v1 = vpop.f32.mrb[0].mxu1 }
  0xfa   : > { %v2943_v56 = vpop.f32.mrb[1].mxu0  ;;  %v3015_v55 = vpop.f32.mrb[1].mxu1  ;;  %1944 = vmatmul.mubr.bf16.gmra.mrb[104].mxu0 %v3923_v52 }
  0xfb   : > { %v4319_v8 = vadd.f32 %v2943_v56, %v2942_v26  ;;  %v2945_v24 = vpop.f32.mrb[2].mxu0  ;;  %v4322_v12 = vadd.f32 %v3015_v55, %v3014_v1  ;;  %v3017_v28 = vpop.f32.mrb[2].mxu1  ;;  %1951 = vmatprep.mubr.bf16.mxu0 %v4325_v27 }
  0xfc   : > { %v2946_v58 = vpop.f32.mrb[3].mxu0  ;;  %v3018_v35 = vpop.f32.mrb[3].mxu1  ;;  %2041 = vmatmul.mubr.bf16.gmra.mrb[104].mxu1 %v4053_v41 }
  0xfd   : > { %v4327_v48 = vadd.f32 %v2946_v58, %v2945_v24  ;;  %v4330_v22 = vadd.f32 %v3018_v35, %v3017_v28  ;;  %2048 = vmatprep.mubr.bf16.mxu1 %v4139_v46  ;;  %v290_v58 = vld [vmem:[%s3624_s16 + $0xcc] sm:$0xff]  }
  0xfe   : > { %v345_v0 = vunpack.c.h.bf16 %v290_v58 }
 0x101   : > { %v2948_v49 = vpop.f32.mrb[4].mxu0 }
 0x102   : > { %v2949_v32 = vpop.f32.mrb[5].mxu0  ;;  %1952 = vmatmul.mubr.bf16.gmra.mrb[108].mxu0 %v4336_v20 }
 0x103   : > { %v4338_v19 = vadd.f32 %v2949_v32, %v2948_v49  ;;  %v2951_v61 = vpop.f32.mrb[6].mxu0  ;;  %3414 = vmatprep.mubr.bf16.mxu0 %v4061_v50  ;;  %v292_v32 = vld [vmem:[%s3624_s16 + $0xd4] sm:$0x1]  ;;  %s2754_s16 = sshll.u32 %s4767_s19, 7 }
 0x104   : > { %v2952_v7 = vpop.f32.mrb[7].mxu0  ;;  %v3020_v25 = vpop.f32.mrb[4].mxu1  ;;  %2049 = vmatmul.mubr.bf16.gmra.mrb[108].mxu1 %v4087_v38  ;;  %s4688_s23 = scalar_lea.vmem %s4764_s4, %s2754_s16 }
 0x105   : > { %v4341_v4 = vadd.f32 %v2952_v7, %v2951_v61  ;;  %v3021_v31 = vpop.f32.mrb[5].mxu1  ;;  %2056 = vmatprep.mubr.bf16.mxu1 %v4157_v47 }
 0x106   : > { %v4345_v41 = vadd.f32 %v3021_v31, %v3020_v25  ;;  %v3023_v46 = vpop.f32.mrb[6].mxu1  ;;  %v346_v31 = vunpack.c.l.bf16 %v292_v32 }
 0x107   : > { %v3024_v21 = vpop.f32.mrb[7].mxu1 }
 0x108   : > { %v4348_v33 = vadd.f32 %v3024_v21, %v3023_v46  ;;  %v405_v46 = vsub.f32 %v345_v0, %v4047_v34 }
 0x109   : > { %v2954_v18 = vpop.f32.mrb[8].mxu0 }
 0x10a   : > { %v2955_v23 = vpop.f32.mrb[9].mxu0  ;;  %3415 = vmatmul.mubr.bf16.vlgmr.msra.gmra.mrb[112].mxu0 %v4109_v6 }
 0x10b   : > { %v4351_v15 = vadd.f32 %v2955_v23, %v2954_v18  ;;  %v2957_v26 = vpop.f32.mrb[10].mxu0  ;;  %3418 = vmatprep.mubr.bf16.mxu0 %v4144_v14 }
 0x10c   : > { %v2958_v1 = vpop.f32.mrb[11].mxu0  ;;  %2057 = vmatmul.mubr.bf16.gmra.mrb[112].mxu1 %v4116_v30 }
 0x10d   : > { %v4354_v50 = vadd.f32 %v2958_v1, %v2957_v26  ;;  %v3026_v38 = vpop.f32.mrb[8].mxu1  ;;  %2064 = vmatprep.mubr.bf16.mxu1 %v4171_v44 }
 0x10e   : > { %v3027_v56 = vpop.f32.mrb[9].mxu1 }
 0x10f   : > { %v4358_v47 = vadd.f32 %v3027_v56, %v3026_v38  ;;  %v3029_v55 = vpop.f32.mrb[10].mxu1  ;;  %v465_v56 = vmul.f32 %v4033_v11, %v405_v46 }
 0x110   : > { %v3030_v24 = vpop.f32.mrb[11].mxu1 }
 0x111   : > { %v4360_v6 = vadd.f32 %v3030_v24, %v3029_v55 }
 0x112   : > { %3419 = vmatmul.mubr.bf16.gmra.mrb[116].mxu0 %v4163_v59  ;;  %v2960_v5 = vpop.f32.mrb[12].mxu0 }
 0x113   : > { %3422 = vmatprep.mubr.bf16.mxu0 %v4175_v13  ;;  %v2961_v14 = vpop.f32.mrb[13].mxu0 }
 0x114   : > { %2065 = vmatmul.mubr.bf16.gmra.mrb[116].mxu1 %v4147_v16  ;;  %v4365_v30 = vadd.f32 %v2961_v14, %v2960_v5  ;;  %v2963_v36 = vpop.f32.mrb[14].mxu0  ;;  %v344_v16 = vunpack.c.l.bf16 %v290_v58 }
 0x115   : > { %v2964_v44 = vpop.f32.mrb[15].mxu0  ;;  %2072 = vmatprep.mubr.bf16.mxu1 %v3718_v29 }
 0x116   : > { %v4368_v10 = vadd.f32 %v2964_v44, %v2963_v36 }
 0x117   : > { %v3032_v28 = vpop.f32.mrb[12].mxu1 }
 0x118   : > { %v3033_v35 = vpop.f32.mrb[13].mxu1 }
 0x119   : > { %v4371_v17 = vadd.f32 %v3033_v35, %v3032_v28  ;;  %v3035_v59 = vpop.f32.mrb[14].mxu1  ;;  %v519_v28 = vmax.f32 %v465_v56, 0.0 }
 0x11a   : > { %3423 = vmatmul.mubr.bf16.gmra.mrb[120].mxu0 %v4184_v9  ;;  %v3036_v13 = vpop.f32.mrb[15].mxu1  ;;  %v404_v9 = vsub.f32 %v344_v16, %v4047_v34 }
 0x11b   : > { %3426 = vmatprep.mubr.bf16.mxu0 %v4195_v63  ;;  %v4375_v49 = vadd.f32 %v3036_v13, %v3035_v59 }
 0x11c   : > { %2073 = vmatmul.mubr.bf16.gmra.mrb[120].mxu1 %v3680_v53  ;;  %v464_v38 = vmul.f32 %v4033_v11, %v404_v9 }
 0x11d   : > { %v2966_v29 = vpop.f32.mrb[16].mxu0  ;;  %2080 = vmatprep.mubr.bf16.mxu1 %v3798_v40  ;;  %v406_v40 = vsub.f32 %v346_v31, %v4047_v34 }
 0x11e   : > { %v2967_v61 = vpop.f32.mrb[17].mxu0  ;;  %v518_v44 = vmax.f32 %v464_v38, 0.0 }
 0x11f   : > { %v4380_v7 = vadd.f32 %v2967_v61, %v2966_v29  ;;  %v2969_v25 = vpop.f32.mrb[18].mxu0  ;;  %v3054_v63 = vpop.f32.mrb[16].mxu1  ;;  %v466_v36 = vmul.f32 %v4033_v11, %v406_v40 }
 0x120   : > { %v2970_v21 = vpop.f32.mrb[19].mxu0  ;;  %v3055_v18 = vpop.f32.mrb[17].mxu1  ;;  %v4406_v16 = vpack.c.bf16 %v519_v28, %v518_v44 }
 0x121   : > { %v4384_v23 = vadd.f32 %v2970_v21, %v2969_v25  ;;  %v3056_v26 = vadd.f32 %v3055_v18, %v3054_v63  ;;  %v3057_v1 = vpop.f32.mrb[18].mxu1 }
 0x122   : > { %3427 = vmatmul.mubr.bf16.gmra.mrb[124].mxu0 %v4211_v51  ;;  %v3058_v53 = vpop.f32.mrb[19].mxu1  ;;  %v885_v31 = vshll.u32 %v4406_v16, 16 }
 0x123   : > { %3430 = vmatprep.mubr.bf16.mxu0 %v4226_v57  ;;  %v4392_v55 = vadd.f32 %v3056_v26, %v4319_v8  ;;  %v3059_v24 = vadd.f32 %v3058_v53, %v3057_v1 }
 0x124   : > { %2081 = vmatmul.mubr.bf16.gmra.mrb[124].mxu1 %v3751_v60  ;;  %v887_v18 = vrot.slane %v885_v31, 1 }
 0x125   : > { %v2972_v5 = vpop.f32.mrb[20].mxu0  ;;  %v4396_v14 = vadd.f32 %v3059_v24, %v4327_v48  ;;  %2088 = vmatprep.mubr.bf16.mxu1 %v3858_v42  ;;  %v520_v42 = vmax.f32 %v466_v36, 0.0 }
 0x126   : > { %v2973_v51 = vpop.f32.mrb[21].mxu0 }
 0x127   : > { %v4399_v57 = vadd.f32 %v2973_v51, %v2972_v5  ;;  %v2975_v34 = vpop.f32.mrb[22].mxu0  ;;  %v3060_v58 = vpop.f32.mrb[20].mxu1 }
 0x128   : > { %v2976_v8 = vpop.f32.mrb[23].mxu0  ;;  %v3061_v35 = vpop.f32.mrb[21].mxu1 }
 0x129   : > { %v4402_v59 = vadd.f32 %v2976_v8, %v2975_v34  ;;  %v3062_v60 = vadd.f32 %v3061_v35, %v3060_v58  ;;  %v3063_v13 = vpop.f32.mrb[22].mxu1 }
 0x12a   : > { %3431 = vmatmul.mubr.bf16.gmra.mrb[128].mxu0 %v4241_v2  ;;  %v3064_v48 = vpop.f32.mrb[23].mxu1 }
 0x12b   : > { %3434 = vmatprep.mubr.bf16.mxu0 %v4251_v45  ;;  %v4409_v0 = vadd.f32 %v3062_v60, %v4338_v19  ;;  %v3065_v11 = vadd.f32 %v3064_v48, %v3063_v13  ;;  %v556_v45 = vpack.c.bf16 %v520_v42, %v520_v42 }
 0x12c   : > { %2089 = vmatmul.mubr.bf16.gmra.mrb[128].mxu1 %v3809_v54 }
 0x12d   : > { %v2978_v32 = vpop.f32.mrb[24].mxu0  ;;  %v4413_v29 = vadd.f32 %v3065_v11, %v4341_v4  ;;  %2096 = vmatprep.mubr.bf16.mxu1 %v3923_v52  ;;  %v883_v52 = vshrl.u32 %v4406_v16, 16  ;;  %v890_v26 = vshll.u32 %v556_v45, 16  ;;  %v898_v58 = vrot.slane %v556_v45, 1 }
 0x12e   : > { %v2979_v61 = vpop.f32.mrb[25].mxu0 }
 0x12f   : > { %v4416_v2 = vadd.f32 %v2979_v61, %v2978_v32  ;;  %v2981_v25 = vpop.f32.mrb[26].mxu0  ;;  %v3066_v9 = vpop.f32.mrb[24].mxu1  ;;  %v888_v24 = vor.u32 %v887_v18, %v883_v52  ;;  %v892_v5 = vrot.slane %v890_v26, 1 }
 0x130   : > { %v2982_v46 = vpop.f32.mrb[27].mxu0  ;;  %v3067_v19 = vpop.f32.mrb[25].mxu1 }
 0x131   : > { %v4419_v63 = vadd.f32 %v2982_v46, %v2981_v25  ;;  %v3068_v21 = vadd.f32 %v3067_v19, %v3066_v9  ;;  %v3069_v54 = vpop.f32.mrb[26].mxu1 }
 0x132   : > { %3435 = vmatmul.mubr.bf16.gmra.mrb[132].mxu0 %v4262_v43  ;;  %v3070_v4 = vpop.f32.mrb[27].mxu1 }
 0x133   : > { %3438 = vmatprep.mubr.bf16.mxu0 %v4273_v39  ;;  %v4425_v1 = vadd.f32 %v3068_v21, %v4351_v15  ;;  %v3071_v53 = vadd.f32 %v3070_v4, %v3069_v54 }
 0x134   : > { %2097 = vmatmul.mubr.bf16.gmra.mrb[132].mxu1 %v3880_v3 }
 0x135   : > { %v2984_v40 = vpop.f32.mrb[28].mxu0  ;;  %v4429_v38 = vadd.f32 %v3071_v53, %v4354_v50  ;;  %2104 = vmatprep.mubr.bf16.mxu1 %v4336_v20  ;;  %v893_v50 = vsel %vm557_vm0, %v888_v24, %v892_v5  ;;  %v897_v20 = vrot.slane %v4406_v16, 1 }
 0x136   : > { %v2985_v56 = vpop.f32.mrb[29].mxu0 }
 0x137   : > { %v4432_v43 = vadd.f32 %v2985_v56, %v2984_v40  ;;  %v2987_v39 = vpop.f32.mrb[30].mxu0  ;;  %v3072_v51 = vpop.f32.mrb[28].mxu1 }
 0x138   : > { %v2988_v34 = vpop.f32.mrb[31].mxu0  ;;  %v3073_v36 = vpop.f32.mrb[29].mxu1 }
 0x139   : > { %v4434_v15 = vadd.f32 %v2988_v34, %v2987_v39  ;;  %v3074_v44 = vadd.f32 %v3073_v36, %v3072_v51  ;;  %v3075_v28 = vpop.f32.mrb[30].mxu1 }
 0x13a   : > { %3439 = vmatmul.mubr.bf16.gmra.mrb[136].mxu0 %v4284_v62  ;;  %v3076_v3 = vpop.f32.mrb[31].mxu1 }
 0x13b   : > { %3442 = vmatprep.mubr.bf16.mxu0 %v4325_v27  ;;  %v4441_v8 = vadd.f32 %v3074_v44, %v4365_v30  ;;  %v3077_v35 = vadd.f32 %v3076_v3, %v3075_v28  ;;  %v899_v27 = vsel %vm798_vm1, %v897_v20, %v898_v58 }
 0x13c   : > { %2105 = vmatmul.mubr.bf16.gmra.mrb[136].mxu1 %v4276_v37 }
 0x13d   : > { %v2990_v60 = vpop.f32.mrb[32].mxu0  ;;  %v4445_v13 = vadd.f32 %v3077_v35, %v4368_v10  ;;  %2112 = vmatprep.mubr.bf16.mxu1 %v893_v50 }
 0x13e   : > { %v2991_v48 = vpop.f32.mrb[33].mxu0 }
 0x13f   : > { %v4447_v62 = vadd.f32 %v2991_v48, %v2990_v60  ;;  %v2993_v42 = vpop.f32.mrb[34].mxu0  ;;  %v3078_v11 = vpop.f32.mrb[32].mxu1 }
 0x140   : > { %v2994_v32 = vpop.f32.mrb[35].mxu0  ;;  %v3079_v61 = vpop.f32.mrb[33].mxu1 }
 0x141   : > { %v4450_v25 = vadd.f32 %v2994_v32, %v2993_v42  ;;  %v3080_v30 = vadd.f32 %v3079_v61, %v3078_v11  ;;  %v3081_v45 = vpop.f32.mrb[34].mxu1 }
 0x142   : > { %3443 = vmatmul.mubr.bf16.gmra.mrb[140].mxu0 %v899_v27  ;;  %v3082_v37 = vpop.f32.mrb[35].mxu1 }
 0x143   : > { %v4453_v31 = vadd.f32 %v3080_v30, %v4380_v7  ;;  %v3083_v10 = vadd.f32 %v3082_v37, %v3081_v45 }
 0x144   : > { %2113 = vmatmul.mubr.bf16.gmra.mrb[140].mxu1 %v4406_v16 }
 0x145   : > { %v2996_v9 = vpop.f32.mrb[36].mxu0  ;;  %v4457_v46 = vadd.f32 %v3083_v10, %v4384_v23 }
 0x146   : > { %v2997_v19 = vpop.f32.mrb[37].mxu0 }
 0x147   : > { %v4459_v21 = vadd.f32 %v2997_v19, %v2996_v9  ;;  %v2999_v54 = vpop.f32.mrb[38].mxu0  ;;  %v3084_v4 = vpop.f32.mrb[36].mxu1 }
 0x148   : > { %v3000_v52 = vpop.f32.mrb[39].mxu0  ;;  %v3085_v18 = vpop.f32.mrb[37].mxu1 }
 0x149   : > { %v4461_v26 = vadd.f32 %v3000_v52, %v2999_v54  ;;  %v3086_v53 = vadd.f32 %v3085_v18, %v3084_v4  ;;  %v3087_v40 = vpop.f32.mrb[38].mxu1 }
 0x14a   : > { %v3088_v7 = vpop.f32.mrb[39].mxu1 }
 0x14b   : > { %v4464_v56 = vadd.f32 %v3086_v53, %v4399_v57  ;;  %v3089_v16 = vadd.f32 %v3088_v7, %v3087_v40 }
 0x14d   : > { %v3002_v39 = vpop.f32.mrb[40].mxu0  ;;  %v4467_v23 = vadd.f32 %v3089_v16, %v4402_v59 }
 0x14e   : > { %v3003_v24 = vpop.f32.mrb[41].mxu0 }
 0x14f   : > { %v4469_v5 = vadd.f32 %v3003_v24, %v3002_v39  ;;  %v3005_v51 = vpop.f32.mrb[42].mxu0  ;;  %v3090_v34 = vpop.f32.mrb[40].mxu1 }
 0x150   : > { %v3006_v36 = vpop.f32.mrb[43].mxu0  ;;  %v3091_v44 = vpop.f32.mrb[41].mxu1 }
 0x151   : > { %v4471_v28 = vadd.f32 %v3006_v36, %v3005_v51  ;;  %v3092_v3 = vadd.f32 %v3091_v44, %v3090_v34  ;;  %v3093_v50 = vpop.f32.mrb[42].mxu1 }
 0x152   : > { %v3094_v20 = vpop.f32.mrb[43].mxu1 }
 0x153   : > { %v4474_v57 = vadd.f32 %v3092_v3, %v4416_v2  ;;  %v3095_v58 = vadd.f32 %v3094_v20, %v3093_v50 }
 0x155   : > { %v3008_v35 = vpop.f32.mrb[44].mxu0  ;;  %v4477_v59 = vadd.f32 %v3095_v58, %v4419_v63 }
 0x156   : > { %v3009_v60 = vpop.f32.mrb[45].mxu0 }
 0x157   : > { %v4479_v48 = vadd.f32 %v3009_v60, %v3008_v35  ;;  %v3011_v42 = vpop.f32.mrb[46].mxu0  ;;  %v3096_v27 = vpop.f32.mrb[44].mxu1 }
 0x158   : > { %v3012_v11 = vpop.f32.mrb[47].mxu0  ;;  %v3097_v32 = vpop.f32.mrb[45].mxu1 }
 0x159   : > { %v4481_v61 = vadd.f32 %v3012_v11, %v3011_v42  ;;  %v3098_v30 = vadd.f32 %v3097_v32, %v3096_v27  ;;  %v3099_v45 = vpop.f32.mrb[46].mxu1 }
 0x15a   : > { %v3100_v37 = vpop.f32.mrb[47].mxu1 }
 0x15b   : > { %v4484_v2 = vadd.f32 %v3098_v30, %v4432_v43  ;;  %v3101_v10 = vadd.f32 %v3100_v37, %v3099_v45 }
 0x15d   : > { %v3166_v9 = vpop.f32.mrb[48].mxu0  ;;  %v4487_v63 = vadd.f32 %v3101_v10, %v4434_v15 }
 0x15e   : > { %v3167_v19 = vpop.f32.mrb[49].mxu0 }
 0x15f   : > { %v3168_v54 = vadd.f32 %v3167_v19, %v3166_v9  ;;  %v3169_v4 = vpop.f32.mrb[50].mxu0  ;;  %v3102_v52 = vpop.f32.mrb[48].mxu1 }
 0x160   : > { %v3170_v18 = vpop.f32.mrb[51].mxu0  ;;  %v3103_v53 = vpop.f32.mrb[49].mxu1 }
 0x161   : > { %v4490_v40 = vadd.f32 %v3168_v54, %v4392_v55  ;;  %v3171_v7 = vadd.f32 %v3170_v18, %v3169_v4  ;;  %v3104_v16 = vadd.f32 %v3103_v53, %v3102_v52  ;;  %v3105_v39 = vpop.f32.mrb[50].mxu1 }
 0x162   : > { %v3106_v24 = vpop.f32.mrb[51].mxu1 }
 0x163   : > { %v4493_v43 = vadd.f32 %v3171_v7, %v4396_v14  ;;  %v4496_v51 = vadd.f32 %v3104_v16, %v4447_v62  ;;  %v3107_v15 = vadd.f32 %v3106_v24, %v3105_v39 }
 0x165   : > { %v3172_v34 = vpop.f32.mrb[52].mxu0  ;;  %v4499_v36 = vadd.f32 %v3107_v15, %v4450_v25 }
 0x166   : > { %v3173_v44 = vpop.f32.mrb[53].mxu0 }
 0x167   : > { %v3174_v3 = vadd.f32 %v3173_v44, %v3172_v34  ;;  %v3175_v50 = vpop.f32.mrb[54].mxu0  ;;  %v3108_v55 = vpop.f32.mrb[52].mxu1 }
 0x168   : > { %v3176_v20 = vpop.f32.mrb[55].mxu0  ;;  %v3109_v58 = vpop.f32.mrb[53].mxu1 }
 0x169   : > { %v4502_v35 = vadd.f32 %v3174_v3, %v4409_v0  ;;  %v3177_v60 = vadd.f32 %v3176_v20, %v3175_v50  ;;  %v3110_v14 = vadd.f32 %v3109_v58, %v3108_v55  ;;  %v3111_v42 = vpop.f32.mrb[54].mxu1 }
 0x16a   : > { %v3112_v27 = vpop.f32.mrb[55].mxu1 }
 0x16b   : > { %v4505_v62 = vadd.f32 %v3177_v60, %v4413_v29  ;;  %v4508_v11 = vadd.f32 %v3110_v14, %v4459_v21  ;;  %v3113_v25 = vadd.f32 %v3112_v27, %v3111_v42 }
 0x16d   : > { %v3178_v32 = vpop.f32.mrb[56].mxu0  ;;  %v4511_v30 = vadd.f32 %v3113_v25, %v4461_v26 }
 0x16e   : > { %v3179_v45 = vpop.f32.mrb[57].mxu0 }
 0x16f   : > { %v3180_v37 = vadd.f32 %v3179_v45, %v3178_v32  ;;  %v3181_v10 = vpop.f32.mrb[58].mxu0  ;;  %v3114_v0 = vpop.f32.mrb[56].mxu1 }
 0x170   : > { %v3182_v9 = vpop.f32.mrb[59].mxu0  ;;  %v3115_v19 = vpop.f32.mrb[57].mxu1 }
 0x171   : > { %v4514_v54 = vadd.f32 %v3180_v37, %v4425_v1  ;;  %v3183_v4 = vadd.f32 %v3182_v9, %v3181_v10  ;;  %v3116_v29 = vadd.f32 %v3115_v19, %v3114_v0  ;;  %v3117_v52 = vpop.f32.mrb[58].mxu1 }
 0x172   : > { %v3118_v18 = vpop.f32.mrb[59].mxu1 }
 0x173   : > { %v4517_v21 = vadd.f32 %v3183_v4, %v4429_v38  ;;  %v4520_v53 = vadd.f32 %v3116_v29, %v4469_v5  ;;  %v3119_v26 = vadd.f32 %v3118_v18, %v3117_v52 }
 0x175   : > { %v3184_v7 = vpop.f32.mrb[60].mxu0  ;;  %v4523_v16 = vadd.f32 %v3119_v26, %v4471_v28 }
 0x176   : > { %v3185_v39 = vpop.f32.mrb[61].mxu0 }
 0x177   : > { %v3186_v24 = vadd.f32 %v3185_v39, %v3184_v7  ;;  %v3187_v15 = vpop.f32.mrb[62].mxu0  ;;  %v3120_v1 = vpop.f32.mrb[60].mxu1 }
 0x178   : > { %v3188_v34 = vpop.f32.mrb[63].mxu0  ;;  %v3121_v44 = vpop.f32.mrb[61].mxu1 }
 0x179   : > { %v4526_v3 = vadd.f32 %v3186_v24, %v4441_v8  ;;  %v3189_v50 = vadd.f32 %v3188_v34, %v3187_v15  ;;  %v3122_v38 = vadd.f32 %v3121_v44, %v3120_v1  ;;  %v3123_v55 = vpop.f32.mrb[62].mxu1 }
 0x17a   : > { %v3124_v20 = vpop.f32.mrb[63].mxu1 }
 0x17b   : > { %v4529_v5 = vadd.f32 %v3189_v50, %v4445_v13  ;;  %v4532_v58 = vadd.f32 %v3122_v38, %v4479_v48  ;;  %v3125_v28 = vadd.f32 %v3124_v20, %v3123_v55 }
 0x17d   : > { %v3190_v60 = vpop.f32.mrb[64].mxu0  ;;  %v4535_v14 = vadd.f32 %v3125_v28, %v4481_v61 }
 0x17e   : > { %v3191_v42 = vpop.f32.mrb[65].mxu0 }
 0x17f   : > { %v3192_v27 = vadd.f32 %v3191_v42, %v3190_v60  ;;  %v3193_v25 = vpop.f32.mrb[66].mxu0  ;;  %v3126_v8 = vpop.f32.mrb[64].mxu1 }
 0x180   : > { %v3194_v32 = vpop.f32.mrb[67].mxu0  ;;  %v3127_v45 = vpop.f32.mrb[65].mxu1 }
 0x181   : > { %v4538_v37 = vadd.f32 %v3192_v27, %v4453_v31  ;;  %v3195_v10 = vadd.f32 %v3194_v32, %v3193_v25  ;;  %v3128_v13 = vadd.f32 %v3127_v45, %v3126_v8  ;;  %v3129_v0 = vpop.f32.mrb[66].mxu1 }
 0x182   : > { %v3130_v9 = vpop.f32.mrb[67].mxu1 }
 0x183   : > { %v4541_v48 = vadd.f32 %v3195_v10, %v4457_v46  ;;  %v4544_v19 = vadd.f32 %v3128_v13, %v4322_v12  ;;  %v3131_v61 = vadd.f32 %v3130_v9, %v3129_v0 }
 0x185   : > { %v3196_v4 = vpop.f32.mrb[68].mxu0  ;;  %v4547_v29 = vadd.f32 %v3131_v61, %v4330_v22 }
 0x186   : > { %v3197_v52 = vpop.f32.mrb[69].mxu0 }
 0x187   : > { %v3198_v18 = vadd.f32 %v3197_v52, %v3196_v4  ;;  %v3199_v26 = vpop.f32.mrb[70].mxu0  ;;  %v3132_v31 = vpop.f32.mrb[68].mxu1 }
 0x188   : > { %v3200_v7 = vpop.f32.mrb[71].mxu0  ;;  %v3133_v39 = vpop.f32.mrb[69].mxu1 }
 0x189   : > { %v4550_v24 = vadd.f32 %v3198_v18, %v4464_v56  ;;  %v3201_v15 = vadd.f32 %v3200_v7, %v3199_v26  ;;  %v3134_v46 = vadd.f32 %v3133_v39, %v3132_v31  ;;  %v3135_v1 = vpop.f32.mrb[70].mxu1 }
 0x18a   : > { %v3136_v34 = vpop.f32.mrb[71].mxu1 }
 0x18b   : > { %v4553_v12 = vadd.f32 %v3201_v15, %v4467_v23  ;;  %v4556_v44 = vadd.f32 %v3134_v46, %v4345_v41  ;;  %v3137_v22 = vadd.f32 %v3136_v34, %v3135_v1 }
 0x18d   : > { %v3202_v50 = vpop.f32.mrb[72].mxu0  ;;  %v4559_v38 = vadd.f32 %v3137_v22, %v4348_v33 }
 0x18e   : > { %v3203_v55 = vpop.f32.mrb[73].mxu0 }
 0x18f   : > { %v3204_v20 = vadd.f32 %v3203_v55, %v3202_v50  ;;  %v3205_v28 = vpop.f32.mrb[74].mxu0  ;;  %v3138_v56 = vpop.f32.mrb[72].mxu1 }
 0x190   : > { %v3206_v60 = vpop.f32.mrb[75].mxu0  ;;  %v3139_v42 = vpop.f32.mrb[73].mxu1 }
 0x191   : > { %v4562_v27 = vadd.f32 %v3204_v20, %v4474_v57  ;;  %v3207_v25 = vadd.f32 %v3206_v60, %v3205_v28  ;;  %v3140_v23 = vadd.f32 %v3139_v42, %v3138_v56  ;;  %v3141_v8 = vpop.f32.mrb[74].mxu1 }
 0x192   : > { %v3142_v32 = vpop.f32.mrb[75].mxu1 }
 0x193   : > { %v4565_v41 = vadd.f32 %v3207_v25, %v4477_v59  ;;  %v4568_v45 = vadd.f32 %v3140_v23, %v4358_v47  ;;  %v3143_v33 = vadd.f32 %v3142_v32, %v3141_v8 }
 0x195   : > { %v3208_v10 = vpop.f32.mrb[76].mxu0  ;;  %v4571_v13 = vadd.f32 %v3143_v33, %v4360_v6 }
 0x196   : > { %v3209_v0 = vpop.f32.mrb[77].mxu0 }
 0x197   : > { %v3210_v9 = vadd.f32 %v3209_v0, %v3208_v10  ;;  %v3211_v61 = vpop.f32.mrb[78].mxu0  ;;  %v3144_v57 = vpop.f32.mrb[76].mxu1 }
 0x198   : > { %v3212_v4 = vpop.f32.mrb[79].mxu0  ;;  %v3145_v52 = vpop.f32.mrb[77].mxu1 }
 0x199   : > { %v4574_v18 = vadd.f32 %v3210_v9, %v4484_v2  ;;  %v3213_v26 = vadd.f32 %v3212_v4, %v3211_v61  ;;  %v3146_v59 = vadd.f32 %v3145_v52, %v3144_v57  ;;  %v3147_v31 = vpop.f32.mrb[78].mxu1 }
 0x19a   : > { %v3148_v7 = vpop.f32.mrb[79].mxu1 }
 0x19b   : > { %v4577_v47 = vadd.f32 %v3213_v26, %v4487_v63  ;;  %v4580_v39 = vadd.f32 %v3146_v59, %v4371_v17  ;;  %v3149_v6 = vadd.f32 %v3148_v7, %v3147_v31 }
 0x19d   : > { %v3214_v15 = vpop.f32.mrb[80].mxu0  ;;  %v4583_v46 = vadd.f32 %v3149_v6, %v4375_v49 }
 0x19e   : > { %v3215_v1 = vpop.f32.mrb[81].mxu0 }
 0x19f   : > { %v3216_v34 = vadd.f32 %v3215_v1, %v3214_v15  ;;  %v3217_v22 = vpop.f32.mrb[82].mxu0  ;;  %v3278_v2 = vpop.f32.mrb[80].mxu1 }
 0x1a0   : > { %v3218_v50 = vpop.f32.mrb[83].mxu0  ;;  %v3279_v20 = vpop.f32.mrb[81].mxu1 }
 0x1a1   : > { %v4586_v55 = vadd.f32 %v3216_v34, %v4496_v51  ;;  %v3219_v28 = vadd.f32 %v3218_v50, %v3217_v22  ;;  %v3280_v63 = vadd.f32 %v3279_v20, %v3278_v2  ;;  %v3281_v56 = vpop.f32.mrb[82].mxu1 }
 0x1a2   : > { %v3282_v60 = vpop.f32.mrb[83].mxu1 }
 0x1a3   : > { %v4589_v17 = vadd.f32 %v3219_v28, %v4499_v36  ;;  %v3283_v42 = vadd.f32 %v3282_v60, %v3281_v56  ;;  %v4592_v49 = vadd.f32 %v3280_v63, %v4490_v40 }
 0x1a5   : > { %v3220_v25 = vpop.f32.mrb[84].mxu0  ;;  %v4595_v8 = vadd.f32 %v3283_v42, %v4493_v43 }
 0x1a6   : > { %v3221_v23 = vpop.f32.mrb[85].mxu0 }
 0x1a7   : > { %v3222_v32 = vadd.f32 %v3221_v23, %v3220_v25  ;;  %v3223_v51 = vpop.f32.mrb[86].mxu0  ;;  %v3284_v33 = vpop.f32.mrb[84].mxu1 }
 0x1a8   : > { %v3224_v10 = vpop.f32.mrb[87].mxu0  ;;  %v3285_v9 = vpop.f32.mrb[85].mxu1 }
 0x1a9   : > { %v4598_v0 = vadd.f32 %v3222_v32, %v4508_v11  ;;  %v3225_v36 = vadd.f32 %v3224_v10, %v3223_v51  ;;  %v3286_v61 = vadd.f32 %v3285_v9, %v3284_v33  ;;  %v3287_v57 = vpop.f32.mrb[86].mxu1 }
 0x1aa   : > { %v3288_v40 = vpop.f32.mrb[87].mxu1 }
 0x1ab   : > { %v4601_v4 = vadd.f32 %v3225_v36, %v4511_v30  ;;  %v3289_v52 = vadd.f32 %v3288_v40, %v3287_v57  ;;  %v4604_v26 = vadd.f32 %v3286_v61, %v4502_v35 }
 0x1ad   : > { %v3226_v43 = vpop.f32.mrb[88].mxu0  ;;  %v4607_v31 = vadd.f32 %v3289_v52, %v4505_v62 }
 0x1ae   : > { %v3227_v59 = vpop.f32.mrb[89].mxu0 }
 0x1af   : > { %v3228_v7 = vadd.f32 %v3227_v59, %v3226_v43  ;;  %v3229_v11 = vpop.f32.mrb[90].mxu0  ;;  %v3290_v6 = vpop.f32.mrb[88].mxu1 }
 0x1b0   : > { %v3230_v15 = vpop.f32.mrb[91].mxu0  ;;  %v3291_v34 = vpop.f32.mrb[89].mxu1 }
 0x1b1   : > { %v4610_v1 = vadd.f32 %v3228_v7, %v4520_v53  ;;  %v3231_v30 = vadd.f32 %v3230_v15, %v3229_v11  ;;  %v3292_v22 = vadd.f32 %v3291_v34, %v3290_v6  ;;  %v3293_v2 = vpop.f32.mrb[90].mxu1 }
 0x1b2   : > { %v3294_v35 = vpop.f32.mrb[91].mxu1 }
 0x1b3   : > { %v4613_v50 = vadd.f32 %v3231_v30, %v4523_v16  ;;  %v3295_v20 = vadd.f32 %v3294_v35, %v3293_v2  ;;  %v4616_v28 = vadd.f32 %v3292_v22, %v4514_v54 }
 0x1b5   : > { %v3232_v62 = vpop.f32.mrb[92].mxu0  ;;  %v4619_v56 = vadd.f32 %v3295_v20, %v4517_v21 }
 0x1b6   : > { %v3233_v63 = vpop.f32.mrb[93].mxu0 }
 0x1b7   : > { %v3234_v60 = vadd.f32 %v3233_v63, %v3232_v62  ;;  %v3235_v53 = vpop.f32.mrb[94].mxu0  ;;  %v3296_v42 = vpop.f32.mrb[92].mxu1 }
 0x1b8   : > { %v3236_v25 = vpop.f32.mrb[95].mxu0  ;;  %v3297_v32 = vpop.f32.mrb[93].mxu1 }
 0x1b9   : > { %v4622_v23 = vadd.f32 %v3234_v60, %v4532_v58  ;;  %v3237_v16 = vadd.f32 %v3236_v25, %v3235_v53  ;;  %v3298_v51 = vadd.f32 %v3297_v32, %v3296_v42  ;;  %v3299_v33 = vpop.f32.mrb[94].mxu1 }
 0x1ba   : > { %v3300_v54 = vpop.f32.mrb[95].mxu1 }
 0x1bb   : > { %v4625_v10 = vadd.f32 %v3237_v16, %v4535_v14  ;;  %v3301_v9 = vadd.f32 %v3300_v54, %v3299_v33  ;;  %v4628_v36 = vadd.f32 %v3298_v51, %v4526_v3 }
 0x1bd   : > { %v3238_v21 = vpop.f32.mrb[96].mxu0  ;;  %v4631_v57 = vadd.f32 %v3301_v9, %v4529_v5 }
 0x1be   : > { %v3239_v61 = vpop.f32.mrb[97].mxu0 }
 0x1bf   : > { %v3240_v40 = vadd.f32 %v3239_v61, %v3238_v21  ;;  %v3241_v58 = vpop.f32.mrb[98].mxu0  ;;  %v3302_v52 = vpop.f32.mrb[96].mxu1 }
 0x1c0   : > { %v3242_v43 = vpop.f32.mrb[99].mxu0  ;;  %v3303_v7 = vpop.f32.mrb[97].mxu1 }
 0x1c1   : > { %v4634_v59 = vadd.f32 %v3240_v40, %v4544_v19  ;;  %v3243_v14 = vadd.f32 %v3242_v43, %v3241_v58  ;;  %v3304_v11 = vadd.f32 %v3303_v7, %v3302_v52  ;;  %v3305_v6 = vpop.f32.mrb[98].mxu1 }
 0x1c2   : > { %v3306_v3 = vpop.f32.mrb[99].mxu1 }
 0x1c3   : > { %v4637_v15 = vadd.f32 %v3243_v14, %v4547_v29  ;;  %v3307_v34 = vadd.f32 %v3306_v3, %v3305_v6  ;;  %v4640_v30 = vadd.f32 %v3304_v11, %v4538_v37 }
 0x1c5   : > { %v3244_v5 = vpop.f32.mrb[100].mxu0  ;;  %v4643_v2 = vadd.f32 %v3307_v34, %v4541_v48 }
 0x1c6   : > { %v3245_v22 = vpop.f32.mrb[101].mxu0 }
 0x1c7   : > { %v3246_v35 = vadd.f32 %v3245_v22, %v3244_v5  ;;  %v3247_v19 = vpop.f32.mrb[102].mxu0  ;;  %v3308_v20 = vpop.f32.mrb[100].mxu1 }
 0x1c8   : > { %v3248_v62 = vpop.f32.mrb[103].mxu0  ;;  %v3309_v60 = vpop.f32.mrb[101].mxu1 }
 0x1c9   : > { %v4646_v63 = vadd.f32 %v3246_v35, %v4556_v44  ;;  %v3249_v29 = vadd.f32 %v3248_v62, %v3247_v19  ;;  %v3310_v53 = vadd.f32 %v3309_v60, %v3308_v20  ;;  %v3311_v42 = vpop.f32.mrb[102].mxu1 }
 0x1ca   : > { %v3312_v37 = vpop.f32.mrb[103].mxu1 }
 0x1cb   : > { %v4649_v25 = vadd.f32 %v3249_v29, %v4559_v38  ;;  %v3313_v32 = vadd.f32 %v3312_v37, %v3311_v42  ;;  %v4652_v16 = vadd.f32 %v3310_v53, %v4550_v24 }
 0x1cd   : > { %v3250_v48 = vpop.f32.mrb[104].mxu0  ;;  %v4655_v33 = vadd.f32 %v3313_v32, %v4553_v12 }
 0x1ce   : > { %v3251_v51 = vpop.f32.mrb[105].mxu0 }
 0x1cf   : > { %v3252_v54 = vadd.f32 %v3251_v51, %v3250_v48  ;;  %v3253_v44 = vpop.f32.mrb[106].mxu0  ;;  %v3314_v9 = vpop.f32.mrb[104].mxu1 }
 0x1d0   : > { %v3254_v21 = vpop.f32.mrb[107].mxu0  ;;  %v3315_v40 = vpop.f32.mrb[105].mxu1 }
 0x1d1   : > { %v4658_v61 = vadd.f32 %v3252_v54, %v4568_v45  ;;  %v3255_v38 = vadd.f32 %v3254_v21, %v3253_v44  ;;  %v3316_v58 = vadd.f32 %v3315_v40, %v3314_v9  ;;  %v3317_v52 = vpop.f32.mrb[106].mxu1 }
 0x1d2   : > { %v3318_v24 = vpop.f32.mrb[107].mxu1 }
 0x1d3   : > { %v4661_v43 = vadd.f32 %v3255_v38, %v4571_v13  ;;  %v3319_v7 = vadd.f32 %v3318_v24, %v3317_v52  ;;  %v4664_v14 = vadd.f32 %v3316_v58, %v4562_v27 }
 0x1d5   : > { %v3256_v12 = vpop.f32.mrb[108].mxu0  ;;  %v4667_v6 = vadd.f32 %v3319_v7, %v4565_v41 }
 0x1d6   : > { %v3257_v11 = vpop.f32.mrb[109].mxu0 }
 0x1d7   : > { %v3258_v3 = vadd.f32 %v3257_v11, %v3256_v12  ;;  %v3259_v45 = vpop.f32.mrb[110].mxu0  ;;  %v3320_v34 = vpop.f32.mrb[108].mxu1 }
 0x1d8   : > { %v3260_v5 = vpop.f32.mrb[111].mxu0  ;;  %v3321_v13 = vpop.f32.mrb[109].mxu1 }
 0x1d9   : > { %v4670_v22 = vadd.f32 %v3258_v3, %v4580_v39  ;;  %v3261_v35 = vadd.f32 %v3260_v5, %v3259_v45  ;;  %v3322_v19 = vadd.f32 %v3321_v13, %v3320_v34  ;;  %v3323_v20 = vpop.f32.mrb[110].mxu1 }
 0x1da   : > { %v3324_v62 = vpop.f32.mrb[111].mxu1 }
 0x1db   : > { %v4673_v27 = vadd.f32 %v3261_v35, %v4583_v46  ;;  %v3325_v60 = vadd.f32 %v3324_v62, %v3323_v20  ;;  %v4676_v41 = vadd.f32 %v3322_v19, %v4574_v18 }
 0x1dd   : > { %v3416_v29 = vpop.f32.mrb[112].mxu0  ;;  %v4681_v39 = vadd.f32 %v3325_v60, %v4577_v47 }
 0x1de   : > { %v2164_v53 = vadd.f32 %v3416_v29, %v4604_v26  ;;  %v2155_v42 = vpop.f32.mrb[113].mxu0 }
 0x1df   : > { %v2156_v37 = vadd.f32 %v2155_v42, %v4592_v49  ;;  %v3417_v32 = vpop.f32.mrb[114].mxu0  ;;  %v3326_v48 = vpop.f32.mrb[112].mxu1 }
 0x1e0   : > { %v2167_v46 = vadd.f32 %v3417_v32, %v4607_v31  ;;  %v2158_v51 = vpop.f32.mrb[115].mxu0  ;;  %v3327_v54 = vpop.f32.mrb[113].mxu1  ;;  %v2481_v52 = vmul.f32 %v2164_v53, %v2164_v53 }
 0x1e1   : > { %v2159_v18 = vadd.f32 %v2158_v51, %v4595_v8  ;;  %v3328_v26 = vadd.f32 %v3327_v54, %v3326_v48  ;;  %v3329_v47 = vpop.f32.mrb[114].mxu1  ;;  %v2479_v9 = vmul.f32 %v2156_v37, %v2156_v37 }
 0x1e2   : > { %v2831_v44 = vpack.c.bf16 %v2167_v46, %v2164_v53  ;;  %v3330_v49 = vpop.f32.mrb[115].mxu1  ;;  %v2482_v45 = vmul.f32 %v2167_v46, %v2167_v46 }
 0x1e3   : > { %v2826_v21 = vpack.c.bf16 %v2159_v18, %v2156_v37  ;;  %v2442_v40 = vadd.f32 %v2159_v18, %v2156_v37  ;;  %v2480_v38 = vmul.f32 %v2159_v18, %v2159_v18  ;;  %v3331_v31 = vadd.f32 %v3330_v49, %v3329_v47 }
 0x1e4   : > { %2911 = vst [vmem:[%s4688_s23 + $0x8] sm:$0xff] %v2831_v44   ;;  %v4693_v58 = vadd.f32 %v3328_v26, %v4586_v55 }
 0x1e5   : > { %2827 = vst [vmem:[%s4688_s23] sm:$0xff] %v2826_v21   ;;  %v2443_v24 = vadd.f32 %v2442_v40, %v2164_v53  ;;  %v2511_v7 = vadd.f32 %v2480_v38, %v2479_v9  ;;  %v3420_v12 = vpop.f32.mrb[116].mxu0  ;;  %v4698_v3 = vadd.f32 %v3331_v31, %v4589_v17 }
 0x1e6   : > { %v2180_v8 = vadd.f32 %v3420_v12, %v4628_v36  ;;  %v2171_v11 = vpop.f32.mrb[117].mxu0 }
 0x1e7   : > { %v2512_v34 = vadd.f32 %v2511_v7, %v2481_v52  ;;  %v2172_v5 = vadd.f32 %v2171_v11, %v4616_v28  ;;  %v2444_v13 = vadd.f32 %v2443_v24, %v2167_v46  ;;  %v3421_v35 = vpop.f32.mrb[118].mxu0  ;;  %v3332_v19 = vpop.f32.mrb[116].mxu1 }
 0x1e8   : > { %v2183_v55 = vadd.f32 %v3421_v35, %v4631_v57  ;;  %v2174_v20 = vpop.f32.mrb[119].mxu0  ;;  %v3333_v62 = vpop.f32.mrb[117].mxu1  ;;  %v2485_v18 = vmul.f32 %v2180_v8, %v2180_v8 }
 0x1e9   : > { %v2445_v60 = vadd.f32 %v2444_v13, %v2172_v5  ;;  %v2483_v29 = vmul.f32 %v2172_v5, %v2172_v5  ;;  %v2513_v36 = vadd.f32 %v2512_v34, %v2482_v45  ;;  %v2175_v53 = vadd.f32 %v2174_v20, %v4619_v56  ;;  %v3335_v42 = vpop.f32.mrb[118].mxu1 }
 0x1ea   : > { %v3334_v17 = vadd.f32 %v3333_v62, %v3332_v19  ;;  %v2841_v37 = vpack.c.bf16 %v2183_v55, %v2180_v8  ;;  %v3336_v48 = vpop.f32.mrb[119].mxu1  ;;  %v2486_v21 = vmul.f32 %v2183_v55, %v2183_v55 }
 0x1eb   : > { %v2514_v32 = vadd.f32 %v2513_v36, %v2483_v29  ;;  %v2836_v28 = vpack.c.bf16 %v2175_v53, %v2172_v5  ;;  %v2446_v46 = vadd.f32 %v2445_v60, %v2175_v53  ;;  %v2484_v51 = vmul.f32 %v2175_v53, %v2175_v53 }
 0x1ec   : > { %2913 = vst [vmem:[%s4688_s23 + $0x18] sm:$0xff] %v2841_v37   ;;  %v3337_v54 = vadd.f32 %v3336_v48, %v3335_v42  ;;  %v4705_v57 = vadd.f32 %v3334_v17, %v4598_v0 }
 0x1ed   : > { %2912 = vst [vmem:[%s4688_s23 + $0x10] sm:$0xff] %v2836_v28   ;;  %v2447_v26 = vadd.f32 %v2446_v46, %v2180_v8  ;;  %v2515_v47 = vadd.f32 %v2514_v32, %v2484_v51  ;;  %v3424_v44 = vpop.f32.mrb[120].mxu0 }
 0x1ee   : > { %v2196_v56 = vadd.f32 %v3424_v44, %v4652_v16  ;;  %v2187_v9 = vpop.f32.mrb[121].mxu0  ;;  %v4710_v49 = vadd.f32 %v3337_v54, %v4601_v4 }
 0x1ef   : > { %v2516_v40 = vadd.f32 %v2515_v47, %v2485_v18  ;;  %v2188_v38 = vadd.f32 %v2187_v9, %v4640_v30  ;;  %v2448_v31 = vadd.f32 %v2447_v26, %v2183_v55  ;;  %v3425_v52 = vpop.f32.mrb[122].mxu0  ;;  %v3338_v24 = vpop.f32.mrb[120].mxu1 }
 0x1f0   : > { %v2199_v0 = vadd.f32 %v3425_v52, %v4655_v33  ;;  %v2190_v7 = vpop.f32.mrb[123].mxu0  ;;  %v3339_v12 = vpop.f32.mrb[121].mxu1  ;;  %v2489_v62 = vmul.f32 %v2196_v56, %v2196_v56 }
 0x1f1   : > { %v2449_v8 = vadd.f32 %v2448_v31, %v2188_v38  ;;  %v2487_v11 = vmul.f32 %v2188_v38, %v2188_v38  ;;  %v2517_v16 = vadd.f32 %v2516_v40, %v2486_v21  ;;  %v2191_v45 = vadd.f32 %v2190_v7, %v4643_v2  ;;  %v3341_v34 = vpop.f32.mrb[122].mxu1 }
 0x1f2   : > { %v3340_v4 = vadd.f32 %v3339_v12, %v3338_v24  ;;  %v2851_v5 = vpack.c.bf16 %v2199_v0, %v2196_v56  ;;  %v3342_v35 = vpop.f32.mrb[123].mxu1  ;;  %v2490_v42 = vmul.f32 %v2199_v0, %v2199_v0 }
 0x1f3   : > { %v2518_v13 = vadd.f32 %v2517_v16, %v2487_v11  ;;  %v2846_v30 = vpack.c.bf16 %v2191_v45, %v2188_v38  ;;  %v2450_v19 = vadd.f32 %v2449_v8, %v2191_v45  ;;  %v2488_v55 = vmul.f32 %v2191_v45, %v2191_v45 }
 0x1f4   : > { %2915 = vst [vmem:[%s4688_s23 + $0x28] sm:$0xff] %v2851_v5   ;;  %v3343_v20 = vadd.f32 %v3342_v35, %v3341_v34  ;;  %v4717_v33 = vadd.f32 %v3340_v4, %v4610_v1 }
 0x1f5   : > { %2914 = vst [vmem:[%s4688_s23 + $0x20] sm:$0xff] %v2846_v30   ;;  %v2451_v60 = vadd.f32 %v2450_v19, %v2196_v56  ;;  %v2519_v29 = vadd.f32 %v2518_v13, %v2488_v55  ;;  %v3428_v36 = vpop.f32.mrb[124].mxu0 }
 0x1f6   : > { %v2212_v2 = vadd.f32 %v3428_v36, %v4676_v41  ;;  %v2203_v53 = vpop.f32.mrb[125].mxu0  ;;  %v4722_v17 = vadd.f32 %v3343_v20, %v4613_v50 }
 0x1f7   : > { %v2520_v37 = vadd.f32 %v2519_v29, %v2489_v62  ;;  %v2204_v32 = vadd.f32 %v2203_v53, %v4664_v14  ;;  %v2452_v48 = vadd.f32 %v2451_v60, %v2199_v0  ;;  %v3429_v28 = vpop.f32.mrb[126].mxu0  ;;  %v3344_v46 = vpop.f32.mrb[124].mxu1 }
 0x1f8   : > { %v2215_v1 = vadd.f32 %v3429_v28, %v4681_v39  ;;  %v2206_v51 = vpop.f32.mrb[127].mxu0  ;;  %v3345_v54 = vpop.f32.mrb[125].mxu1  ;;  %v2493_v52 = vmul.f32 %v2212_v2, %v2212_v2 }
 0x1f9   : > { %v2453_v18 = vadd.f32 %v2452_v48, %v2204_v32  ;;  %v2491_v26 = vmul.f32 %v2204_v32, %v2204_v32  ;;  %v2521_v41 = vadd.f32 %v2520_v37, %v2490_v42  ;;  %v2207_v47 = vadd.f32 %v2206_v51, %v4667_v6  ;;  %v3347_v44 = vpop.f32.mrb[126].mxu1 }
 0x1fa   : > { %v3346_v50 = vadd.f32 %v3345_v54, %v3344_v46  ;;  %v2861_v56 = vpack.c.bf16 %v2215_v1, %v2212_v2  ;;  %v3348_v21 = vpop.f32.mrb[127].mxu1  ;;  %v2494_v11 = vmul.f32 %v2215_v1, %v2215_v1 }
 0x1fb   : > { %v2522_v9 = vadd.f32 %v2521_v41, %v2491_v26  ;;  %v2856_v14 = vpack.c.bf16 %v2207_v47, %v2204_v32  ;;  %v2454_v40 = vadd.f32 %v2453_v18, %v2207_v47  ;;  %v2492_v38 = vmul.f32 %v2207_v47, %v2207_v47 }
 0x1fc   : > { %2917 = vst [vmem:[%s4688_s23 + $0x38] sm:$0xff] %v2861_v56   ;;  %v3349_v31 = vadd.f32 %v3348_v21, %v3347_v44  ;;  %v2083_v39 = vadd.f32 %v3346_v50, %v4622_v23 }
 0x1fd   : > { %2916 = vst [vmem:[%s4688_s23 + $0x30] sm:$0xff] %v2856_v14   ;;  %v2455_v24 = vadd.f32 %v2454_v40, %v2212_v2  ;;  %v2523_v0 = vadd.f32 %v2522_v9, %v2492_v38  ;;  %v3432_v7 = vpop.f32.mrb[128].mxu0 }
 0x1fe   : > { %v2228_v12 = vadd.f32 %v3432_v7, %v4705_v57  ;;  %v2219_v6 = vpop.f32.mrb[129].mxu0  ;;  %v2086_v8 = vadd.f32 %v3349_v31, %v4625_v10 }
 0x1ff   : > { %v2524_v16 = vadd.f32 %v2523_v0, %v2493_v52  ;;  %v2220_v45 = vadd.f32 %v2219_v6, %v4693_v58  ;;  %v2456_v4 = vadd.f32 %v2455_v24, %v2215_v1  ;;  %v3433_v34 = vpop.f32.mrb[130].mxu0  ;;  %v3350_v5 = vpop.f32.mrb[128].mxu1 }
 0x200   : > { %v2231_v23 = vadd.f32 %v3433_v34, %v4710_v49  ;;  %v2222_v13 = vpop.f32.mrb[131].mxu0  ;;  %v3351_v35 = vpop.f32.mrb[129].mxu1  ;;  %v2497_v42 = vmul.f32 %v2228_v12, %v2228_v12 }
 0x201   : > { %v2457_v30 = vadd.f32 %v2456_v4, %v2220_v45  ;;  %v2495_v19 = vmul.f32 %v2220_v45, %v2220_v45  ;;  %v2525_v55 = vadd.f32 %v2524_v16, %v2494_v11  ;;  %v2223_v57 = vadd.f32 %v2222_v13, %v4698_v3  ;;  %v3353_v10 = vpop.f32.mrb[130].mxu1 }
 0x202   : > { %v3352_v20 = vadd.f32 %v3351_v35, %v3350_v5  ;;  %v2871_v62 = vpack.c.bf16 %v2231_v23, %v2228_v12  ;;  %v3354_v29 = vpop.f32.mrb[131].mxu1  ;;  %v2498_v1 = vmul.f32 %v2231_v23, %v2231_v23 }
 0x203   : > { %v2526_v60 = vadd.f32 %v2525_v55, %v2495_v19  ;;  %v2866_v58 = vpack.c.bf16 %v2223_v57, %v2220_v45  ;;  %v2458_v36 = vadd.f32 %v2457_v30, %v2223_v57  ;;  %v2496_v2 = vmul.f32 %v2223_v57, %v2223_v57 }
 0x204   : > { %2919 = vst [vmem:[%s4688_s23 + $0x48] sm:$0xff] %v2871_v62   ;;  %v3355_v53 = vadd.f32 %v3354_v29, %v3353_v10  ;;  %v2091_v49 = vadd.f32 %v3352_v20, %v4634_v59 }
 0x205   : > { %2918 = vst [vmem:[%s4688_s23 + $0x40] sm:$0xff] %v2866_v58   ;;  %v2459_v37 = vadd.f32 %v2458_v36, %v2228_v12  ;;  %v2527_v32 = vadd.f32 %v2526_v60, %v2496_v2  ;;  %v3436_v48 = vpop.f32.mrb[132].mxu0 }
 0x206   : > { %v2244_v28 = vadd.f32 %v3436_v48, %v2083_v39  ;;  %v2235_v46 = vpop.f32.mrb[133].mxu0  ;;  %v2094_v3 = vadd.f32 %v3355_v53, %v4637_v15 }
 0x207   : > { %v2528_v51 = vadd.f32 %v2527_v32, %v2497_v42  ;;  %v2236_v54 = vadd.f32 %v2235_v46, %v4717_v33  ;;  %v2460_v18 = vadd.f32 %v2459_v37, %v2231_v23  ;;  %v3437_v26 = vpop.f32.mrb[134].mxu0  ;;  %v3356_v41 = vpop.f32.mrb[132].mxu1 }
 0x208   : > { %v2247_v47 = vadd.f32 %v3437_v26, %v2086_v8  ;;  %v2238_v50 = vpop.f32.mrb[135].mxu0  ;;  %v3357_v59 = vpop.f32.mrb[133].mxu1  ;;  %v2501_v7 = vmul.f32 %v2244_v28, %v2244_v28 }
 0x209   : > { %v2461_v44 = vadd.f32 %v2460_v18, %v2236_v54  ;;  %v2499_v56 = vmul.f32 %v2236_v54, %v2236_v54  ;;  %v2529_v9 = vadd.f32 %v2528_v51, %v2498_v1  ;;  %v2239_v21 = vadd.f32 %v2238_v50, %v4722_v17  ;;  %v3359_v40 = vpop.f32.mrb[134].mxu1 }
 0x20a   : > { %v3358_v14 = vadd.f32 %v3357_v59, %v3356_v41  ;;  %v2881_v15 = vpack.c.bf16 %v2247_v47, %v2244_v28  ;;  %v3360_v31 = vpop.f32.mrb[135].mxu1  ;;  %v2502_v45 = vmul.f32 %v2247_v47, %v2247_v47 }
 0x20b   : > { %v2530_v38 = vadd.f32 %v2529_v9, %v2499_v56  ;;  %v2876_v39 = vpack.c.bf16 %v2239_v21, %v2236_v54  ;;  %v2462_v33 = vadd.f32 %v2461_v44, %v2239_v21  ;;  %v2500_v52 = vmul.f32 %v2239_v21, %v2239_v21 }
 0x20c   : > { %2921 = vst [vmem:[%s4688_s23 + $0x58] sm:$0xff] %v2881_v15   ;;  %v3361_v24 = vadd.f32 %v3360_v31, %v3359_v40  ;;  %v2099_v0 = vadd.f32 %v3358_v14, %v4646_v63 }
 0x20d   : > { %2920 = vst [vmem:[%s4688_s23 + $0x50] sm:$0xff] %v2876_v39   ;;  %v2463_v12 = vadd.f32 %v2462_v33, %v2244_v28  ;;  %v2531_v6 = vadd.f32 %v2530_v38, %v2500_v52  ;;  %v3440_v8 = vpop.f32.mrb[136].mxu0 }
 0x20e   : > { %v2260_v11 = vadd.f32 %v3440_v8, %v2099_v0  ;;  %v2251_v16 = vpop.f32.mrb[137].mxu0  ;;  %v2102_v17 = vadd.f32 %v3361_v24, %v4649_v25 }
 0x20f   : > { %v2532_v4 = vadd.f32 %v2531_v6, %v2501_v7  ;;  %v2252_v34 = vadd.f32 %v2251_v16, %v2091_v49  ;;  %v2464_v5 = vadd.f32 %v2463_v12, %v2247_v47  ;;  %v3441_v23 = vpop.f32.mrb[138].mxu0  ;;  %v3362_v13 = vpop.f32.mrb[136].mxu1 }
 0x210   : > { %v2263_v35 = vadd.f32 %v3441_v23, %v2102_v17  ;;  %v2254_v30 = vpop.f32.mrb[139].mxu0  ;;  %v3363_v19 = vpop.f32.mrb[137].mxu1  ;;  %v2505_v42 = vmul.f32 %v2260_v11, %v2260_v11 }
 0x211   : > { %v2465_v63 = vadd.f32 %v2464_v5, %v2252_v34  ;;  %v2503_v55 = vmul.f32 %v2252_v34, %v2252_v34  ;;  %v2533_v57 = vadd.f32 %v2532_v4, %v2502_v45  ;;  %v2255_v20 = vadd.f32 %v2254_v30, %v2094_v3  ;;  %v3365_v62 = vpop.f32.mrb[138].mxu1 }
 0x212   : > { %v3364_v10 = vadd.f32 %v3363_v19, %v3362_v13  ;;  %v2891_v60 = vpack.c.bf16 %v2263_v35, %v2260_v11  ;;  %v3366_v25 = vpop.f32.mrb[139].mxu1  ;;  %v2506_v3 = vmul.f32 %v2263_v35, %v2263_v35 }
 0x213   : > { %v2534_v29 = vadd.f32 %v2533_v57, %v2503_v55  ;;  %v2886_v58 = vpack.c.bf16 %v2255_v20, %v2252_v34  ;;  %v2466_v36 = vadd.f32 %v2465_v63, %v2255_v20  ;;  %v2504_v2 = vmul.f32 %v2255_v20, %v2255_v20 }
 0x214   : > { %2923 = vst [vmem:[%s4688_s23 + $0x68] sm:$0xff] %v2891_v60   ;;  %v3367_v53 = vadd.f32 %v3366_v25, %v3365_v62  ;;  %v2107_v49 = vadd.f32 %v3364_v10, %v4658_v61 }
 0x215   : > { %2922 = vst [vmem:[%s4688_s23 + $0x60] sm:$0xff] %v2886_v58   ;;  %v2467_v37 = vadd.f32 %v2466_v36, %v2260_v11  ;;  %v2535_v32 = vadd.f32 %v2534_v29, %v2504_v2  ;;  %v3444_v48 = vpop.f32.mrb[140].mxu0 }
 0x216   : > { %v2267_v28 = vpop.f32.mrb[141].mxu0  ;;  %v2110_v46 = vadd.f32 %v3367_v53, %v4661_v43 }
 0x217   : > { %v2536_v1 = vadd.f32 %v2535_v32, %v2505_v42  ;;  %v2268_v51 = vadd.f32 %v2267_v28, %v2107_v49  ;;  %v2468_v54 = vadd.f32 %v2467_v37, %v2263_v35  ;;  %v3445_v18 = vpop.f32.mrb[142].mxu0  ;;  %v3368_v26 = vpop.f32.mrb[140].mxu1 }
 0x218   : > { %v2270_v41 = vpop.f32.mrb[143].mxu0  ;;  %v3369_v47 = vpop.f32.mrb[141].mxu1 }
 0x219   : > { %v2469_v50 = vadd.f32 %v2468_v54, %v2268_v51  ;;  %v2507_v59 = vmul.f32 %v2268_v51, %v2268_v51  ;;  %v2537_v61 = vadd.f32 %v2536_v1, %v2506_v3  ;;  %v2271_v44 = vadd.f32 %v2270_v41, %v2110_v46  ;;  %v3371_v9 = vpop.f32.mrb[142].mxu1 }
 0x21a   : > { %v3370_v56 = vadd.f32 %v3369_v47, %v3368_v26  ;;  %v3372_v14 = vpop.f32.mrb[143].mxu1 }
 0x21b   : > { %v2538_v21 = vadd.f32 %v2537_v61, %v2507_v59  ;;  %v2896_v40 = vpack.c.bf16 %v2271_v44, %v2268_v51  ;;  %v2470_v43 = vadd.f32 %v2469_v50, %v2271_v44  ;;  %v2508_v15 = vmul.f32 %v2271_v44, %v2271_v44 }
 0x21c   : > { %v2115_v38 = vadd.f32 %v3370_v56, %v4670_v22  ;;  %v3373_v31 = vadd.f32 %v3372_v14, %v3371_v9 }
 0x21d   : > { %2924 = vst [vmem:[%s4688_s23 + $0x70] sm:$0xff] %v2896_v40   ;;  %v2539_v39 = vadd.f32 %v2538_v21, %v2508_v15 }
 0x21e   : > { %v2276_v33 = vadd.f32 %v3444_v48, %v2115_v38  ;;  %v2118_v52 = vadd.f32 %v3373_v31, %v4673_v27 }
 0x220   : > { %v2509_v24 = vmul.f32 %v2276_v33, %v2276_v33  ;;  %v2279_v0 = vadd.f32 %v3445_v18, %v2118_v52  ;;  %v2471_v7 = vadd.f32 %v2470_v43, %v2276_v33 }
 0x222   : > { %v2901_v12 = vpack.c.bf16 %v2279_v0, %v2276_v33  ;;  %v2510_v6 = vmul.f32 %v2279_v0, %v2279_v0  ;;  %v2472_v8 = vadd.f32 %v2471_v7, %v2279_v0  ;;  %v2540_v11 = vadd.f32 %v2539_v39, %v2509_v24 }
 0x224   : > { %2925 = vst [vmem:[%s4688_s23 + $0x78] sm:$0xff] %v2901_v12   ;;  %v2473_v16 = vrot.slane %v2472_v8, 4  ;;  %v2541_v17 = vadd.f32 %v2540_v11, %v2510_v6 }
 0x226   : > { %v2474_v45 = vadd.f32 %v2473_v16, %v2472_v8  ;;  %v2542_v4 = vrot.slane %v2541_v17, 4 }
 0x228   : > { %v2475_v22 = vrot.slane %v2474_v45, 2  ;;  %v2543_v34 = vadd.f32 %v2542_v4, %v2541_v17 }
 0x22a   : > { %v2476_v5 = vadd.f32 %v2475_v22, %v2474_v45  ;;  %v2544_v23 = vrot.slane %v2543_v34, 2 }
 0x22c   : > { %v2477_v13 = vrot.slane %v2476_v5, 1  ;;  %v2545_v35 = vadd.f32 %v2544_v23, %v2543_v34 }
 0x22e   : > { %v2546_v27 = vrot.slane %v2545_v35, 1  ;;  %v2478_v30 = vadd.f32 %v2477_v13, %v2476_v5 }
 0x230   : > { %v2547_v19 = vadd.f32 %v2546_v27, %v2545_v35 }
 0x232   : > { %v2549_v63 = vsel %vm2548_vm2, %v2478_v30, %v2547_v19 }
 0x233   : > { %2550 = vst [vmem:[%s235_s27] sm:$0x3] %v2549_v63 }
 0x234 PF: > { %s16_s18 = sadd.s32 1, %s3551_s18  }
 0x235   : > { %p13_p4 = scmp.ge.s32.totalorder %s16_s18, 4  }
 0x237   :  { %15 = sbr.rel (!%p13_p4) target bundleno = 1 (0x1), region = 78 }

</bundles_post_ra>
